<compile_context>
chip_gen: v7x
topology: tpu7x:2x2x1
jax: 0.10.0
libtpu: 0.0.40
codegen_flags: <defaults>
</compile_context>

<pallas_src>
import jax
import jax.numpy as jnp
from jax.experimental import pallas as pl
from jax.experimental.pallas import tpu as pltpu

NEG_SLOPE = 0.01
NUM_LAYERS = 8
NO_ACT_LAYERS = (3, 7)  # latent z and final reconstruction: no LeakyReLU
D_IN = 784
DEFAULT_TB = 256  # batch tile: fills MXU rows on v6e/v7x (256) and v5e (>=128)


def _round_up(n, m=128):
    return ((n + m - 1) // m) * m


def _dae_fused_kernel(*refs):
    """refs = (x_ref, w0..w7, b_all_ref, o_ref).

    Straight-line unrolled 8-layer MLP on one (TB, 896) batch tile: bf16
    matmul operands, f32 MXU accumulation, f32 bias + LeakyReLU, bf16
    activations between layers.  Activations never leave the chip.
    """
    x_ref = refs[0]
    w_refs = refs[1:1 + NUM_LAYERS]
    b_all_ref = refs[1 + NUM_LAYERS]
    o_ref = refs[-1]

    b_all = b_all_ref[...]          # (8, 1024) f32, row i = layer i bias (padded)
    h = x_ref[...]                  # bf16 (TB, 896)
    for idx in range(NUM_LAYERS):
        w = w_refs[idx][...]        # bf16 (K_pad, N_pad)
        n_pad = w.shape[1]
        y = jnp.dot(h, w, preferred_element_type=jnp.float32)
        y = y + b_all[idx:idx + 1, :n_pad]
        if idx not in NO_ACT_LAYERS:
            y = jnp.maximum(y, NEG_SLOPE * y)
        # Keep bf16 between layers (MXU operand dtype); final layer stays f32.
        h = y.astype(jnp.bfloat16) if idx < NUM_LAYERS - 1 else y
    o_ref[...] = h.astype(o_ref.dtype)


def dae_forward_fused(x_pad, weights, bias_mat, tb):
    """Batch-tiled fused forward over the whole (padded) network.

    x_pad:    (B_pad, 896) bf16, B_pad % tb == 0.
    weights:  list of 8 bf16 (K_pad, N_pad) arrays.
    bias_mat: (8, 1024) f32, row i = zero-padded bias of layer i.
    Returns (B_pad, 896) f32 padded reconstruction.
    """
    B_pad, K0 = x_pad.shape
    assert B_pad % tb == 0 and K0 % 128 == 0
    n_out = weights[-1].shape[1]  # 896 (padded 784)

    in_specs = [pl.BlockSpec((tb, K0), lambda i: (i, 0))]
    inputs = [x_pad]
    flops = 0
    bytes_accessed = x_pad.size * x_pad.dtype.itemsize
    for W in weights:
        kin, kout = W.shape
        # Constant block index -> weight stays VMEM-resident across grid steps.
        in_specs.append(pl.BlockSpec((kin, kout), lambda i: (0, 0)))
        inputs.append(W)
        flops += 2 * B_pad * kin * kout
        bytes_accessed += W.size * W.dtype.itemsize
    in_specs.append(pl.BlockSpec(bias_mat.shape, lambda i: (0, 0)))
    inputs.append(bias_mat)
    bytes_accessed += bias_mat.size * bias_mat.dtype.itemsize
    bytes_accessed += B_pad * n_out * 4  # f32 output

    return pl.pallas_call(
        _dae_fused_kernel,
        out_shape=jax.ShapeDtypeStruct((B_pad, n_out), jnp.float32),
        grid=(B_pad // tb,),
        in_specs=in_specs,
        out_specs=pl.BlockSpec((tb, n_out), lambda i: (i, 0)),
        compiler_params=pltpu.CompilerParams(
            # Batch tiles are independent -> parallel (v7x megacore sharding).
            dimension_semantics=("parallel",),
            # TB=256: ~12.4 MB pipeline buffers (weights double-buffered but
            # never re-fetched) + a few MB of activations -> fits every chip.
            vmem_limit_bytes=32 * 1024 * 1024,
        ),
        cost_estimate=pl.CostEstimate(
            flops=flops, transcendentals=0, bytes_accessed=bytes_accessed),
    )(*inputs)


def dae_apply_padded(x, weights, bias_mat, *, tb=DEFAULT_TB):
    """Forward for unpadded f32 x with pre-padded bf16 weights / f32 bias_mat.

    x: (B, 784) f32.  Returns (B, 784) f32.
    Intended to be wrapped in jax.jit with pad_and_cast_params hoisted out.
    """
    B, d_in = x.shape
    assert d_in == D_IN
    tb_eff = min(tb, _round_up(B, 8))
    B_pad = _round_up(B, tb_eff)
    D_pad = _round_up(d_in)

    # bf16 input tile: halves x HBM traffic; MXU consumes bf16 anyway.
    x_pad = (jnp.zeros((B_pad, D_pad), jnp.bfloat16)
             .at[:B, :d_in].set(x.astype(jnp.bfloat16)))
    out_pad = dae_forward_fused(x_pad, weights, bias_mat, tb_eff)
    return out_pad[:B, :d_in]


def init_dae_params(key):
    """Deterministic PyTorch-style (uniform +-1/sqrt(fan_in)) init, f32.

    Encoder: 784->300->500->1000->10, Decoder: 10->1000->500->300->784.
    Returns list of 8 (W (in,out), b (1,out)) float32 (unpadded).
    """
    dims = [784, 300, 500, 1000, 10]
    layer_dims = list(zip(dims[:-1], dims[1:])) + list(
        zip(dims[::-1][:-1], dims[::-1][1:]))
    params = []
    for fan_in, fan_out in layer_dims:
        key, kw, kb = jax.random.split(key, 3)
        bound = 1.0 / jnp.sqrt(fan_in)
        W = jax.random.uniform(kw, (fan_in, fan_out), jnp.float32,
                               minval=-bound, maxval=bound)
        b = jax.random.uniform(kb, (1, fan_out), jnp.float32,
                               minval=-bound, maxval=bound)
        params.append((W, b))
    return params


def pad_and_cast_params(params):
    """Zero-pad weights to 128-multiple dims (-> bf16) and pack all biases
    into one (8, max_out_pad) f32 matrix.  Call ONCE, outside the jitted
    forward, so the pad/cast HBM pass is not repeated per call."""
    max_out = max(_round_up(W.shape[1]) for W, _ in params)
    weights, bias_rows = [], []
    for W, b in params:
        kin, kout = W.shape
        kin_p, kout_p = _round_up(kin), _round_up(kout)
        W_p = jnp.zeros((kin_p, kout_p), jnp.float32).at[:kin, :kout].set(W)
        weights.append(W_p.astype(jnp.bfloat16))
        bias_rows.append(
            jnp.zeros((max_out,), jnp.float32).at[:kout].set(b.reshape(-1)))
    bias_mat = jnp.stack(bias_rows, axis=0)  # (8, 1024) f32
    return weights, bias_mat


def dae_reference(x, params):
    """Plain-JAX reference emulating the kernel numerics (bf16 MXU operands,
    f32 accumulation, f32 bias + LeakyReLU, bf16 inter-layer activations)."""
    h = x.astype(jnp.bfloat16)
    for idx, (W, b) in enumerate(params):
        y = jnp.dot(h, W.astype(jnp.bfloat16),
                    preferred_element_type=jnp.float32) + b
        if idx not in NO_ACT_LAYERS:
            y = jnp.maximum(y, NEG_SLOPE * y)
        h = y.astype(jnp.bfloat16) if idx < len(params) - 1 else y
    return h


if __name__ == "__main__":
    key = jax.random.PRNGKey(0)
    key_params, key_x = jax.random.split(key)

    params = init_dae_params(key_params)
    weights, bias_mat = pad_and_cast_params(params)  # hoisted: padded once

    batch = 8  # small example batch (multiple of 8 sublanes)
    x = jax.random.normal(key_x, (batch, 784), dtype=jnp.float32)

    fwd = jax.jit(dae_apply_padded)
    out = jax.block_until_ready(fwd(x, weights, bias_mat))

    ref = dae_reference(x, params)
    assert out.shape == (batch, 784), out.shape
    max_err = float(jnp.max(jnp.abs(out - ref)))
    assert jnp.allclose(out, ref, atol=1e-2, rtol=1e-2), max_err

    print("KERNEL_OK")
</pallas_src>

<mosaic_0001>
module attributes {stable_mosaic.version = 11 : i64} {
  func.func @_dae_fused_kernel(%arg0: i32, %arg1: memref<8x896xbf16, #tpu.memory_space<vmem>>, %arg2: memref<896x384xbf16, #tpu.memory_space<vmem>>, %arg3: memref<384x512xbf16, #tpu.memory_space<vmem>>, %arg4: memref<512x1024xbf16, #tpu.memory_space<vmem>>, %arg5: memref<1024x128xbf16, #tpu.memory_space<vmem>>, %arg6: memref<128x1024xbf16, #tpu.memory_space<vmem>>, %arg7: memref<1024x512xbf16, #tpu.memory_space<vmem>>, %arg8: memref<512x384xbf16, #tpu.memory_space<vmem>>, %arg9: memref<384x896xbf16, #tpu.memory_space<vmem>>, %arg10: memref<8x1024xf32, #tpu.memory_space<vmem>>, %arg11: memref<8x896xf32, #tpu.memory_space<vmem>>) attributes {dimension_semantics = [#tpu.dimension_semantics<parallel>], iteration_bounds = array<i64: 1>, scalar_prefetch = 0 : i64, scratch_operands = 0 : i64, tpu.core_type = #tpu.core_type<tc>, window_params = [{transform_indices = @transform_0, window_bounds = array<i64: 8, 896>}, {pipeline_mode = #tpu.pipeline_mode<synchronous>, transform_indices = @transform_1, window_bounds = array<i64: 896, 384>}, {pipeline_mode = #tpu.pipeline_mode<synchronous>, transform_indices = @transform_2, window_bounds = array<i64: 384, 512>}, {pipeline_mode = #tpu.pipeline_mode<synchronous>, transform_indices = @transform_3, window_bounds = array<i64: 512, 1024>}, {pipeline_mode = #tpu.pipeline_mode<synchronous>, transform_indices = @transform_4, window_bounds = array<i64: 1024, 128>}, {pipeline_mode = #tpu.pipeline_mode<synchronous>, transform_indices = @transform_5, window_bounds = array<i64: 128, 1024>}, {pipeline_mode = #tpu.pipeline_mode<synchronous>, transform_indices = @transform_6, window_bounds = array<i64: 1024, 512>}, {pipeline_mode = #tpu.pipeline_mode<synchronous>, transform_indices = @transform_7, window_bounds = array<i64: 512, 384>}, {pipeline_mode = #tpu.pipeline_mode<synchronous>, transform_indices = @transform_8, window_bounds = array<i64: 384, 896>}, {pipeline_mode = #tpu.pipeline_mode<synchronous>, transform_indices = @transform_9, window_bounds = array<i64: 8, 1024>}, {transform_indices = @transform_10, window_bounds = array<i64: 8, 896>}]} {
    %c0 = arith.constant 0 : index
    %c0_0 = arith.constant 0 : index
    %0 = vector.load %arg10[%c0, %c0_0] : memref<8x1024xf32, #tpu.memory_space<vmem>>, vector<8x1024xf32>
    %c0_1 = arith.constant 0 : index
    %c0_2 = arith.constant 0 : index
    %1 = vector.load %arg1[%c0_1, %c0_2] : memref<8x896xbf16, #tpu.memory_space<vmem>>, vector<8x896xbf16>
    %c0_3 = arith.constant 0 : index
    %c0_4 = arith.constant 0 : index
    %2 = vector.load %arg2[%c0_3, %c0_4] : memref<896x384xbf16, #tpu.memory_space<vmem>>, vector<896x384xbf16>
    %cst = arith.constant dense<0.000000e+00> : vector<8x384xf32>
    %3 = tpu.matmul %1, %2, %cst {dimension_numbers = #tpu.dot_dimension_numbers<[1], [0], [0], [1], [0, 0, 1, 1], [], []>} : vector<8x896xbf16>, vector<896x384xbf16>, vector<8x384xf32> -> vector<8x384xf32>
    %4 = vector.extract_strided_slice %0 {offsets = [0, 0], sizes = [1, 384], strides = [1, 1]} : vector<8x1024xf32> to vector<1x384xf32>
    %5 = vector.broadcast %4 : vector<1x384xf32> to vector<8x384xf32>
    %6 = arith.addf %3, %5 : vector<8x384xf32>
    %cst_5 = arith.constant 0.00999999977 : f32
    %7 = vector.broadcast %cst_5 : f32 to vector<8x384xf32>
    %8 = arith.mulf %7, %6 : vector<8x384xf32>
    %9 = arith.maximumf %6, %8 : vector<8x384xf32>
    %10 = arith.truncf %9 : vector<8x384xf32> to vector<8x384xbf16>
    %c0_6 = arith.constant 0 : index
    %c0_7 = arith.constant 0 : index
    %11 = vector.load %arg3[%c0_6, %c0_7] : memref<384x512xbf16, #tpu.memory_space<vmem>>, vector<384x512xbf16>
    %cst_8 = arith.constant dense<0.000000e+00> : vector<8x512xf32>
    %12 = tpu.matmul %10, %11, %cst_8 {dimension_numbers = #tpu.dot_dimension_numbers<[1], [0], [0], [1], [0, 0, 1, 1], [], []>} : vector<8x384xbf16>, vector<384x512xbf16>, vector<8x512xf32> -> vector<8x512xf32>
    %13 = vector.extract_strided_slice %0 {offsets = [1, 0], sizes = [1, 512], strides = [1, 1]} : vector<8x1024xf32> to vector<1x512xf32>
    %14 = vector.broadcast %13 : vector<1x512xf32> to vector<8x512xf32>
    %15 = arith.addf %12, %14 : vector<8x512xf32>
    %cst_9 = arith.constant 0.00999999977 : f32
    %16 = vector.broadcast %cst_9 : f32 to vector<8x512xf32>
    %17 = arith.mulf %16, %15 : vector<8x512xf32>
    %18 = arith.maximumf %15, %17 : vector<8x512xf32>
    %19 = arith.truncf %18 : vector<8x512xf32> to vector<8x512xbf16>
    %c0_10 = arith.constant 0 : index
    %c0_11 = arith.constant 0 : index
    %20 = vector.load %arg4[%c0_10, %c0_11] : memref<512x1024xbf16, #tpu.memory_space<vmem>>, vector<512x1024xbf16>
    %cst_12 = arith.constant dense<0.000000e+00> : vector<8x1024xf32>
    %21 = tpu.matmul %19, %20, %cst_12 {dimension_numbers = #tpu.dot_dimension_numbers<[1], [0], [0], [1], [0, 0, 1, 1], [], []>} : vector<8x512xbf16>, vector<512x1024xbf16>, vector<8x1024xf32> -> vector<8x1024xf32>
    %22 = vector.extract_strided_slice %0 {offsets = [2, 0], sizes = [1, 1024], strides = [1, 1]} : vector<8x1024xf32> to vector<1x1024xf32>
    %23 = vector.broadcast %22 : vector<1x1024xf32> to vector<8x1024xf32>
    %24 = arith.addf %21, %23 : vector<8x1024xf32>
    %cst_13 = arith.constant 0.00999999977 : f32
    %25 = vector.broadcast %cst_13 : f32 to vector<8x1024xf32>
    %26 = arith.mulf %25, %24 : vector<8x1024xf32>
    %27 = arith.maximumf %24, %26 : vector<8x1024xf32>
    %28 = arith.truncf %27 : vector<8x1024xf32> to vector<8x1024xbf16>
    %c0_14 = arith.constant 0 : index
    %c0_15 = arith.constant 0 : index
    %29 = vector.load %arg5[%c0_14, %c0_15] : memref<1024x128xbf16, #tpu.memory_space<vmem>>, vector<1024x128xbf16>
    %cst_16 = arith.constant dense<0.000000e+00> : vector<8x128xf32>
    %30 = tpu.matmul %28, %29, %cst_16 {dimension_numbers = #tpu.dot_dimension_numbers<[1], [0], [0], [1], [0, 0, 1, 1], [], []>} : vector<8x1024xbf16>, vector<1024x128xbf16>, vector<8x128xf32> -> vector<8x128xf32>
    %31 = vector.extract_strided_slice %0 {offsets = [3, 0], sizes = [1, 128], strides = [1, 1]} : vector<8x1024xf32> to vector<1x128xf32>
    %32 = vector.broadcast %31 : vector<1x128xf32> to vector<8x128xf32>
    %33 = arith.addf %30, %32 : vector<8x128xf32>
    %34 = arith.truncf %33 : vector<8x128xf32> to vector<8x128xbf16>
    %c0_17 = arith.constant 0 : index
    %c0_18 = arith.constant 0 : index
    %35 = vector.load %arg6[%c0_17, %c0_18] : memref<128x1024xbf16, #tpu.memory_space<vmem>>, vector<128x1024xbf16>
    %cst_19 = arith.constant dense<0.000000e+00> : vector<8x1024xf32>
    %36 = tpu.matmul %34, %35, %cst_19 {dimension_numbers = #tpu.dot_dimension_numbers<[1], [0], [0], [1], [0, 0, 1, 1], [], []>} : vector<8x128xbf16>, vector<128x1024xbf16>, vector<8x1024xf32> -> vector<8x1024xf32>
    %37 = vector.extract_strided_slice %0 {offsets = [4, 0], sizes = [1, 1024], strides = [1, 1]} : vector<8x1024xf32> to vector<1x1024xf32>
    %38 = vector.broadcast %37 : vector<1x1024xf32> to vector<8x1024xf32>
    %39 = arith.addf %36, %38 : vector<8x1024xf32>
    %cst_20 = arith.constant 0.00999999977 : f32
    %40 = vector.broadcast %cst_20 : f32 to vector<8x1024xf32>
    %41 = arith.mulf %40, %39 : vector<8x1024xf32>
    %42 = arith.maximumf %39, %41 : vector<8x1024xf32>
    %43 = arith.truncf %42 : vector<8x1024xf32> to vector<8x1024xbf16>
    %c0_21 = arith.constant 0 : index
    %c0_22 = arith.constant 0 : index
    %44 = vector.load %arg7[%c0_21, %c0_22] : memref<1024x512xbf16, #tpu.memory_space<vmem>>, vector<1024x512xbf16>
    %cst_23 = arith.constant dense<0.000000e+00> : vector<8x512xf32>
    %45 = tpu.matmul %43, %44, %cst_23 {dimension_numbers = #tpu.dot_dimension_numbers<[1], [0], [0], [1], [0, 0, 1, 1], [], []>} : vector<8x1024xbf16>, vector<1024x512xbf16>, vector<8x512xf32> -> vector<8x512xf32>
    %46 = vector.extract_strided_slice %0 {offsets = [5, 0], sizes = [1, 512], strides = [1, 1]} : vector<8x1024xf32> to vector<1x512xf32>
    %47 = vector.broadcast %46 : vector<1x512xf32> to vector<8x512xf32>
    %48 = arith.addf %45, %47 : vector<8x512xf32>
    %cst_24 = arith.constant 0.00999999977 : f32
    %49 = vector.broadcast %cst_24 : f32 to vector<8x512xf32>
    %50 = arith.mulf %49, %48 : vector<8x512xf32>
    %51 = arith.maximumf %48, %50 : vector<8x512xf32>
    %52 = arith.truncf %51 : vector<8x512xf32> to vector<8x512xbf16>
    %c0_25 = arith.constant 0 : index
    %c0_26 = arith.constant 0 : index
    %53 = vector.load %arg8[%c0_25, %c0_26] : memref<512x384xbf16, #tpu.memory_space<vmem>>, vector<512x384xbf16>
    %cst_27 = arith.constant dense<0.000000e+00> : vector<8x384xf32>
    %54 = tpu.matmul %52, %53, %cst_27 {dimension_numbers = #tpu.dot_dimension_numbers<[1], [0], [0], [1], [0, 0, 1, 1], [], []>} : vector<8x512xbf16>, vector<512x384xbf16>, vector<8x384xf32> -> vector<8x384xf32>
    %55 = vector.extract_strided_slice %0 {offsets = [6, 0], sizes = [1, 384], strides = [1, 1]} : vector<8x1024xf32> to vector<1x384xf32>
    %56 = vector.broadcast %55 : vector<1x384xf32> to vector<8x384xf32>
    %57 = arith.addf %54, %56 : vector<8x384xf32>
    %cst_28 = arith.constant 0.00999999977 : f32
    %58 = vector.broadcast %cst_28 : f32 to vector<8x384xf32>
    %59 = arith.mulf %58, %57 : vector<8x384xf32>
    %60 = arith.maximumf %57, %59 : vector<8x384xf32>
    %61 = arith.truncf %60 : vector<8x384xf32> to vector<8x384xbf16>
    %c0_29 = arith.constant 0 : index
    %c0_30 = arith.constant 0 : index
    %62 = vector.load %arg9[%c0_29, %c0_30] : memref<384x896xbf16, #tpu.memory_space<vmem>>, vector<384x896xbf16>
    %cst_31 = arith.constant dense<0.000000e+00> : vector<8x896xf32>
    %63 = tpu.matmul %61, %62, %cst_31 {dimension_numbers = #tpu.dot_dimension_numbers<[1], [0], [0], [1], [0, 0, 1, 1], [], []>} : vector<8x384xbf16>, vector<384x896xbf16>, vector<8x896xf32> -> vector<8x896xf32>
    %64 = vector.extract_strided_slice %0 {offsets = [7, 0], sizes = [1, 896], strides = [1, 1]} : vector<8x1024xf32> to vector<1x896xf32>
    %65 = vector.broadcast %64 : vector<1x896xf32> to vector<8x896xf32>
    %66 = arith.addf %63, %65 : vector<8x896xf32>
    %c0_32 = arith.constant 0 : index
    %c0_33 = arith.constant 0 : index
    %67 = vector.load %arg11[%c0_32, %c0_33] : memref<8x896xf32, #tpu.memory_space<vmem>>, vector<8x896xf32>
    tpu.vector_store %arg11[%c0_32, %c0_33], %66 {strides = array<i32>} : memref<8x896xf32, #tpu.memory_space<vmem>>, vector<8x896xf32>,
    return
  }
  func.func @transform_0(%arg0: i32) -> (i32, i32) {
    %c0_i32 = arith.constant 0 : i32
    %c0_i32_0 = arith.constant 0 : i32
    return %arg0, %c0_i32 : i32, i32
  }
  func.func @transform_1(%arg0: i32) -> (i32, i32) {
    %c0_i32 = arith.constant 0 : i32
    %c0_i32_0 = arith.constant 0 : i32
    %c0_i32_1 = arith.constant 0 : i32
    return %c0_i32, %c0_i32_0 : i32, i32
  }
  func.func @transform_2(%arg0: i32) -> (i32, i32) {
    %c0_i32 = arith.constant 0 : i32
    %c0_i32_0 = arith.constant 0 : i32
    %c0_i32_1 = arith.constant 0 : i32
    return %c0_i32, %c0_i32_0 : i32, i32
  }
  func.func @transform_3(%arg0: i32) -> (i32, i32) {
    %c0_i32 = arith.constant 0 : i32
    %c0_i32_0 = arith.constant 0 : i32
    %c0_i32_1 = arith.constant 0 : i32
    return %c0_i32, %c0_i32_0 : i32, i32
  }
  func.func @transform_4(%arg0: i32) -> (i32, i32) {
    %c0_i32 = arith.constant 0 : i32
    %c0_i32_0 = arith.constant 0 : i32
    %c0_i32_1 = arith.constant 0 : i32
    return %c0_i32, %c0_i32_0 : i32, i32
  }
  func.func @transform_5(%arg0: i32) -> (i32, i32) {
    %c0_i32 = arith.constant 0 : i32
    %c0_i32_0 = arith.constant 0 : i32
    %c0_i32_1 = arith.constant 0 : i32
    return %c0_i32, %c0_i32_0 : i32, i32
  }
  func.func @transform_6(%arg0: i32) -> (i32, i32) {
    %c0_i32 = arith.constant 0 : i32
    %c0_i32_0 = arith.constant 0 : i32
    %c0_i32_1 = arith.constant 0 : i32
    return %c0_i32, %c0_i32_0 : i32, i32
  }
  func.func @transform_7(%arg0: i32) -> (i32, i32) {
    %c0_i32 = arith.constant 0 : i32
    %c0_i32_0 = arith.constant 0 : i32
    %c0_i32_1 = arith.constant 0 : i32
    return %c0_i32, %c0_i32_0 : i32, i32
  }
  func.func @transform_8(%arg0: i32) -> (i32, i32) {
    %c0_i32 = arith.constant 0 : i32
    %c0_i32_0 = arith.constant 0 : i32
    %c0_i32_1 = arith.constant 0 : i32
    return %c0_i32, %c0_i32_0 : i32, i32
  }
  func.func @transform_9(%arg0: i32) -> (i32, i32) {
    %c0_i32 = arith.constant 0 : i32
    %c0_i32_0 = arith.constant 0 : i32
    %c0_i32_1 = arith.constant 0 : i32
    return %c0_i32, %c0_i32_0 : i32, i32
  }
  func.func @transform_10(%arg0: i32) -> (i32, i32) {
    %c0_i32 = arith.constant 0 : i32
    %c0_i32_0 = arith.constant 0 : i32
    return %arg0, %c0_i32 : i32, i32
  }
}

</mosaic_0001>

<bundles_post_ra>
// kernel: dae_apply_padded.1
= control target key start
LH: loop header
LB: loop body
LE: loop exit
PB: predicated region body
PF: predicated region fallthrough
CT: control target
= control target key end

     0   :  { %15 = vsyncpa [#allocation3], 0  ;;  %s13268_s0 = inlined_call_operand.vmem [shape: bf16[8,896], index: 0, kind: input, shape index: {}]   ;;  %s13269_s1 = inlined_call_operand.hbm [shape: bf16[896,384], index: 1, kind: input, shape index: {}]   ;;  %s13270_s2 = inlined_call_operand.hbm [shape: bf16[384,512], index: 2, kind: input, shape index: {}]   ;;  %s13271_s3 = inlined_call_operand.hbm [shape: bf16[512,1024], index: 3, kind: input, shape index: {}]   ;;  %s13272_s4 = inlined_call_operand.hbm [shape: bf16[1024,128], index: 4, kind: input, shape index: {}]   ;;  %s13273_s5 = inlined_call_operand.hbm [shape: bf16[128,1024], index: 5, kind: input, shape index: {}]   ;;  %s13274_s6 = inlined_call_operand.hbm [shape: bf16[1024,512], index: 6, kind: input, shape index: {}]   ;;  %s13275_s7 = inlined_call_operand.hbm [shape: bf16[512,384], index: 7, kind: input, shape index: {}]   ;;  %s13276_s8 = inlined_call_operand.hbm [shape: bf16[384,896], index: 8, kind: input, shape index: {}]   ;;  %s13277_s9 = inlined_call_operand.vmem [shape: f32[8,1024], index: 9, kind: input, shape index: {}]   ;;  %s13278_s10 = inlined_call_operand.hbm [shape: f32[8,896], index: 10, kind: output, shape index: {}]  }
   0x1   :  { %16 = vsyncpa [#allocation6], 0 }
   0x2   :  { %17 = vsyncpa [#allocation9], 0 }
   0x3   :  { %18 = vsyncpa [#allocation12], 0 }
   0x4   :  { %19 = vsyncpa [#allocation15], 0 }
   0x5   :  { %20 = vsyncpa [#allocation4], 0  ;;  %s12766_s13 = smov [#allocation5]   ;;  %s12556_s17 = scalar_lea.hbm %s13270_s2, 12288 }
   0x6   :  { %s40_s14 = sshll.u32 %s12766_s13, 4  ;;  %p12557_p0 = scmp.ne.s32.totalorder %s13270_s2, %s12556_s17  ;;  %s41_s14 = int_to_ptr.vmem [resolvable:$true] %s40_s14 }
   0x7   :  { %p12560_p1 = scmp.lt.u32.totalorder %s12556_s17, %s13270_s2 }
   0x9   :  { %p12562_p2 = pnand %p12560_p1, %p12557_p0 }
   0xb   :  { %12565 = shalt.err (!%p12562_p2)
}
   0xc   :  { %s12566_s22 = scalar_lea.vmem %s41_s14, 12288  ;;  %p12571_p4 = scmp.lt.s32.totalorder %s41_s14, %s41_s14 }
   0xd   :  { %p12567_p3 = scmp.ne.s32.totalorder %s41_s14, %s12566_s22  ;;  %p12572_p5 = scmp.lt.s32.totalorder %s12566_s22, %s12566_s22 }
   0xf   :  { %p12573_p6 = por %p12572_p5, %p12571_p4 }
  0x11   :  { %p12574_p7 = pnand %p12573_p6, %p12567_p3 }
  0x13   :  { %12577 = shalt.err (!%p12574_p7)
}
  0x14   :  { %s12767_s23 = smov 256   ;;  %s12768_s24 = smov 16  }
  0x15   :  { %46 = dma.hbm_to_vmem [thread:$0]  %s13270_s2, 12288, %s41_s14, [#allocation6], %s12767_s23, %s12767_s23, %s12768_s24  }
  0x16   :  { %s12769_s27 = smov [#allocation8]   ;;  %s12578_s11 = scalar_lea.hbm %s13272_s4, 8192 }
  0x17   :  { %s64_s28 = sshll.u32 %s12769_s27, 4  ;;  %p12579_p8 = scmp.ne.s32.totalorder %s13272_s4, %s12578_s11  ;;  %s65_s28 = int_to_ptr.vmem [resolvable:$true] %s64_s28 }
  0x18   :  { %p12582_p9 = scmp.lt.u32.totalorder %s12578_s11, %s13272_s4 }
  0x1a   :  { %p12584_p10 = pnand %p12582_p9, %p12579_p8 }
  0x1c   :  { %12587 = shalt.err (!%p12584_p10)
}
  0x1d   :  { %s12588_s17 = scalar_lea.vmem %s65_s28, 8192  ;;  %p12593_p12 = scmp.lt.s32.totalorder %s65_s28, %s65_s28 }
  0x1e   :  { %p12589_p11 = scmp.ne.s32.totalorder %s65_s28, %s12588_s17  ;;  %p12594_p13 = scmp.lt.s32.totalorder %s12588_s17, %s12588_s17 }
  0x20   :  { %p12595_p0 = por %p12594_p13, %p12593_p12 }
  0x22   :  { %p12596_p1 = pnand %p12595_p0, %p12589_p11 }
  0x24   :  { %12599 = shalt.err (!%p12596_p1)
}
  0x25   :  { %s12770_s2 = smov 64   ;;  %s12771_s14 = smov 4  }
  0x26   :  { %70 = dma.hbm_to_vmem [thread:$0]  %s13272_s4, 8192, %s65_s28, [#allocation9], %s12770_s2, %s12770_s2, %s12771_s14  }
  0x27   :  { %s12772_s20 = smov [#allocation11]   ;;  %s12773_s22 = smov [#allocation2]  }
  0x28   :  { %s88_s21 = sshll.u32 %s12772_s20, 4  ;;  %s28_s25 = sshll.u32 %s12773_s22, 4  ;;  %s89_s21 = int_to_ptr.vmem [resolvable:$true] %s88_s21  ;;  %s12870_s25 = int_to_ptr.vmem [resolvable:$true] %s28_s25 }
  0x29   :  { %s12600_s29 = scalar_lea.hbm %s13274_s6, 32768 }
  0x2a   :  { %p12601_p2 = scmp.ne.s32.totalorder %s13274_s6, %s12600_s29  ;;  %p12604_p3 = scmp.lt.u32.totalorder %s12600_s29, %s13274_s6 }
  0x2c   :  { %p12606_p4 = pnand %p12604_p3, %p12601_p2 }
  0x2e   :  { %12609 = shalt.err (!%p12606_p4)
}
  0x2f   :  { %s12610_s4 = scalar_lea.vmem %s89_s21, 32768  ;;  %p12615_p6 = scmp.lt.s32.totalorder %s89_s21, %s89_s21 }
  0x30   :  { %p12611_p5 = scmp.ne.s32.totalorder %s89_s21, %s12610_s4  ;;  %p12616_p7 = scmp.lt.s32.totalorder %s12610_s4, %s12610_s4 }
  0x32   :  { %p12617_p8 = por %p12616_p7, %p12615_p6 }
  0x34   :  { %p12618_p9 = pnand %p12617_p8, %p12611_p5 }
  0x36   :  { %12621 = shalt.err (!%p12618_p9)
}
  0x37   :  { %94 = dma.hbm_to_vmem [thread:$0]  %s13274_s6, 32768, %s89_s21, [#allocation12], %s12767_s23, %s12767_s23, %s12768_s24  }
  0x38   :  { %s12622_s2 = scalar_lea.hbm %s13269_s1, 21504 }
  0x39   :  { %p12623_p10 = scmp.ne.s32.totalorder %s13269_s1, %s12622_s2  ;;  %p12626_p11 = scmp.lt.u32.totalorder %s12622_s2, %s13269_s1 }
  0x3b   :  { %p12628_p12 = pnand %p12626_p11, %p12623_p10 }
  0x3d   :  { %12631 = shalt.err (!%p12628_p12)
}
  0x3e   :  { %s12632_s22 = scalar_lea.vmem %s12870_s25, 21504  ;;  %p12637_p0 = scmp.lt.s32.totalorder %s12870_s25, %s12870_s25 }
  0x3f   :  { %p12633_p13 = scmp.ne.s32.totalorder %s12870_s25, %s12632_s22  ;;  %p12638_p1 = scmp.lt.s32.totalorder %s12632_s22, %s12632_s22 }
  0x41   :  { %p12639_p2 = por %p12638_p1, %p12637_p0 }
  0x43   :  { %p12640_p3 = pnand %p12639_p2, %p12633_p13 }
  0x45   :  { %12643 = shalt.err (!%p12640_p3)
}
  0x46   :  { %s12774_s6 = smov 192   ;;  %s12775_s23 = smov 12  }
  0x47   :  { %34 = dma.hbm_to_vmem [thread:$0]  %s13269_s1, 21504, %s12870_s25, [#allocation3], %s12774_s6, %s12774_s6, %s12775_s23  }
  0x48   :  { %s12776_s26 = smov [#allocation7]   ;;  %s12644_s11 = scalar_lea.hbm %s13271_s3, 32768 }
  0x49   :  { %s52_s27 = sshll.u32 %s12776_s26, 4  ;;  %p12645_p4 = scmp.ne.s32.totalorder %s13271_s3, %s12644_s11  ;;  %s53_s27 = int_to_ptr.vmem [resolvable:$true] %s52_s27 }
  0x4a   :  { %p12648_p5 = scmp.lt.u32.totalorder %s12644_s11, %s13271_s3 }
  0x4c   :  { %p12650_p6 = pnand %p12648_p5, %p12645_p4 }
  0x4e   :  { %12653 = shalt.err (!%p12650_p6)
}
  0x4f   :  { %s12654_s15 = scalar_lea.vmem %s53_s27, 32768  ;;  %p12659_p8 = scmp.lt.s32.totalorder %s53_s27, %s53_s27 }
  0x50   :  { %p12655_p7 = scmp.ne.s32.totalorder %s53_s27, %s12654_s15  ;;  %p12660_p9 = scmp.lt.s32.totalorder %s12654_s15, %s12654_s15 }
  0x52   :  { %p12661_p10 = por %p12660_p9, %p12659_p8 }
  0x54   :  { %p12662_p11 = pnand %p12661_p10, %p12655_p7 }
  0x56   :  { %12665 = shalt.err (!%p12662_p11)
}
  0x57   :  { %s12777_s1 = smov 512   ;;  %s12778_s25 = smov 32  }
  0x58   :  { %58 = dma.hbm_to_vmem [thread:$0]  %s13271_s3, 32768, %s53_s27, [#allocation6], %s12777_s1, %s12777_s1, %s12778_s25  }
  0x59   :  { %s12779_s2 = smov [#allocation10]   ;;  %s12780_s18 = smov [#allocation13]  }
  0x5a   :  { %s76_s14 = sshll.u32 %s12779_s2, 4  ;;  %s100_s19 = sshll.u32 %s12780_s18, 4  ;;  %s77_s14 = int_to_ptr.vmem [resolvable:$true] %s76_s14  ;;  %s101_s19 = int_to_ptr.vmem [resolvable:$true] %s100_s19 }
  0x5b   :  { %s12666_s24 = scalar_lea.hbm %s13273_s5, 8192 }
  0x5c   :  { %p12667_p12 = scmp.ne.s32.totalorder %s13273_s5, %s12666_s24  ;;  %p12670_p13 = scmp.lt.u32.totalorder %s12666_s24, %s13273_s5 }
  0x5e   :  { %p12672_p0 = pnand %p12670_p13, %p12667_p12 }
  0x60   :  { %12675 = shalt.err (!%p12672_p0)
}
  0x61   :  { %s12676_s3 = scalar_lea.vmem %s77_s14, 8192  ;;  %p12681_p2 = scmp.lt.s32.totalorder %s77_s14, %s77_s14 }
  0x62   :  { %p12677_p1 = scmp.ne.s32.totalorder %s77_s14, %s12676_s3  ;;  %p12682_p3 = scmp.lt.s32.totalorder %s12676_s3, %s12676_s3 }
  0x64   :  { %p12683_p4 = por %p12682_p3, %p12681_p2 }
  0x66   :  { %p12684_p5 = pnand %p12683_p4, %p12677_p1 }
  0x68   :  { %12687 = shalt.err (!%p12684_p5)
}
  0x69   :  { %82 = dma.hbm_to_vmem [thread:$0]  %s13273_s5, 8192, %s77_s14, [#allocation9], %s12777_s1, %s12777_s1, %s12778_s25  }
  0x6a   :  { %s12688_s4 = scalar_lea.hbm %s13275_s7, 12288 }
  0x6b   :  { %p12689_p6 = scmp.ne.s32.totalorder %s13275_s7, %s12688_s4  ;;  %p12692_p7 = scmp.lt.u32.totalorder %s12688_s4, %s13275_s7 }
  0x6d   :  { %p12694_p8 = pnand %p12692_p7, %p12689_p6 }
  0x6f   :  { %12697 = shalt.err (!%p12694_p8)
}
  0x70   :  { %s12698_s2 = scalar_lea.vmem %s101_s19, 12288  ;;  %p12703_p10 = scmp.lt.s32.totalorder %s101_s19, %s101_s19 }
  0x71   :  { %p12699_p9 = scmp.ne.s32.totalorder %s101_s19, %s12698_s2  ;;  %p12704_p11 = scmp.lt.s32.totalorder %s12698_s2, %s12698_s2 }
  0x73   :  { %p12705_p12 = por %p12704_p11, %p12703_p10 }
  0x75   :  { %p12706_p13 = pnand %p12705_p12, %p12699_p9 }
  0x77   :  { %12709 = shalt.err (!%p12706_p13)
}
  0x78   :  { %106 = dma.hbm_to_vmem [thread:$0]  %s13275_s7, 12288, %s101_s19, [#allocation12], %s12774_s6, %s12774_s6, %s12775_s23  }
  0x79   :  { %s12781_s25 = smov [#allocation14]   ;;  %s12710_s22 = scalar_lea.hbm %s13276_s8, 21504 }
  0x7a   :  { %s112_s14 = sshll.u32 %s12781_s25, 4  ;;  %p12711_p0 = scmp.ne.s32.totalorder %s13276_s8, %s12710_s22  ;;  %s113_s14 = int_to_ptr.vmem [resolvable:$true] %s112_s14 }
  0x7b   :  { %p12714_p1 = scmp.lt.u32.totalorder %s12710_s22, %s13276_s8 }
  0x7d   :  { %p12716_p2 = pnand %p12714_p1, %p12711_p0 }
  0x7f   :  { %12719 = shalt.err (!%p12716_p2)
}
  0x80   :  { %s12720_s30 = scalar_lea.vmem %s113_s14, 21504  ;;  %p12725_p4 = scmp.lt.s32.totalorder %s113_s14, %s113_s14 }
  0x81   :  { %p12721_p3 = scmp.ne.s32.totalorder %s113_s14, %s12720_s30  ;;  %p12726_p5 = scmp.lt.s32.totalorder %s12720_s30, %s12720_s30 }
  0x83   :  { %p12727_p6 = por %p12726_p5, %p12725_p4 }
  0x85   :  { %p12728_p7 = pnand %p12727_p6, %p12721_p3 }
  0x87   :  { %12731 = shalt.err (!%p12728_p7)
}
  0x88   :  { %s12782_s7 = smov 448   ;;  %s12783_s6 = smov 28  }
  0x89   :  { %118 = dma.hbm_to_vmem [thread:$0]  %s13276_s8, 21504, %s113_s14, [#allocation15], %s12782_s7, %s12782_s7, %s12783_s6  }
  0x8a   :  { %12754 = dma.done.wait [#allocation3], 21504  }
  0x8b   :  { %12755 = vsyncadd [#allocation3], 4294945792 }
  0x8c   :  { %12756 = dma.done.wait [#allocation6], 45056  }
  0x8d   :  { %12757 = vsyncadd [#allocation6], 4294922240 }
  0x8e   :  { %12758 = dma.done.wait [#allocation9], 16384  }
  0x8f   :  { %12759 = vsyncadd [#allocation9], 4294950912 }
  0x90   :  { %12760 = dma.done.wait [#allocation12], 45056  }
  0x91   :  { %12761 = vsyncadd [#allocation12], 4294922240 }
  0x92   :  { %12762 = dma.done.wait [#allocation15], 21504  }
  0x93   :  { %12763 = vsyncadd [#allocation15], 4294945792  ;;  %v11345_v0 = vld [vmem:[#allocation2 + $0x4] ss:$12 sps:$4 sm:$0xff]   ;;  %v11347_v1 = vld [vmem:[#allocation2] ss:$12 sps:$4 sm:$0xff]  }
  0x94   :  { %1315 = vmatprep.subr.bf16.mxu0 %v11345_v0  ;;  %v11348_v2 = vld [vmem:[#allocation2 + $0x1c] ss:$12 sps:$4 sm:$0xff]   ;;  %v11350_v3 = vld [vmem:[#allocation2 + $0x18] ss:$12 sps:$4 sm:$0xff]   ;;  %v11351_v4 = vld [vmem:[#allocation2 + $0x34] ss:$12 sps:$4 sm:$0xff]  }
  0x95   :  { %1316 = vmatpush1.bf16.msra.mxu0 %v11347_v1  ;;  %v11353_v5 = vld [vmem:[#allocation2 + $0x30] ss:$12 sps:$4 sm:$0xff]   ;;  %v11354_v6 = vld [vmem:[#allocation2 + $0x4c] ss:$12 sps:$4 sm:$0xff]   ;;  %v11356_v7 = vld [vmem:[#allocation2 + $0x48] ss:$12 sps:$4 sm:$0xff]  }
  0x96   :  { %1317 = vmatprep.subr.bf16.mxu0 %v11348_v2  ;;  %v11357_v8 = vld [vmem:[#allocation2 + $0x64] ss:$12 sps:$4 sm:$0xff]   ;;  %v11359_v9 = vld [vmem:[#allocation2 + $0x60] ss:$12 sps:$4 sm:$0xff]   ;;  %v11360_v10 = vld [vmem:[#allocation2 + $0x7c] ss:$12 sps:$4 sm:$0xff]  }
  0x97   :  { %v11377_v11 = vld [vmem:[#allocation2 + $0xc8] ss:$12 sps:$4 sm:$0xff]   ;;  %v11362_v13 = vld [vmem:[#allocation2 + $0x78] ss:$12 sps:$4 sm:$0xff]   ;;  %v11382_v14 = vld [vmem:[#allocation2 + $0xe0] ss:$12 sps:$4 sm:$0xff]  }
  0x98   :  { %v11379_v12 = vld [vmem:[#allocation2 + $0x8] ss:$12 sps:$4 sm:$0xff]   ;;  %10943 = vmatprep.subr.bf16.mxu1 %v11377_v11  ;;  %v11384_v15 = vld [vmem:[#allocation2 + $0x20] ss:$12 sps:$4 sm:$0xff]   ;;  %v11387_v17 = vld [vmem:[#allocation2 + $0xf8] ss:$12 sps:$4 sm:$0xff]  }
  0x99   :  { %1318 = vmatpush1.bf16.msra.mxu0 %v11350_v3  ;;  %10944 = vmatpush3.bf16.msra.mxu1 %v11379_v12  ;;  %v11363_v16 = vld [vmem:[#allocation2 + $0x94] ss:$12 sps:$4 sm:$0xff]   ;;  %v11365_v18 = vld [vmem:[#allocation2 + $0x90] ss:$12 sps:$4 sm:$0xff]   ;;  %v11389_v19 = vld [vmem:[#allocation2 + $0x38] ss:$12 sps:$4 sm:$0xff]  }
  0x9a   :  { %1319 = vmatprep.subr.bf16.mxu0 %v11351_v4  ;;  %10945 = vmatprep.subr.bf16.mxu1 %v11382_v14  ;;  %v11366_v20 = vld [vmem:[#allocation2 + $0xac] ss:$12 sps:$4 sm:$0xff]   ;;  %v11392_v21 = vld [vmem:[#allocation2 + $0x110] ss:$12 sps:$4 sm:$0xff]   ;;  %v11368_v23 = vld [vmem:[#allocation2 + $0xa8] ss:$12 sps:$4 sm:$0xff]  }
  0x9b   :  { %v11394_v22 = vld [vmem:[#allocation2 + $0x50] ss:$12 sps:$4 sm:$0xff]   ;;  %v11397_v25 = vld [vmem:[#allocation2 + $0x128] ss:$12 sps:$4 sm:$0xff]   ;;  %v11371_v26 = vld [vmem:[#allocation2 + $0xc0] ss:$12 sps:$4 sm:$0xff]  }
  0x9c   :  { %v11369_v24 = vld [vmem:[#allocation2 + $0xc4] ss:$12 sps:$4 sm:$0xff]   ;;  %v11399_v27 = vld [vmem:[#allocation2 + $0x68] ss:$12 sps:$4 sm:$0xff]   ;;  %v11402_v28 = vld [vmem:[#allocation2 + $0x140] ss:$12 sps:$4 sm:$0xff]  }
  0x9d   :  { %1320 = vmatpush1.bf16.msra.mxu0 %v11353_v5  ;;  %10946 = vmatpush3.bf16.msra.mxu1 %v11384_v15  ;;  %v11372_v29 = vld [vmem:[#allocation2 + $0xdc] ss:$12 sps:$4 sm:$0xff]   ;;  %v154_v30 = vld [vmem:[%s13268_s0] sm:$0xff]  ;;  %v11380_v39 = vld [vmem:[#allocation2 + $0x10c] ss:$12 sps:$4 sm:$0xff]   ;;  %vm12785_vm0 = vmmov 0  }
  0x9e   :  { %1321 = vmatprep.subr.bf16.mxu0 %v11354_v6  ;;  %10947 = vmatprep.subr.bf16.mxu1 %v11387_v17  ;;  %v11374_v31 = vld [vmem:[#allocation2 + $0xd8] ss:$12 sps:$4 sm:$0xff]   ;;  %v11404_v32 = vld [vmem:[#allocation2 + $0x80] ss:$12 sps:$4 sm:$0xff]   ;;  %v9769_v33 = vcombine.high %v154_v30, %v154_v30  ;;  %v11378_v36 = vld [vmem:[#allocation2 + $0xf0] ss:$12 sps:$4 sm:$0xff]   ;;  %v9768_v46 = vcombine.low %v154_v30, %v154_v30 }
  0x9f   :  { %v11410_v34 = vld [vmem:[#allocation2 + $0x158] ss:$12 sps:$4 sm:$0xff]   ;;  %v11375_v35 = vld [vmem:[#allocation2 + $0xf4] ss:$12 sps:$4 sm:$0xff]   ;;  %v11415_v38 = vld [vmem:[#allocation2 + $0x170] ss:$12 sps:$4 sm:$0xff]  }
  0xa0   :  { %1347 = vmatprep.mubr.bf16.mxu0 %v9769_v33  ;;  %1511 = vmatprep.mubr.bf16.mxu1 %v9769_v33  ;;  %v11411_v37 = vld [vmem:[#allocation2 + $0x98] ss:$12 sps:$4 sm:$0xff]   ;;  %v11383_v40 = vld [vmem:[#allocation2 + $0x108] ss:$12 sps:$4 sm:$0xff]   ;;  %v11416_v41 = vld [vmem:[#allocation2 + $0xb0] ss:$12 sps:$4 sm:$0xff]  }
  0xa1   :  { %1322 = vmatpush1.bf16.msra.mxu0 %v11356_v7  ;;  %10948 = vmatpush3.bf16.msra.mxu1 %v11389_v19  ;;  %v11420_v42 = vld [vmem:[#allocation2 + $0x248] ss:$12 sps:$4 sm:$0xff]   ;;  %v11385_v43 = vld [vmem:[#allocation2 + $0x124] ss:$12 sps:$4 sm:$0xff]   ;;  %v11388_v44 = vld [vmem:[#allocation2 + $0x120] ss:$12 sps:$4 sm:$0xff]  }
  0xa2   :  { %1323 = vmatprep.subr.bf16.mxu0 %v11357_v8  ;;  %10949 = vmatprep.subr.bf16.mxu1 %v11392_v21  ;;  %v11421_v45 = vld [vmem:[#allocation2 + $0x188] ss:$12 sps:$4 sm:$0xff]   ;;  %v11425_v47 = vld [vmem:[#allocation2 + $0x260] ss:$12 sps:$4 sm:$0xff]   ;;  %v11393_v50 = vld [vmem:[#allocation2 + $0x138] ss:$12 sps:$4 sm:$0xff]  }
  0xa3   :  { %v11390_v48 = vld [vmem:[#allocation2 + $0x13c] ss:$12 sps:$4 sm:$0xff]   ;;  %v11426_v49 = vld [vmem:[#allocation2 + $0x1a0] ss:$12 sps:$4 sm:$0xff]   ;;  %v11430_v51 = vld [vmem:[#allocation2 + $0x278] ss:$12 sps:$4 sm:$0xff]  }
  0xa4   :  { %v11395_v52 = vld [vmem:[#allocation2 + $0x154] ss:$12 sps:$4 sm:$0xff]   ;;  %v11398_v53 = vld [vmem:[#allocation2 + $0x150] ss:$12 sps:$4 sm:$0xff]   ;;  %v11431_v54 = vld [vmem:[#allocation2 + $0x1b8] ss:$12 sps:$4 sm:$0xff]  }
  0xa5   :  { %1324 = vmatpush1.bf16.msra.mxu0 %v11359_v9  ;;  %10950 = vmatpush3.bf16.msra.mxu1 %v11394_v22  ;;  %v11435_v55 = vld [vmem:[#allocation2 + $0x290] ss:$12 sps:$4 sm:$0xff]   ;;  %v11400_v56 = vld [vmem:[#allocation2 + $0x16c] ss:$12 sps:$4 sm:$0xff]   ;;  %v11403_v57 = vld [vmem:[#allocation2 + $0x168] ss:$12 sps:$4 sm:$0xff]  }
  0xa6   :  { %1325 = vmatprep.subr.bf16.mxu0 %v11360_v10  ;;  %10951 = vmatprep.subr.bf16.mxu1 %v11397_v25  ;;  %v11436_v58 = vld [vmem:[#allocation2 + $0x1d0] ss:$12 sps:$4 sm:$0xff]   ;;  %v11440_v59 = vld [vmem:[#allocation2 + $0x2a8] ss:$12 sps:$4 sm:$0xff]   ;;  %v11407_v61 = vld [vmem:[#allocation2 + $0x180] ss:$12 sps:$4 sm:$0xff]  }
  0xa7   :  { %v11409_v60 = vld [vmem:[#allocation2 + $0x184] ss:$12 sps:$4 sm:$0xff]   ;;  %v11441_v62 = vld [vmem:[#allocation2 + $0x1e8] ss:$12 sps:$4 sm:$0xff]   ;;  %v11445_v63 = vld [vmem:[#allocation2 + $0x2c0] ss:$12 sps:$4 sm:$0xff]  }
  0xa8   :  { %v11414_v0 = vld [vmem:[#allocation2 + $0x19c] ss:$12 sps:$4 sm:$0xff]   ;;  %v11412_v1 = vld [vmem:[#allocation2 + $0x198] ss:$12 sps:$4 sm:$0xff]   ;;  %v11446_v2 = vld [vmem:[#allocation2 + $0x200] ss:$12 sps:$4 sm:$0xff]  }
  0xa9   :  { %1326 = vmatpush1.bf16.msra.mxu0 %v11362_v13  ;;  %10952 = vmatpush3.bf16.msra.mxu1 %v11399_v27  ;;  %v11450_v3 = vld [vmem:[#allocation2 + $0x2d8] ss:$12 sps:$4 sm:$0xff]   ;;  %v11419_v4 = vld [vmem:[#allocation2 + $0x1b4] ss:$12 sps:$4 sm:$0xff]   ;;  %v155_v5 = vld [vmem:[%s13268_s0 + $0x8] sm:$0xff]  ;;  %s12787_s4 = smov [#allocation16]  }
  0xaa   :  { %1327 = vmatprep.subr.bf16.mxu0 %v11363_v16  ;;  %10953 = vmatprep.subr.bf16.mxu1 %v11402_v28  ;;  %v9771_v6 = vcombine.high %v155_v5, %v155_v5  ;;  %v11451_v7 = vld [vmem:[#allocation2 + $0x218] ss:$12 sps:$4 sm:$0xff]   ;;  %v11417_v8 = vld [vmem:[#allocation2 + $0x1b0] ss:$12 sps:$4 sm:$0xff]   ;;  %v11422_v11 = vld [vmem:[#allocation2 + $0x1c8] ss:$12 sps:$4 sm:$0xff]   ;;  %v12964_v15 = vcombine.low %v155_v5, %v155_v5 }
  0xab   :  { %v11455_v9 = vld [vmem:[#allocation2 + $0x2f0] ss:$12 sps:$4 sm:$0xff]   ;;  %v11424_v10 = vld [vmem:[#allocation2 + $0x1cc] ss:$12 sps:$4 sm:$0xff]   ;;  %v11462_v13 = vld [vmem:[#allocation2 + $0x3c8] ss:$12 sps:$4 sm:$0xff]  }
  0xac   :  { %v11456_v12 = vld [vmem:[#allocation2 + $0x230] ss:$12 sps:$4 sm:$0xff]   ;;  %v11427_v16 = vld [vmem:[#allocation2 + $0x1e0] ss:$12 sps:$4 sm:$0xff]   ;;  %v11463_v17 = vld [vmem:[#allocation2 + $0x308] ss:$12 sps:$4 sm:$0xff]  }
  0xad   :  { %1328 = vmatpush1.bf16.msra.mxu0 %v11365_v18  ;;  %10954 = vmatpush3.bf16.msra.mxu1 %v11404_v32  ;;  %v11429_v14 = vld [vmem:[#allocation2 + $0x1e4] ss:$12 sps:$4 sm:$0xff]   ;;  %v11467_v18 = vld [vmem:[#allocation2 + $0x3e0] ss:$12 sps:$4 sm:$0xff]   ;;  %v11434_v19 = vld [vmem:[#allocation2 + $0x1fc] ss:$12 sps:$4 sm:$0xff]  }
  0xae   :  { %1329 = vmatprep.subr.bf16.mxu0 %v11366_v20  ;;  %10955 = vmatprep.subr.bf16.mxu1 %v11410_v34  ;;  %v11432_v20 = vld [vmem:[#allocation2 + $0x1f8] ss:$12 sps:$4 sm:$0xff]   ;;  %v11468_v21 = vld [vmem:[#allocation2 + $0x320] ss:$12 sps:$4 sm:$0xff]   ;;  %v11478_v28 = vld [vmem:[#allocation2 + $0x350] ss:$12 sps:$4 sm:$0xff]  }
  0xaf   :  { %v11472_v22 = vld [vmem:[#allocation2 + $0x3f8] ss:$12 sps:$4 sm:$0xff]   ;;  %v11482_v30 = vld [vmem:[#allocation2 + $0x428] ss:$12 sps:$4 sm:$0xff]   ;;  %v11447_v32 = vld [vmem:[#allocation2 + $0x240] ss:$12 sps:$4 sm:$0xff]  }
  0xb0   :  { %v11473_v25 = vld [vmem:[#allocation2 + $0x338] ss:$12 sps:$4 sm:$0xff]   ;;  %v11483_v33 = vld [vmem:[#allocation2 + $0x368] ss:$12 sps:$4 sm:$0xff]   ;;  %v11487_v34 = vld [vmem:[#allocation2 + $0x440] ss:$12 sps:$4 sm:$0xff]  }
  0xb1   :  { %1330 = vmatpush1.bf16.msra.mxu0 %v11368_v23  ;;  %10956 = vmatpush3.bf16.msra.mxu1 %v11411_v37  ;;  %v11439_v23 = vld [vmem:[#allocation2 + $0x214] ss:$12 sps:$4 sm:$0xff]   ;;  %v11444_v27 = vld [vmem:[#allocation2 + $0x22c] ss:$12 sps:$4 sm:$0xff]   ;;  %s9755_s28 = sshll.u32 %s12787_s4, 4  ;;  %s9756_s28 = int_to_ptr.vmem [resolvable:$true] %s9755_s28 }
  0xb2   :  { %1331 = vmatprep.subr.bf16.mxu0 %v11369_v24  ;;  %10957 = vmatprep.subr.bf16.mxu1 %v11415_v38  ;;  %v11437_v24 = vld [vmem:[#allocation2 + $0x210] ss:$12 sps:$4 sm:$0xff]   ;;  %v11452_v38 = vld [vmem:[#allocation2 + $0x258] ss:$12 sps:$4 sm:$0xff]   ;;  %p12737_p9 = scmp.lt.s32.totalorder %s9756_s28, %s9756_s28 }
  0xb3   :  { %v11528_v5 = vld [vmem:[#allocation2 + $0x518] ss:$12 sps:$4 sm:$0xff]  }
  0xb5   :  { %1332 = vmatpush1.bf16.msra.mxu0 %v11371_v26  ;;  %10958 = vmatpush3.bf16.msra.mxu1 %v11416_v41  ;;  %v11477_v26 = vld [vmem:[#allocation2 + $0x410] ss:$12 sps:$4 sm:$0xff]   ;;  %v11459_v41 = vld [vmem:[#allocation2 + $0x274] ss:$12 sps:$4 sm:$0xff]  }
  0xb6   :  { %1333 = vmatprep.subr.bf16.mxu0 %v11372_v29  ;;  %10965 = vmatprep.subr.bf16.mxu1 %v11420_v42  ;;  %v11442_v29 = vld [vmem:[#allocation2 + $0x228] ss:$12 sps:$4 sm:$0xff]   ;;  %v11457_v42 = vld [vmem:[#allocation2 + $0x270] ss:$12 sps:$4 sm:$0xff]  }
  0xb8   :  { %1512 = vmatmul.mubr.bf16.vlgmr.msra.gmra.mrb[0].mxu1 %v9768_v46 }
  0xb9   :  { %1334 = vmatpush1.bf16.msra.mxu0 %v11374_v31  ;;  %10966 = vmatpush3.bf16.msra.mxu1 %v11421_v45  ;;  %v11449_v31 = vld [vmem:[#allocation2 + $0x244] ss:$12 sps:$4 sm:$0xff]   ;;  %v11466_v45 = vld [vmem:[#allocation2 + $0x28c] ss:$12 sps:$4 sm:$0xff]  }
  0xba   :  { %1335 = vmatprep.subr.bf16.mxu0 %v11375_v35  ;;  %10967 = vmatprep.subr.bf16.mxu1 %v11425_v47  ;;  %v156_v35 = vld [vmem:[%s13268_s0 + $0x10] sm:$0xff] }
  0xbb   :  { %1551 = vmatprep.mubr.bf16.mxu1 %v9771_v6  ;;  %v12970_v37 = vcombine.high %v156_v35, %v156_v35  ;;  %v11464_v47 = vld [vmem:[#allocation2 + $0x288] ss:$12 sps:$4 sm:$0xff]  }
  0xbd   :  { %1336 = vmatpush1.bf16.msra.mxu0 %v11378_v36  ;;  %10968 = vmatpush3.bf16.msra.mxu1 %v11426_v49  ;;  %v11454_v36 = vld [vmem:[#allocation2 + $0x25c] ss:$12 sps:$4 sm:$0xff]   ;;  %v12973_v49 = vcombine.low %v156_v35, %v156_v35  ;;  %v11554_v35 = vld [vmem:[#allocation2 + $0x484] ss:$12 sps:$4 sm:$0xff]  }
  0xbe   :  { %1337 = vmatprep.subr.bf16.mxu0 %v11380_v39  ;;  %10969 = vmatprep.subr.bf16.mxu1 %v11430_v51  ;;  %v11488_v39 = vld [vmem:[#allocation2 + $0x380] ss:$12 sps:$4 sm:$0xff]  }
  0xbf   :  { %v11469_v51 = vld [vmem:[#allocation2 + $0x2a0] ss:$12 sps:$4 sm:$0xff]  }
  0xc1   :  { %1338 = vmatpush1.bf16.msra.mxu0 %v11383_v40  ;;  %10970 = vmatpush3.bf16.msra.mxu1 %v11431_v54  ;;  %v11492_v40 = vld [vmem:[#allocation2 + $0x458] ss:$12 sps:$4 sm:$0xff]   ;;  %v11508_v54 = vld [vmem:[#allocation2 + $0x4a0] ss:$12 sps:$4 sm:$0xff]  }
  0xc2   :  { %1339 = vmatprep.subr.bf16.mxu0 %v11385_v43  ;;  %10971 = vmatprep.subr.bf16.mxu1 %v11435_v55  ;;  %v11493_v43 = vld [vmem:[#allocation2 + $0x398] ss:$12 sps:$4 sm:$0xff]  }
  0xc3   :  { %v11474_v55 = vld [vmem:[#allocation2 + $0x2b8] ss:$12 sps:$4 sm:$0xff]  }
  0xc5   :  { %1340 = vmatpush1.bf16.msra.mxu0 %v11388_v44  ;;  %10972 = vmatpush3.bf16.msra.mxu1 %v11436_v58  ;;  %v11497_v44 = vld [vmem:[#allocation2 + $0x470] ss:$12 sps:$4 sm:$0xff]  }
  0xc6   :  { %1341 = vmatprep.subr.bf16.mxu0 %v11390_v48  ;;  %10973 = vmatprep.subr.bf16.mxu1 %v11440_v59  ;;  %v11471_v48 = vld [vmem:[#allocation2 + $0x2a4] ss:$12 sps:$4 sm:$0xff]   ;;  %v11486_v59 = vld [vmem:[#allocation2 + $0x2ec] ss:$12 sps:$4 sm:$0xff]  }
  0xc7   :  { %v11479_v58 = vld [vmem:[#allocation2 + $0x2d0] ss:$12 sps:$4 sm:$0xff]  }
  0xc9   :  { %1342 = vmatpush1.bf16.msra.mxu0 %v11393_v50  ;;  %10974 = vmatpush3.bf16.msra.mxu1 %v11441_v62  ;;  %v11504_v50 = vld [vmem:[#allocation2 + $0x488] ss:$12 sps:$4 sm:$0xff]   ;;  %v11491_v62 = vld [vmem:[#allocation2 + $0x304] ss:$12 sps:$4 sm:$0xff]  }
  0xca   :  { %1343 = vmatprep.subr.bf16.mxu0 %v11395_v52  ;;  %10975 = vmatprep.subr.bf16.mxu1 %v11445_v63  ;;  %v12784_v52 = vmov 0.0   ;;  %v11520_v63 = vld [vmem:[#allocation2 + $0x4e8] ss:$12 sps:$4 sm:$0xff]  }
  0xcd   :  { %1344 = vmatpush1.bf16.msra.mxu0 %v11398_v53  ;;  %10976 = vmatpush3.bf16.msra.mxu1 %v11446_v2  ;;  %v11476_v53 = vld [vmem:[#allocation2 + $0x2bc] ss:$12 sps:$4 sm:$0xff]   ;;  %v11524_v2 = vld [vmem:[#allocation2 + $0x500] ss:$12 sps:$4 sm:$0xff]  }
  0xce   :  { %1345 = vmatprep.subr.bf16.mxu0 %v11400_v56  ;;  %10977 = vmatprep.subr.bf16.mxu1 %v11450_v3  ;;  %v11481_v56 = vld [vmem:[#allocation2 + $0x2d4] ss:$12 sps:$4 sm:$0xff]   ;;  %v11494_v3 = vld [vmem:[#allocation2 + $0x318] ss:$12 sps:$4 sm:$0xff]  }
  0xd1   :  { %1346 = vmatpush1.bf16.msra.mxu0 %v11403_v57  ;;  %10978 = vmatpush3.bf16.msra.mxu1 %v11451_v7  ;;  %v11512_v57 = vld [vmem:[#allocation2 + $0x4b8] ss:$12 sps:$4 sm:$0xff]  }
  0xd2   :  { %1356 = vmatprep.subr.bf16.mxu0 %v11409_v60  ;;  %10979 = vmatprep.subr.bf16.mxu1 %v11455_v9  ;;  %v11516_v60 = vld [vmem:[#allocation2 + $0x4d0] ss:$12 sps:$4 sm:$0xff]   ;;  %v11507_v7 = vld [vmem:[#allocation2 + $0x34c] ss:$12 sps:$4 sm:$0xff]   ;;  %v11505_v9 = vld [vmem:[#allocation2 + $0x348] ss:$12 sps:$4 sm:$0xff]  }
  0xd4   :  { %1348 = vmatmul.mubr.bf16.vlgmr.msra.gmra.mrb[0].mxu0 %v9768_v46  ;;  %v11498_v46 = vld [vmem:[#allocation2 + $0x3b0] ss:$12 sps:$4 sm:$0xff]  }
  0xd5   :  { %1357 = vmatpush1.bf16.msra.mxu0 %v11407_v61  ;;  %1388 = vmatprep.mubr.bf16.mxu0 %v9771_v6  ;;  %v11484_v61 = vld [vmem:[#allocation2 + $0x2e8] ss:$12 sps:$4 sm:$0xff]   ;;  %v11499_v6 = vld [vmem:[#allocation2 + $0x330] ss:$12 sps:$4 sm:$0xff]  }
  0xd6   :  { %1358 = vmatprep.subr.bf16.mxu0 %v11414_v0  ;;  %10980 = vmatpush3.bf16.msra.mxu1 %v11456_v12  ;;  %v11489_v0 = vld [vmem:[#allocation2 + $0x300] ss:$12 sps:$4 sm:$0xff]  }
  0xd7   :  { %10987 = vmatprep.subr.bf16.mxu1 %v11462_v13  ;;  %v11509_v12 = vld [vmem:[#allocation2 + $0x360] ss:$12 sps:$4 sm:$0xff]   ;;  %v11515_v13 = vld [vmem:[#allocation2 + $0x37c] ss:$12 sps:$4 sm:$0xff]  }
  0xd9   :  { %1359 = vmatpush1.bf16.msra.mxu0 %v11412_v1  ;;  %1552 = vmatmul.mubr.bf16.vlgmr.msra.gmra.mrb[4].mxu1 %v12964_v15  ;;  %v11496_v1 = vld [vmem:[#allocation2 + $0x31c] ss:$12 sps:$4 sm:$0xff]  }
  0xda   :  { %1360 = vmatprep.subr.bf16.mxu0 %v11419_v4  ;;  %10988 = vmatpush3.bf16.msra.mxu1 %v11463_v17  ;;  %v11501_v4 = vld [vmem:[#allocation2 + $0x334] ss:$12 sps:$4 sm:$0xff]   ;;  %v11523_v17 = vld [vmem:[#allocation2 + $0x3ac] ss:$12 sps:$4 sm:$0xff]  }
  0xdb   :  { %10989 = vmatprep.subr.bf16.mxu1 %v11467_v18  ;;  %1591 = vmatprep.mubr.bf16.mxu1 %v12970_v37  ;;  %v11521_v18 = vld [vmem:[#allocation2 + $0x3a8] ss:$12 sps:$4 sm:$0xff]  }
  0xdd   :  { %1361 = vmatpush1.bf16.msra.mxu0 %v11417_v8  ;;  %v11532_v8 = vld [vmem:[#allocation2 + $0x530] ss:$12 sps:$4 sm:$0xff]  }
  0xde   :  { %1362 = vmatprep.subr.bf16.mxu0 %v11424_v10  ;;  %10990 = vmatpush3.bf16.msra.mxu1 %v11468_v21  ;;  %v11511_v10 = vld [vmem:[#allocation2 + $0x364] ss:$12 sps:$4 sm:$0xff]   ;;  %v11531_v21 = vld [vmem:[#allocation2 + $0x3dc] ss:$12 sps:$4 sm:$0xff]  }
  0xdf   :  { %10991 = vmatprep.subr.bf16.mxu1 %v11472_v22  ;;  %v11529_v22 = vld [vmem:[#allocation2 + $0x3d8] ss:$12 sps:$4 sm:$0xff]  }
  0xe1   :  { %1363 = vmatpush1.bf16.msra.mxu0 %v11422_v11  ;;  %v12991_v11 = vld [vmem:[%s13268_s0 + $0x18] ss:$0 sps:$4 sm:$0xff]   ;;  %s12732_s0 = scalar_lea.vmem %s9756_s28, 896 }
  0xe2   :  { %1364 = vmatprep.subr.bf16.mxu0 %v11429_v14  ;;  %10992 = vmatpush3.bf16.msra.mxu1 %v11473_v25  ;;  %v11513_v14 = vld [vmem:[#allocation2 + $0x378] ss:$12 sps:$4 sm:$0xff]   ;;  %p12733_p8 = scmp.ne.s32.totalorder %s9756_s28, %s12732_s0  ;;  %p12738_p10 = scmp.lt.s32.totalorder %s12732_s0, %s12732_s0 }
  0xe3   :  { %10993 = vmatprep.subr.bf16.mxu1 %v11477_v26  ;;  %v11539_v25 = vld [vmem:[#allocation2 + $0x40c] ss:$12 sps:$4 sm:$0xff]   ;;  %v11537_v26 = vld [vmem:[#allocation2 + $0x408] ss:$12 sps:$4 sm:$0xff]  }
  0xe4   :  { %p12739_p11 = por %p12738_p10, %p12737_p9 }
  0xe5   :  { %1365 = vmatpush1.bf16.msra.mxu0 %v11427_v16  ;;  %v11517_v16 = vld [vmem:[#allocation2 + $0x390] ss:$12 sps:$4 sm:$0xff]  }
  0xe6   :  { %1366 = vmatprep.subr.bf16.mxu0 %v11434_v19  ;;  %10994 = vmatpush3.bf16.msra.mxu1 %v11478_v28  ;;  %v11527_v19 = vld [vmem:[#allocation2 + $0x3c4] ss:$12 sps:$4 sm:$0xff]   ;;  %v11540_v28 = vld [vmem:[#allocation2 + $0x420] ss:$12 sps:$4 sm:$0xff]   ;;  %p12740_p12 = pnand %p12739_p11, %p12733_p8 }
  0xe7   :  { %10995 = vmatprep.subr.bf16.mxu1 %v11482_v30  ;;  %v11543_v30 = vld [vmem:[#allocation2 + $0x438] ss:$12 sps:$4 sm:$0xff]  }
  0xe9   :  { %1367 = vmatpush1.bf16.msra.mxu0 %v11432_v20  ;;  %v11525_v20 = vld [vmem:[#allocation2 + $0x3c0] ss:$12 sps:$4 sm:$0xff]  }
  0xea   :  { %1368 = vmatprep.subr.bf16.mxu0 %v11439_v23  ;;  %10996 = vmatpush3.bf16.msra.mxu1 %v11483_v33  ;;  %v11535_v23 = vld [vmem:[#allocation2 + $0x3f4] ss:$12 sps:$4 sm:$0xff]   ;;  %v11551_v33 = vld [vmem:[#allocation2 + $0x46c] ss:$12 sps:$4 sm:$0xff]  }
  0xeb   :  { %10997 = vmatprep.subr.bf16.mxu1 %v11487_v34  ;;  %v11549_v34 = vld [vmem:[#allocation2 + $0x468] ss:$12 sps:$4 sm:$0xff]  }
  0xed   :  { %1369 = vmatpush1.bf16.msra.mxu0 %v11437_v24  ;;  %v11533_v24 = vld [vmem:[#allocation2 + $0x3f0] ss:$12 sps:$4 sm:$0xff]  }
  0xee   :  { %1370 = vmatprep.subr.bf16.mxu0 %v11444_v27  ;;  %10998 = vmatpush3.bf16.msra.mxu1 %v11488_v39  ;;  %v11542_v27 = vld [vmem:[#allocation2 + $0x424] ss:$12 sps:$4 sm:$0xff]   ;;  %v11560_v39 = vld [vmem:[#allocation2 + $0x4b4] ss:$12 sps:$4 sm:$0xff]  }
  0xef   :  { %10999 = vmatprep.subr.bf16.mxu1 %v11492_v40  ;;  %v12786_v40 = vmov 0  }
  0xf1   :  { %1371 = vmatpush1.bf16.msra.mxu0 %v11442_v29  ;;  %v11545_v29 = vld [vmem:[#allocation2 + $0x43c] ss:$12 sps:$4 sm:$0xff]  }
  0xf2   :  { %1372 = vmatprep.subr.bf16.mxu0 %v11449_v31  ;;  %11000 = vmatpush3.bf16.msra.mxu1 %v11493_v43  ;;  %v11548_v31 = vld [vmem:[#allocation2 + $0x454] ss:$12 sps:$4 sm:$0xff]  }
  0xf3   :  { %11001 = vmatprep.subr.bf16.mxu1 %v11497_v44  ;;  %v11561_v43 = vld [vmem:[#allocation2 + $0x4c8] ss:$12 sps:$4 sm:$0xff]   ;;  %v11566_v44 = vld [vmem:[#allocation2 + $0x4e4] ss:$12 sps:$4 sm:$0xff]  }
  0xf5   :  { %1373 = vmatpush1.bf16.msra.mxu0 %v11447_v32  ;;  %v11546_v32 = vld [vmem:[#allocation2 + $0x450] ss:$12 sps:$4 sm:$0xff]  }
  0xf6   :  { %1374 = vmatprep.subr.bf16.mxu0 %v11454_v36  ;;  %11002 = vmatpush3.bf16.msra.mxu1 %v11498_v46  ;;  %v11552_v36 = vld [vmem:[#allocation2 + $0x480] ss:$12 sps:$4 sm:$0xff]   ;;  %v11569_v46 = vld [vmem:[#allocation2 + $0x4fc] ss:$12 sps:$4 sm:$0xff]  }
  0xf7   :  { %11181 = vmatprep.subr.bf16.mxu1 %v12784_v52 }
  0xf9   :  { %1375 = vmatpush1.bf16.msra.mxu0 %v11452_v38  ;;  %1592 = vmatmul.mubr.bf16.vlgmr.msra.gmra.mrb[8].mxu1 %v12973_v49  ;;  %v11555_v38 = vld [vmem:[#allocation2 + $0x498] ss:$12 sps:$4 sm:$0xff]  }
  0xfa   :  { %1376 = vmatprep.subr.bf16.mxu0 %v11459_v41  ;;  %11182 = vmatpush3.bf16.msra.mxu1 %v11504_v50  ;;  %v11558_v41 = vld [vmem:[#allocation2 + $0x4b0] ss:$12 sps:$4 sm:$0xff]   ;;  %v11575_v50 = vld [vmem:[#allocation2 + $0x52c] ss:$12 sps:$4 sm:$0xff]  }
  0xfb   :  { %11197 = vmatprep.mubr.msk.bf16.mxu1 %vm12785_vm0, %v12784_v52  ;;  %11183 = vmatprep.subr.bf16.mxu1 %v12784_v52 }
  0xfd   :  { %1377 = vmatpush1.bf16.msra.mxu0 %v11457_v42  ;;  %v11563_v42 = vld [vmem:[#allocation2 + $0x4cc] ss:$12 sps:$4 sm:$0xff]  }
  0xfe   :  { %1378 = vmatprep.subr.bf16.mxu0 %v11466_v45  ;;  %11184 = vmatpush3.bf16.msra.mxu1 %v11508_v54  ;;  %v11564_v45 = vld [vmem:[#allocation2 + $0x4e0] ss:$12 sps:$4 sm:$0xff]   ;;  %v11578_v54 = vld [vmem:[#allocation5 + $0x4] ss:$16 sps:$4 sm:$0xff]  }
  0xff   :  { %11185 = vmatprep.subr.bf16.mxu1 %v12784_v52 }
 0x101   :  { %1379 = vmatpush1.bf16.msra.mxu0 %v11464_v47  ;;  %v11567_v47 = vld [vmem:[#allocation2 + $0x4f8] ss:$12 sps:$4 sm:$0xff]  }
 0x102   :  { %1380 = vmatprep.subr.bf16.mxu0 %v11471_v48  ;;  %11186 = vmatpush3.bf16.msra.mxu1 %v11512_v57  ;;  %v11572_v48 = vld [vmem:[#allocation2 + $0x514] ss:$12 sps:$4 sm:$0xff]  }
 0x103   :  { %11187 = vmatprep.subr.bf16.mxu1 %v12784_v52  ;;  %v11584_v57 = vld [vmem:[#allocation5 + $0x24] ss:$16 sps:$4 sm:$0xff]  }
 0x105   :  { %1381 = vmatpush1.bf16.msra.mxu0 %v11469_v51  ;;  %v11573_v51 = vld [vmem:[#allocation2 + $0x528] ss:$12 sps:$4 sm:$0xff]  }
 0x106   :  { %1382 = vmatprep.subr.bf16.mxu0 %v11476_v53  ;;  %11188 = vmatpush3.bf16.msra.mxu1 %v11516_v60  ;;  %v11576_v53 = vld [vmem:[#allocation5] ss:$16 sps:$4 sm:$0xff]   ;;  %v11585_v60 = vld [vmem:[#allocation5 + $0x28] ss:$16 sps:$4 sm:$0xff]  }
 0x107   :  { %11189 = vmatprep.subr.bf16.mxu1 %v12784_v52 }
 0x109   :  { %1383 = vmatpush1.bf16.msra.mxu0 %v11474_v55  ;;  %v11579_v55 = vld [vmem:[#allocation5 + $0x8] ss:$16 sps:$4 sm:$0xff]  }
 0x10a   :  { %1384 = vmatprep.subr.bf16.mxu0 %v11481_v56  ;;  %11190 = vmatpush3.bf16.msra.mxu1 %v11520_v63  ;;  %v11581_v56 = vld [vmem:[#allocation5 + $0xc] ss:$16 sps:$4 sm:$0xff]   ;;  %v11588_v63 = vld [vmem:[#allocation5 + $0x40] ss:$16 sps:$4 sm:$0xff]  }
 0x10b   :  { %11191 = vmatprep.subr.bf16.mxu1 %v12784_v52 }
 0x10d   :  { %1385 = vmatpush1.bf16.msra.mxu0 %v11479_v58  ;;  %v11587_v58 = vld [vmem:[#allocation5 + $0x2c] ss:$16 sps:$4 sm:$0xff]  }
 0x10e   :  { %1386 = vmatprep.subr.bf16.mxu0 %v11486_v59  ;;  %11192 = vmatpush3.bf16.msra.mxu1 %v11524_v2  ;;  %v11582_v59 = vld [vmem:[#allocation5 + $0x20] ss:$16 sps:$4 sm:$0xff]   ;;  %v11599_v2 = vld [vmem:[#allocation5 + $0x6c] ss:$16 sps:$4 sm:$0xff]  }
 0x10f   :  { %11193 = vmatprep.subr.bf16.mxu1 %v12784_v52 }
 0x111   :  { %1387 = vmatpush1.bf16.msra.mxu0 %v11484_v61  ;;  %v11590_v61 = vld [vmem:[#allocation5 + $0x44] ss:$16 sps:$4 sm:$0xff]  }
 0x112   :  { %1397 = vmatprep.subr.bf16.mxu0 %v11491_v62  ;;  %11194 = vmatpush3.bf16.msra.mxu1 %v11528_v5  ;;  %v11593_v62 = vld [vmem:[#allocation5 + $0x4c] ss:$16 sps:$4 sm:$0xff]   ;;  %v11602_v5 = vld [vmem:[#allocation5 + $0x84] ss:$16 sps:$4 sm:$0xff]  }
 0x113   :  { %11195 = vmatprep.subr.bf16.mxu1 %v12784_v52 }
 0x114   :  { %1389 = vmatmul.mubr.bf16.vlgmr.msra.gmra.mrb[0].mxu0 %v12964_v15  ;;  %v11519_v15 = vld [vmem:[#allocation2 + $0x394] ss:$12 sps:$4 sm:$0xff]  }
 0x115   :  { %1398 = vmatpush1.bf16.msra.mxu0 %v11489_v0  ;;  %1429 = vmatprep.mubr.bf16.mxu0 %v12970_v37  ;;  %v11557_v37 = vld [vmem:[#allocation2 + $0x49c] ss:$12 sps:$4 sm:$0xff]  }
 0x116   :  { %1399 = vmatprep.subr.bf16.mxu0 %v11496_v1  ;;  %11196 = vmatpush3.bf16.msra.mxu1 %v11532_v8  ;;  %v11591_v0 = vld [vmem:[#allocation5 + $0x48] ss:$16 sps:$4 sm:$0xff]   ;;  %v11596_v1 = vld [vmem:[#allocation5 + $0x64] ss:$16 sps:$4 sm:$0xff]  }
 0x117   :  { %2240 = vmatprep.subr.bf16.mxu1 %v11578_v54  ;;  %v11603_v8 = vld [vmem:[#allocation5 + $0x88] ss:$16 sps:$4 sm:$0xff]   ;;  %v11654_v54 = vld [vmem:[#allocation5 + $0x1a0] ss:$16 sps:$4 sm:$0xff]  }
 0x119   :  { %1400 = vmatpush1.bf16.msra.mxu0 %v11494_v3  ;;  %11198 = vmatmul.mubr.bf16.vlgmr.msra.gmra.mrb[12].mxu1 %v12991_v11  ;;  %v11594_v3 = vld [vmem:[#allocation5 + $0x60] ss:$16 sps:$4 sm:$0xff]  }
 0x11a   :  { %1401 = vmatprep.subr.bf16.mxu0 %v11501_v4  ;;  %2241 = vmatpush1.bf16.msra.mxu1 %v11576_v53  ;;  %v11597_v4 = vld [vmem:[#allocation5 + $0x68] ss:$16 sps:$4 sm:$0xff]  }
 0x11b   :  { %2242 = vmatprep.subr.bf16.mxu1 %v11584_v57 }
 0x11d   :  { %1402 = vmatpush1.bf16.msra.mxu0 %v11499_v6  ;;  %v11605_v6 = vld [vmem:[#allocation5 + $0x8c] ss:$16 sps:$4 sm:$0xff]  }
 0x11e   :  { %1403 = vmatprep.subr.bf16.mxu0 %v11507_v7  ;;  %2243 = vmatpush1.bf16.msra.mxu1 %v11582_v59  ;;  %v11600_v7 = vld [vmem:[#allocation5 + $0x80] ss:$16 sps:$4 sm:$0xff]  }
 0x11f   :  { %2244 = vmatprep.subr.bf16.mxu1 %v11590_v61 }
 0x121   :  { %1404 = vmatpush1.bf16.msra.mxu0 %v11505_v9  ;;  %v11608_v9 = vld [vmem:[#allocation5 + $0xa4] ss:$16 sps:$4 sm:$0xff]  }
 0x122   :  { %1405 = vmatprep.subr.bf16.mxu0 %v11511_v10  ;;  %2245 = vmatpush1.bf16.msra.mxu1 %v11588_v63  ;;  %v11611_v10 = vld [vmem:[#allocation5 + $0xac] ss:$16 sps:$4 sm:$0xff]  }
 0x123   :  { %2246 = vmatprep.subr.bf16.mxu1 %v11596_v1  ;;  %v11665_v1 = vld [vmem:[#allocation5 + $0x1cc] ss:$16 sps:$4 sm:$0xff]  }
 0x125   :  { %1406 = vmatpush1.bf16.msra.mxu0 %v11509_v12  ;;  %v11609_v12 = vld [vmem:[#allocation5 + $0xa8] ss:$16 sps:$4 sm:$0xff]  }
 0x126   :  { %1407 = vmatprep.subr.bf16.mxu0 %v11515_v13  ;;  %2247 = vmatpush1.bf16.msra.mxu1 %v11594_v3  ;;  %v11614_v13 = vld [vmem:[#allocation5 + $0xc4] ss:$16 sps:$4 sm:$0xff]   ;;  %v11663_v3 = vld [vmem:[#allocation5 + $0x1c8] ss:$16 sps:$4 sm:$0xff]  }
 0x127   :  { %2248 = vmatprep.subr.bf16.mxu1 %v11602_v5  ;;  %v11671_v5 = vld [vmem:[#allocation5 + $0x1ec] ss:$16 sps:$4 sm:$0xff]  }
 0x129   :  { %1408 = vmatpush1.bf16.msra.mxu0 %v11513_v14  ;;  %v11617_v14 = vld [vmem:[#allocation5 + $0xcc] ss:$16 sps:$4 sm:$0xff]  }
 0x12a   :  { %1409 = vmatprep.subr.bf16.mxu0 %v11519_v15  ;;  %2249 = vmatpush1.bf16.msra.mxu1 %v11600_v7  ;;  %v11612_v15 = vld [vmem:[#allocation5 + $0xc0] ss:$16 sps:$4 sm:$0xff]   ;;  %v11669_v7 = vld [vmem:[#allocation5 + $0x1e8] ss:$16 sps:$4 sm:$0xff]  }
 0x12b   :  { %2250 = vmatprep.subr.bf16.mxu1 %v11608_v9  ;;  %v11677_v9 = vld [vmem:[#allocation5 + $0x20c] ss:$16 sps:$4 sm:$0xff]  }
 0x12d   :  { %1410 = vmatpush1.bf16.msra.mxu0 %v11517_v16  ;;  %v11615_v16 = vld [vmem:[#allocation5 + $0xc8] ss:$16 sps:$4 sm:$0xff]  }
 0x12e   :  { %1411 = vmatprep.subr.bf16.mxu0 %v11523_v17  ;;  %v11620_v17 = vld [vmem:[#allocation5 + $0xe4] ss:$16 sps:$4 sm:$0xff]  }
 0x131   :  { %1412 = vmatpush1.bf16.msra.mxu0 %v11521_v18  ;;  %v11623_v18 = vld [vmem:[#allocation5 + $0xec] ss:$16 sps:$4 sm:$0xff]  }
 0x132   :  { %1413 = vmatprep.subr.bf16.mxu0 %v11527_v19 }
 0x135   :  { %1414 = vmatpush1.bf16.msra.mxu0 %v11525_v20  ;;  %v11618_v20 = vld [vmem:[#allocation5 + $0xe0] ss:$16 sps:$4 sm:$0xff]  }
 0x136   :  { %1415 = vmatprep.subr.bf16.mxu0 %v11531_v21 }
 0x139   :  { %1416 = vmatpush1.bf16.msra.mxu0 %v11529_v22  ;;  %v11621_v22 = vld [vmem:[#allocation5 + $0xe8] ss:$16 sps:$4 sm:$0xff]  }
 0x13a   :  { %1417 = vmatprep.subr.bf16.mxu0 %v11535_v23  ;;  %v11626_v23 = vld [vmem:[#allocation5 + $0x104] ss:$16 sps:$4 sm:$0xff]  }
 0x13d   :  { %1418 = vmatpush1.bf16.msra.mxu0 %v11533_v24 }
 0x13e   :  { %1419 = vmatprep.subr.bf16.mxu0 %v11539_v25 }
 0x141   :  { %1420 = vmatpush1.bf16.msra.mxu0 %v11537_v26  ;;  %v11629_v26 = vld [vmem:[#allocation5 + $0x10c] ss:$16 sps:$4 sm:$0xff]  }
 0x142   :  { %1421 = vmatprep.subr.bf16.mxu0 %v11542_v27 }
 0x145   :  { %1422 = vmatpush1.bf16.msra.mxu0 %v11540_v28  ;;  %v11624_v28 = vld [vmem:[#allocation5 + $0x100] ss:$16 sps:$4 sm:$0xff]  }
 0x146   :  { %1423 = vmatprep.subr.bf16.mxu0 %v11545_v29  ;;  %v11627_v29 = vld [vmem:[#allocation5 + $0x108] ss:$16 sps:$4 sm:$0xff]  }
 0x149   :  { %1424 = vmatpush1.bf16.msra.mxu0 %v11543_v30  ;;  %v11632_v30 = vld [vmem:[#allocation5 + $0x124] ss:$16 sps:$4 sm:$0xff]  }
 0x14a   :  { %1425 = vmatprep.subr.bf16.mxu0 %v11548_v31  ;;  %v11635_v31 = vld [vmem:[#allocation5 + $0x12c] ss:$16 sps:$4 sm:$0xff]  }
 0x14d   :  { %1426 = vmatpush1.bf16.msra.mxu0 %v11546_v32  ;;  %v11630_v32 = vld [vmem:[#allocation5 + $0x120] ss:$16 sps:$4 sm:$0xff]  }
 0x14e   :  { %1427 = vmatprep.subr.bf16.mxu0 %v11551_v33  ;;  %v11633_v33 = vld [vmem:[#allocation5 + $0x128] ss:$16 sps:$4 sm:$0xff]  }
 0x151   :  { %1428 = vmatpush1.bf16.msra.mxu0 %v11549_v34  ;;  %v11638_v34 = vld [vmem:[#allocation5 + $0x144] ss:$16 sps:$4 sm:$0xff]  }
 0x152   :  { %1438 = vmatprep.subr.bf16.mxu0 %v11554_v35  ;;  %v11641_v35 = vld [vmem:[#allocation5 + $0x14c] ss:$16 sps:$4 sm:$0xff]  }
 0x154   :  { %1430 = vmatmul.mubr.bf16.vlgmr.msra.gmra.mrb[0].mxu0 %v12973_v49  ;;  %v11570_v49 = vld [vmem:[#allocation2 + $0x510] ss:$12 sps:$4 sm:$0xff]  }
 0x155   :  { %1439 = vmatpush1.bf16.msra.mxu0 %v11552_v36  ;;  %1470 = vmatprep.mubr.bf16.mxu0 %v12786_v40  ;;  %v11636_v36 = vld [vmem:[#allocation5 + $0x140] ss:$16 sps:$4 sm:$0xff]  }
 0x156   :  { %1440 = vmatprep.subr.bf16.mxu0 %v11557_v37  ;;  %v11639_v37 = vld [vmem:[#allocation5 + $0x148] ss:$16 sps:$4 sm:$0xff]  }
 0x159   :  { %1441 = vmatpush1.bf16.msra.mxu0 %v11555_v38  ;;  %v11644_v38 = vld [vmem:[#allocation5 + $0x164] ss:$16 sps:$4 sm:$0xff]  }
 0x15a   :  { %1442 = vmatprep.subr.bf16.mxu0 %v11560_v39  ;;  %v11647_v39 = vld [vmem:[#allocation5 + $0x16c] ss:$16 sps:$4 sm:$0xff]  }
 0x15d   :  { %1443 = vmatpush1.bf16.msra.mxu0 %v11558_v41  ;;  %v382_v41 = vlaneseq }
 0x15e   :  { %1444 = vmatprep.subr.bf16.mxu0 %v11563_v42  ;;  %v11642_v42 = vld [vmem:[#allocation5 + $0x160] ss:$16 sps:$4 sm:$0xff]  }
 0x161   :  { %1445 = vmatpush1.bf16.msra.mxu0 %v11561_v43  ;;  %v11645_v43 = vld [vmem:[#allocation5 + $0x168] ss:$16 sps:$4 sm:$0xff]  }
 0x162   :  { %1446 = vmatprep.subr.bf16.mxu0 %v11566_v44  ;;  %v11650_v44 = vld [vmem:[#allocation5 + $0x184] ss:$16 sps:$4 sm:$0xff]  }
 0x165   :  { %1447 = vmatpush1.bf16.msra.mxu0 %v11564_v45  ;;  %v11653_v45 = vld [vmem:[#allocation5 + $0x18c] ss:$16 sps:$4 sm:$0xff]  }
 0x166   :  { %1448 = vmatprep.subr.bf16.mxu0 %v11569_v46  ;;  %v12997_v46 = vshrl.u32 %v382_v41, 7 }
 0x168   :  { %v384_v53 = vsub.s32 0, %v12997_v46 }
 0x169   :  { %1449 = vmatpush1.bf16.msra.mxu0 %v11567_v47  ;;  %v11648_v47 = vld [vmem:[#allocation5 + $0x180] ss:$16 sps:$4 sm:$0xff]  }
 0x16a   :  { %1450 = vmatprep.subr.bf16.mxu0 %v11572_v48  ;;  %v11651_v48 = vld [vmem:[#allocation5 + $0x188] ss:$16 sps:$4 sm:$0xff]  }
 0x16d   :  { %1451 = vmatpush1.bf16.msra.mxu0 %v11570_v49  ;;  %v11656_v49 = vld [vmem:[#allocation5 + $0x1a4] ss:$16 sps:$4 sm:$0xff]  }
 0x16e   :  { %1452 = vmatprep.subr.bf16.mxu0 %v11575_v50  ;;  %v11659_v50 = vld [vmem:[#allocation5 + $0x1ac] ss:$16 sps:$4 sm:$0xff]  }
 0x171   :  { %1453 = vmatpush1.bf16.msra.mxu0 %v11573_v51  ;;  %v148_v51 = vld [vmem:[%s13277_s9 + $0x10] sm:$0xff] }
 0x172   :  { %2322 = vmatprep.subr.bf16.mxu0 %v11581_v56  ;;  %v393_v56 = vrot.slane %v148_v51, %v384_v53  ;;  %v11690_v51 = vld [vmem:[#allocation5 + $0x260] ss:$16 sps:$4 sm:$0xff]  }
 0x174   :  { %1471 = vmatmul.mubr.bf16.vlgmr.msra.gmra.mrb[0].mxu0 %v12991_v11  ;;  %v11606_v11 = vld [vmem:[#allocation5 + $0xa0] ss:$16 sps:$4 sm:$0xff]  }
 0x175   :  { %2323 = vmatpush1.bf16.msra.mxu0 %v11579_v55  ;;  %2251 = vmatpush1.bf16.msra.mxu1 %v11606_v11  ;;  %v11657_v55 = vld [vmem:[#allocation5 + $0x1a8] ss:$16 sps:$4 sm:$0xff]  }
 0x176   :  { %2324 = vmatprep.subr.bf16.mxu0 %v11587_v58  ;;  %2252 = vmatprep.subr.bf16.mxu1 %v11614_v13 }
 0x179   :  { %2325 = vmatpush1.bf16.msra.mxu0 %v11585_v60  ;;  %2253 = vmatpush1.bf16.msra.mxu1 %v11612_v15 }
 0x17a   :  { %2326 = vmatprep.subr.bf16.mxu0 %v11593_v62  ;;  %2254 = vmatprep.subr.bf16.mxu1 %v11620_v17 }
 0x17d   :  { %2327 = vmatpush1.bf16.msra.mxu0 %v11591_v0  ;;  %2255 = vmatpush1.bf16.msra.mxu1 %v11618_v20  ;;  %v11662_v0 = vld [vmem:[#allocation5 + $0x1c4] ss:$16 sps:$4 sm:$0xff]  }
 0x17e   :  { %2328 = vmatprep.subr.bf16.mxu0 %v11599_v2  ;;  %2256 = vmatprep.subr.bf16.mxu1 %v11626_v23  ;;  %v11660_v2 = vld [vmem:[#allocation5 + $0x1c0] ss:$16 sps:$4 sm:$0xff]  }
 0x181   :  { %2329 = vmatpush1.bf16.msra.mxu0 %v11597_v4  ;;  %2257 = vmatpush1.bf16.msra.mxu1 %v11624_v28  ;;  %v11668_v4 = vld [vmem:[#allocation5 + $0x1e4] ss:$16 sps:$4 sm:$0xff]  }
 0x182   :  { %2330 = vmatprep.subr.bf16.mxu0 %v11605_v6  ;;  %2258 = vmatprep.subr.bf16.mxu1 %v11632_v30  ;;  %v11666_v6 = vld [vmem:[#allocation5 + $0x1e0] ss:$16 sps:$4 sm:$0xff]  }
 0x185   :  { %2331 = vmatpush1.bf16.msra.mxu0 %v11603_v8  ;;  %2259 = vmatpush1.bf16.msra.mxu1 %v11630_v32  ;;  %v11674_v8 = vld [vmem:[#allocation5 + $0x204] ss:$16 sps:$4 sm:$0xff]  }
 0x186   :  { %2332 = vmatprep.subr.bf16.mxu0 %v11611_v10  ;;  %2260 = vmatprep.subr.bf16.mxu1 %v11638_v34 }
 0x189   :  { %2333 = vmatpush1.bf16.msra.mxu0 %v11609_v12  ;;  %2261 = vmatpush1.bf16.msra.mxu1 %v11636_v36  ;;  %v11675_v36 = vld [vmem:[#allocation5 + $0x208] ss:$16 sps:$4 sm:$0xff]  }
 0x18a   :  { %2334 = vmatprep.subr.bf16.mxu0 %v11617_v14  ;;  %2262 = vmatprep.subr.bf16.mxu1 %v11644_v38  ;;  %v11683_v38 = vld [vmem:[#allocation5 + $0x22c] ss:$16 sps:$4 sm:$0xff]  }
 0x18b   :  { %v10959_v19 = vpop.f32.mrb[0].mxu1 }
 0x18c   :  { %v10960_v21 = vpop.f32.mrb[1].mxu1 }
 0x18d   :  { %v10961_v24 = vadd.f32 %v10960_v21, %v10959_v19  ;;  %v10962_v25 = vpop.f32.mrb[2].mxu1  ;;  %2335 = vmatpush1.bf16.msra.mxu0 %v11615_v16  ;;  %2263 = vmatpush1.bf16.msra.mxu1 %v11642_v42  ;;  %v13008_v21 = vld [vmem:[%s13277_s9] sm:$0xff] }
 0x18e   :  { %v10963_v27 = vpop.f32.mrb[3].mxu1  ;;  %2336 = vmatprep.subr.bf16.mxu0 %v11623_v18  ;;  %2264 = vmatprep.subr.bf16.mxu1 %v11650_v44  ;;  %v385_v23 = vrot.slane %v13008_v21, %v384_v53  ;;  %v11678_v42 = vld [vmem:[#allocation5 + $0x220] ss:$16 sps:$4 sm:$0xff]   ;;  %v11686_v44 = vld [vmem:[#allocation5 + $0x244] ss:$16 sps:$4 sm:$0xff]  }
 0x18f   :  { %v1514_v57 = vadd.f32 %v10961_v24, %v393_v56  ;;  %v11696_v56 = vld [vmem:[#allocation5 + $0x280] ss:$16 sps:$4 sm:$0xff]  }
 0x191   :  { %2337 = vmatpush1.bf16.msra.mxu0 %v11621_v22  ;;  %2265 = vmatpush1.bf16.msra.mxu1 %v11648_v47  ;;  %v13013_v22 = vld [vmem:[%s13277_s9 + $0x8] sm:$0xff]  ;;  %v11684_v47 = vld [vmem:[#allocation5 + $0x240] ss:$16 sps:$4 sm:$0xff]  }
 0x192   :  { %2338 = vmatprep.subr.bf16.mxu0 %v11629_v26  ;;  %2266 = vmatprep.subr.bf16.mxu1 %v11656_v49  ;;  %v389_v24 = vrot.slane %v13013_v22, %v384_v53  ;;  %v11692_v49 = vld [vmem:[#allocation5 + $0x264] ss:$16 sps:$4 sm:$0xff]   ;;  %v11693_v53 = vld [vmem:[#allocation5 + $0x268] ss:$16 sps:$4 sm:$0xff]  }
 0x195   :  { %2339 = vmatpush1.bf16.msra.mxu0 %v11627_v29  ;;  %2267 = vmatpush1.bf16.msra.mxu1 %v11654_v54  ;;  %v11698_v54 = vld [vmem:[#allocation5 + $0x284] ss:$16 sps:$4 sm:$0xff]  }
 0x196   :  { %2340 = vmatprep.subr.bf16.mxu0 %v11635_v31  ;;  %2268 = vmatprep.subr.bf16.mxu1 %v11662_v0  ;;  %v11708_v0 = vld [vmem:[#allocation5 + $0x2c0] ss:$16 sps:$4 sm:$0xff]  }
 0x199   :  { %2341 = vmatpush1.bf16.msra.mxu0 %v11633_v33  ;;  %2269 = vmatpush1.bf16.msra.mxu1 %v11660_v2  ;;  %v11716_v2 = vld [vmem:[#allocation5 + $0x2e4] ss:$16 sps:$4 sm:$0xff]  }
 0x19a   :  { %2342 = vmatprep.subr.bf16.mxu0 %v11641_v35  ;;  %2270 = vmatprep.subr.bf16.mxu1 %v11668_v4  ;;  %v11672_v35 = vld [vmem:[#allocation5 + $0x200] ss:$16 sps:$4 sm:$0xff]   ;;  %v11719_v4 = vld [vmem:[#allocation5 + $0x2ec] ss:$16 sps:$4 sm:$0xff]  }
 0x19d   :  { %2343 = vmatpush1.bf16.msra.mxu0 %v11639_v37  ;;  %2271 = vmatpush1.bf16.msra.mxu1 %v11666_v6  ;;  %v11680_v37 = vld [vmem:[#allocation5 + $0x224] ss:$16 sps:$4 sm:$0xff]  }
 0x19e   :  { %2344 = vmatprep.subr.bf16.mxu0 %v11647_v39  ;;  %2281 = vmatprep.subr.bf16.mxu1 %v11674_v8  ;;  %v2420_v6 = vld [vmem:[#allocation7 + $0x20] sm:$0xff]  ;;  %v2421_v8 = vld [vmem:[#allocation7 + $0x28] sm:$0xff] }
 0x1a1   :  { %2345 = vmatpush1.bf16.msra.mxu0 %v11645_v43  ;;  %v11681_v43 = vld [vmem:[#allocation5 + $0x228] ss:$16 sps:$4 sm:$0xff]  }
 0x1a2   :  { %2346 = vmatprep.subr.bf16.mxu0 %v11653_v45  ;;  %v11689_v45 = vld [vmem:[#allocation5 + $0x24c] ss:$16 sps:$4 sm:$0xff]  }
 0x1a5   :  { %2347 = vmatpush1.bf16.msra.mxu0 %v11651_v48  ;;  %v11687_v48 = vld [vmem:[#allocation5 + $0x248] ss:$16 sps:$4 sm:$0xff]  }
 0x1a6   :  { %2348 = vmatprep.subr.bf16.mxu0 %v11659_v50  ;;  %v11695_v50 = vld [vmem:[#allocation5 + $0x26c] ss:$16 sps:$4 sm:$0xff]  }
 0x1a9   :  { %2349 = vmatpush1.bf16.msra.mxu0 %v11657_v55  ;;  %v11701_v55 = vld [vmem:[#allocation5 + $0x28c] ss:$16 sps:$4 sm:$0xff]  }
 0x1aa   :  { %2350 = vmatprep.subr.bf16.mxu0 %v11665_v1  ;;  %v11711_v1 = vld [vmem:[#allocation5 + $0x2c8] ss:$16 sps:$4 sm:$0xff]  }
 0x1ac   :  { %v10981_v58 = vpop.f32.mrb[4].mxu1 }
 0x1ad   :  { %v10982_v59 = vpop.f32.mrb[5].mxu1  ;;  %2351 = vmatpush1.bf16.msra.mxu0 %v11663_v3 }
 0x1ae   :  { %v10983_v60 = vadd.f32 %v10982_v59, %v10981_v58  ;;  %v10984_v61 = vpop.f32.mrb[6].mxu1  ;;  %2352 = vmatprep.subr.bf16.mxu0 %v11671_v5  ;;  %v11704_v58 = vld [vmem:[#allocation5 + $0x2a4] ss:$16 sps:$4 sm:$0xff]   ;;  %v11707_v59 = vld [vmem:[#allocation5 + $0x2ac] ss:$16 sps:$4 sm:$0xff]  }
 0x1af   :  { %v10985_v62 = vpop.f32.mrb[7].mxu1  ;;  %v11705_v61 = vld [vmem:[#allocation5 + $0x2a8] ss:$16 sps:$4 sm:$0xff]   ;;  %v2416_v5 = vld [vmem:[#allocation7] sm:$0xff] }
 0x1b0   :  { %v1554_v63 = vadd.f32 %v10983_v60, %v1514_v57  ;;  %v11699_v57 = vld [vmem:[#allocation5 + $0x288] ss:$16 sps:$4 sm:$0xff]   ;;  %v11702_v60 = vld [vmem:[#allocation5 + $0x2a0] ss:$16 sps:$4 sm:$0xff]   ;;  %v11710_v62 = vld [vmem:[#allocation5 + $0x2c4] ss:$16 sps:$4 sm:$0xff]  }
 0x1b1   :  { %2353 = vmatpush1.bf16.msra.mxu0 %v11669_v7  ;;  %v2417_v7 = vld [vmem:[#allocation7 + $0x8] sm:$0xff] }
 0x1b2   :  { %2363 = vmatprep.subr.bf16.mxu0 %v11677_v9  ;;  %v11714_v9 = vld [vmem:[#allocation5 + $0x2e0] ss:$16 sps:$4 sm:$0xff]  }
 0x1cc   :  { %v11003_v10 = vpop.f32.mrb[8].mxu1 }
 0x1cd   :  { %v11004_v11 = vpop.f32.mrb[9].mxu1 }
 0x1ce   :  { %v11005_v12 = vadd.f32 %v11004_v11, %v11003_v10  ;;  %v11006_v13 = vpop.f32.mrb[10].mxu1  ;;  %v11717_v10 = vld [vmem:[#allocation5 + $0x2e8] ss:$16 sps:$4 sm:$0xff]  }
 0x1cf   :  { %v11007_v14 = vpop.f32.mrb[11].mxu1  ;;  %v10042_v13 = vcombine.high %v2417_v7, %v2421_v8 }
 0x1d0   :  { %v1594_v15 = vadd.f32 %v11005_v12, %v1554_v63  ;;  %v11713_v63 = vld [vmem:[#allocation5 + $0x2cc] ss:$16 sps:$4 sm:$0xff]   ;;  %v10040_v12 = vcombine.high %v2416_v5, %v2420_v6  ;;  %v2424_v14 = vld [vmem:[#allocation7 + $0x40] sm:$0xff] }
 0x1ec   :  { %v1633_v16 = vpop.f32.mrb[12].mxu1 }
 0x1ed   :  { %v13003_v17 = vadd.f32 %v1633_v16, %v1594_v15  ;;  %v11199_v18 = vpop.f32.mrb[13].mxu1  ;;  %v2428_v15 = vld [vmem:[#allocation7 + $0x60] sm:$0xff]  ;;  %v2425_v16 = vld [vmem:[#allocation7 + $0x48] sm:$0xff] }
 0x1ee   :  { %v1636_v19 = vpop.f32.mrb[14].mxu1  ;;  %v2429_v18 = vld [vmem:[#allocation7 + $0x68] sm:$0xff] }
 0x1ef   :  { %v11200_v20 = vpop.f32.mrb[15].mxu1  ;;  %v1641_v3 = vmul.f32 0.01, %v13003_v17  ;;  %v10039_v19 = vcombine.low %v2416_v5, %v2420_v6  ;;  %v2476_v5 = vld [vmem:[#allocation7 + $0x1e0] sm:$0xff]  ;;  %v2473_v6 = vld [vmem:[#allocation7 + $0x1c8] sm:$0xff] }
 0x1f0   :  { %v10041_v20 = vcombine.low %v2417_v7, %v2421_v8  ;;  %v2477_v7 = vld [vmem:[#allocation7 + $0x1e8] sm:$0xff] }
 0x1f1   :  { %v1644_v11 = vmax.f32 %v13003_v17, %v1641_v3  ;;  %v2433_v17 = vld [vmem:[#allocation7 + $0x88] sm:$0xff] }
 0x247   :  { %v1472_v25 = vpop.f32.mrb[0].mxu0 }
 0x248   :  { %v11221_v26 = vadd.f32 %v1472_v25, %v385_v23  ;;  %v1474_v27 = vpop.f32.mrb[1].mxu0  ;;  %v1647_v23 = vpack.c.bf16 %v1644_v11, %v1644_v11  ;;  %v10050_v25 = vcombine.high %v2425_v16, %v2429_v18  ;;  %v10098_v11 = vcombine.high %v2473_v6, %v2477_v7 }
 0x249   :  { %v11222_v28 = vadd.f32 %v1474_v27, %v389_v24  ;;  %v1476_v29 = vpop.f32.mrb[2].mxu0  ;;  %v10048_v24 = vcombine.high %v2424_v14, %v2428_v15  ;;  %v2436_v27 = vld [vmem:[#allocation7 + $0xa0] sm:$0xff] }
 0x24a   :  { %v1639_v30 = vmul.f32 0.01, %v11221_v26  ;;  %v1477_v31 = vpop.f32.mrb[3].mxu0  ;;  %v10047_v29 = vcombine.low %v2424_v14, %v2428_v15  ;;  %v2481_v14 = vld [vmem:[#allocation7 + $0x208] sm:$0xff] }
 0x24b   :  { %v1640_v32 = vmul.f32 0.01, %v11222_v28  ;;  %v2485_v15 = vld [vmem:[#allocation7 + $0x228] sm:$0xff] }
 0x24c   :  { %v1642_v33 = vmax.f32 %v11221_v26, %v1639_v30  ;;  %v2432_v26 = vld [vmem:[#allocation7 + $0x80] sm:$0xff]  ;;  %v10049_v30 = vcombine.low %v2425_v16, %v2429_v18  ;;  %v10097_v18 = vcombine.low %v2473_v6, %v2477_v7  ;;  %v2529_v6 = vld [vmem:[#allocation7 + $0x388] sm:$0xff] }
 0x24d   :  { %v1643_v34 = vmax.f32 %v11222_v28, %v1640_v32  ;;  %v2437_v28 = vld [vmem:[#allocation7 + $0xa8] sm:$0xff]  ;;  %v10056_v31 = vcombine.high %v2432_v26, %v2436_v27 }
 0x24e   :  { %v1645_v41 = vpack.c.bf16 %v1642_v33, %v1642_v33  ;;  %v10058_v32 = vcombine.high %v2433_v17, %v2437_v28  ;;  %v2440_v33 = vld [vmem:[#allocation7 + $0xc0] sm:$0xff]  ;;  %v2533_v7 = vld [vmem:[#allocation7 + $0x3a8] sm:$0xff] }
 0x24f   :  { %v1646_v39 = vpack.c.bf16 %v1643_v34, %v1643_v34  ;;  %v2444_v34 = vld [vmem:[#allocation7 + $0xe0] sm:$0xff] }
 0x251   :  { %2272 = vmatprep.mubr.bf16.mxu1 %v1646_v39  ;;  %2354 = vmatprep.mubr.bf16.mxu0 %v1646_v39  ;;  %v10064_v39 = vcombine.high %v2440_v33, %v2444_v34 }
 0x252   :  { %2273 = vmatmul.mubr.bf16.vlgmr.msra.gmra.mrb[16].mxu1 %v1645_v41  ;;  %2355 = vmatmul.mubr.bf16.vlgmr.msra.gmra.mrb[4].mxu0 %v1645_v41 }
 0x253   :  { %2282 = vmatpush1.bf16.msra.mxu1 %v11672_v35  ;;  %2364 = vmatpush1.bf16.msra.mxu0 %v11675_v36  ;;  %v2441_v35 = vld [vmem:[#allocation7 + $0xc8] sm:$0xff] }
 0x254   :  { %2283 = vmatprep.subr.bf16.mxu1 %v11680_v37  ;;  %2365 = vmatprep.subr.bf16.mxu0 %v11683_v38  ;;  %v2445_v36 = vld [vmem:[#allocation7 + $0xe8] sm:$0xff]  ;;  %v10055_v37 = vcombine.low %v2432_v26, %v2436_v27  ;;  %v10057_v38 = vcombine.low %v2433_v17, %v2437_v28  ;;  %v10105_v17 = vcombine.low %v2481_v14, %v2485_v15 }
 0x255   :  { %2313 = vmatprep.mubr.bf16.mxu1 %v12786_v40  ;;  %2395 = vmatprep.mubr.bf16.mxu0 %v12786_v40  ;;  %v10066_v41 = vcombine.high %v2441_v35, %v2445_v36  ;;  %v2493_v26 = vld [vmem:[#allocation7 + $0x268] sm:$0xff] }
 0x257   :  { %2284 = vmatpush1.bf16.msra.mxu1 %v11678_v42  ;;  %2366 = vmatpush1.bf16.msra.mxu0 %v11681_v43  ;;  %v2448_v42 = vld [vmem:[#allocation7 + $0x100] sm:$0xff] }
 0x258   :  { %2285 = vmatprep.subr.bf16.mxu1 %v11686_v44  ;;  %2367 = vmatprep.subr.bf16.mxu0 %v11689_v45  ;;  %v2452_v43 = vld [vmem:[#allocation7 + $0x120] sm:$0xff]  ;;  %v2449_v44 = vld [vmem:[#allocation7 + $0x108] sm:$0xff] }
 0x259   :  { %v2453_v45 = vld [vmem:[#allocation7 + $0x128] sm:$0xff] }
 0x25b   :  { %2286 = vmatpush1.bf16.msra.mxu1 %v11684_v47  ;;  %2368 = vmatpush1.bf16.msra.mxu0 %v11687_v48  ;;  %v10063_v47 = vcombine.low %v2440_v33, %v2444_v34  ;;  %v10065_v48 = vcombine.low %v2441_v35, %v2445_v36  ;;  %v2501_v33 = vld [vmem:[#allocation7 + $0x2a8] sm:$0xff] }
 0x25c   :  { %2287 = vmatprep.subr.bf16.mxu1 %v11692_v49  ;;  %2369 = vmatprep.subr.bf16.mxu0 %v11695_v50  ;;  %v10072_v49 = vcombine.high %v2448_v42, %v2452_v43  ;;  %v10074_v50 = vcombine.high %v2449_v44, %v2453_v45 }
 0x25f   :  { %2288 = vmatpush1.bf16.msra.mxu1 %v11690_v51  ;;  %2370 = vmatpush1.bf16.msra.mxu0 %v11693_v53  ;;  %v2456_v51 = vld [vmem:[#allocation7 + $0x140] sm:$0xff] }
 0x260   :  { %2289 = vmatprep.subr.bf16.mxu1 %v11698_v54  ;;  %2371 = vmatprep.subr.bf16.mxu0 %v11701_v55  ;;  %v2460_v53 = vld [vmem:[#allocation7 + $0x160] sm:$0xff]  ;;  %v2457_v54 = vld [vmem:[#allocation7 + $0x148] sm:$0xff] }
 0x261   :  { %v2461_v55 = vld [vmem:[#allocation7 + $0x168] sm:$0xff] }
 0x263   :  { %2290 = vmatpush1.bf16.msra.mxu1 %v11696_v56  ;;  %2372 = vmatpush1.bf16.msra.mxu0 %v11699_v57  ;;  %v10071_v56 = vcombine.low %v2448_v42, %v2452_v43  ;;  %v10073_v57 = vcombine.low %v2449_v44, %v2453_v45  ;;  %v2509_v42 = vld [vmem:[#allocation7 + $0x2e8] sm:$0xff] }
 0x264   :  { %2291 = vmatprep.subr.bf16.mxu1 %v11704_v58  ;;  %2373 = vmatprep.subr.bf16.mxu0 %v11707_v59  ;;  %v10080_v58 = vcombine.high %v2456_v51, %v2460_v53  ;;  %v10082_v59 = vcombine.high %v2457_v54, %v2461_v55 }
 0x267   :  { %2292 = vmatpush1.bf16.msra.mxu1 %v11702_v60  ;;  %2374 = vmatpush1.bf16.msra.mxu0 %v11705_v61  ;;  %v2464_v60 = vld [vmem:[#allocation7 + $0x180] sm:$0xff] }
 0x268   :  { %2293 = vmatprep.subr.bf16.mxu1 %v11710_v62  ;;  %2375 = vmatprep.subr.bf16.mxu0 %v11713_v63  ;;  %v2468_v61 = vld [vmem:[#allocation7 + $0x1a0] sm:$0xff]  ;;  %v2465_v62 = vld [vmem:[#allocation7 + $0x188] sm:$0xff] }
 0x269   :  { %v2469_v63 = vld [vmem:[#allocation7 + $0x1a8] sm:$0xff]  ;;  %v10087_v8 = vcombine.low %v2464_v60, %v2468_v61 }
 0x26a   :  { %v10090_v3 = vcombine.high %v2465_v62, %v2469_v63 }
 0x26b   :  { %2294 = vmatpush1.bf16.msra.mxu1 %v11708_v0  ;;  %2376 = vmatpush1.bf16.msra.mxu0 %v11711_v1  ;;  %v10079_v0 = vcombine.low %v2456_v51, %v2460_v53  ;;  %v10081_v1 = vcombine.low %v2457_v54, %v2461_v55  ;;  %v2517_v51 = vld [vmem:[#allocation7 + $0x328] sm:$0xff] }
 0x26c   :  { %2295 = vmatprep.subr.bf16.mxu1 %v11716_v2  ;;  %2377 = vmatprep.subr.bf16.mxu0 %v11719_v4  ;;  %v10088_v2 = vcombine.high %v2464_v60, %v2468_v61  ;;  %v2472_v4 = vld [vmem:[#allocation7 + $0x1c0] sm:$0xff]  ;;  %v2525_v60 = vld [vmem:[#allocation7 + $0x368] sm:$0xff] }
 0x26d   :  { %v10095_v16 = vcombine.low %v2472_v4, %v2476_v5 }
 0x26f   :  { %2296 = vmatpush1.bf16.msra.mxu1 %v11714_v9  ;;  %2378 = vmatpush1.bf16.msra.mxu0 %v11717_v10  ;;  %v10089_v9 = vcombine.low %v2465_v62, %v2469_v63  ;;  %v10096_v10 = vcombine.high %v2472_v4, %v2476_v5  ;;  %v2532_v4 = vld [vmem:[#allocation7 + $0x3a0] sm:$0xff] }
 0x270   :  { %3984 = vmatprep.subr.bf16.mxu1 %v10040_v12  ;;  %4066 = vmatprep.subr.bf16.mxu0 %v10042_v13  ;;  %v2480_v12 = vld [vmem:[#allocation7 + $0x200] sm:$0xff] }
 0x271   :  { %v2484_v13 = vld [vmem:[#allocation7 + $0x220] sm:$0xff] }
 0x272   :  { %2314 = vmatmul.mubr.bf16.vlgmr.msra.gmra.mrb[16].mxu1 %v1647_v23  ;;  %2396 = vmatmul.mubr.bf16.vlgmr.msra.gmra.mrb[4].mxu0 %v1647_v23  ;;  %v2488_v23 = vld [vmem:[#allocation7 + $0x240] sm:$0xff]  ;;  %v10103_v27 = vcombine.low %v2480_v12, %v2484_v13 }
 0x273   :  { %3985 = vmatpush1.bf16.msra.mxu1 %v10039_v19  ;;  %4067 = vmatpush1.bf16.msra.mxu0 %v10041_v20  ;;  %v10104_v19 = vcombine.high %v2480_v12, %v2484_v13  ;;  %v10106_v20 = vcombine.high %v2481_v14, %v2485_v15  ;;  %v2540_v12 = vld [vmem:[#allocation7 + $0x3e0] sm:$0xff]  ;;  %v2537_v13 = vld [vmem:[#allocation7 + $0x3c8] sm:$0xff] }
 0x274   :  { %3986 = vmatprep.subr.bf16.mxu1 %v10048_v24  ;;  %4068 = vmatprep.subr.bf16.mxu0 %v10050_v25  ;;  %v2492_v24 = vld [vmem:[#allocation7 + $0x260] sm:$0xff]  ;;  %v2489_v25 = vld [vmem:[#allocation7 + $0x248] sm:$0xff] }
 0x275   :  { %v10112_v28 = vcombine.high %v2488_v23, %v2492_v24  ;;  %v10111_v34 = vcombine.low %v2488_v23, %v2492_v24  ;;  %v10113_v35 = vcombine.low %v2489_v25, %v2493_v26  ;;  %v2541_v15 = vld [vmem:[#allocation7 + $0x3e8] sm:$0xff]  ;;  %v2548_v23 = vld [vmem:[#allocation7 + $0x420] sm:$0xff] }
 0x276   :  { %v2545_v24 = vld [vmem:[#allocation7 + $0x408] sm:$0xff] }
 0x277   :  { %3987 = vmatpush1.bf16.msra.mxu1 %v10047_v29  ;;  %4069 = vmatpush1.bf16.msra.mxu0 %v10049_v30  ;;  %v10114_v29 = vcombine.high %v2489_v25, %v2493_v26  ;;  %v2496_v30 = vld [vmem:[#allocation7 + $0x280] sm:$0xff]  ;;  %v2549_v26 = vld [vmem:[#allocation7 + $0x428] sm:$0xff] }
 0x278   :  { %3988 = vmatprep.subr.bf16.mxu1 %v10056_v31  ;;  %4070 = vmatprep.subr.bf16.mxu0 %v10058_v32  ;;  %v2500_v31 = vld [vmem:[#allocation7 + $0x2a0] sm:$0xff]  ;;  %v2497_v32 = vld [vmem:[#allocation7 + $0x288] sm:$0xff] }
 0x279   :  { %v10120_v36 = vcombine.high %v2496_v30, %v2500_v31  ;;  %v10119_v43 = vcombine.low %v2496_v30, %v2500_v31  ;;  %v10121_v44 = vcombine.low %v2497_v32, %v2501_v33  ;;  %v149_v30 = vld [vmem:[%s13277_s9 + $0x18] sm:$0xff] }
 0x27b   :  { %3989 = vmatpush1.bf16.msra.mxu1 %v10055_v37  ;;  %4071 = vmatpush1.bf16.msra.mxu0 %v10057_v38  ;;  %v10122_v37 = vcombine.high %v2497_v32, %v2501_v33  ;;  %v2504_v38 = vld [vmem:[#allocation7 + $0x2c0] sm:$0xff] }
 0x27c   :  { %3990 = vmatprep.subr.bf16.mxu1 %v10064_v39  ;;  %4072 = vmatprep.subr.bf16.mxu0 %v10066_v41  ;;  %v2508_v39 = vld [vmem:[#allocation7 + $0x2e0] sm:$0xff]  ;;  %v2505_v41 = vld [vmem:[#allocation7 + $0x2c8] sm:$0xff] }
 0x27d   :  { %v10128_v45 = vcombine.high %v2504_v38, %v2508_v39  ;;  %v10127_v53 = vcombine.low %v2504_v38, %v2508_v39  ;;  %v10129_v54 = vcombine.low %v2505_v41, %v2509_v42 }
 0x27f   :  { %3991 = vmatpush1.bf16.msra.mxu1 %v10063_v47  ;;  %4073 = vmatpush1.bf16.msra.mxu0 %v10065_v48  ;;  %v10130_v47 = vcombine.high %v2505_v41, %v2509_v42  ;;  %v2512_v48 = vld [vmem:[#allocation7 + $0x300] sm:$0xff] }
 0x280   :  { %3992 = vmatprep.subr.bf16.mxu1 %v10072_v49  ;;  %4074 = vmatprep.subr.bf16.mxu0 %v10074_v50  ;;  %v2516_v49 = vld [vmem:[#allocation7 + $0x320] sm:$0xff]  ;;  %v2513_v50 = vld [vmem:[#allocation7 + $0x308] sm:$0xff] }
 0x281   :  { %v10136_v55 = vcombine.high %v2512_v48, %v2516_v49  ;;  %v10135_v61 = vcombine.low %v2512_v48, %v2516_v49  ;;  %v10137_v62 = vcombine.low %v2513_v50, %v2517_v51 }
 0x283   :  { %3993 = vmatpush1.bf16.msra.mxu1 %v10071_v56  ;;  %4075 = vmatpush1.bf16.msra.mxu0 %v10073_v57  ;;  %v10138_v56 = vcombine.high %v2513_v50, %v2517_v51  ;;  %v2520_v57 = vld [vmem:[#allocation7 + $0x340] sm:$0xff] }
 0x284   :  { %3994 = vmatprep.subr.bf16.mxu1 %v10080_v58  ;;  %4076 = vmatprep.subr.bf16.mxu0 %v10082_v59  ;;  %v2524_v58 = vld [vmem:[#allocation7 + $0x360] sm:$0xff]  ;;  %v2521_v59 = vld [vmem:[#allocation7 + $0x348] sm:$0xff] }
 0x285   :  { %v10144_v63 = vcombine.high %v2520_v57, %v2524_v58 }
 0x287   :  { %3995 = vmatpush1.bf16.msra.mxu1 %v10079_v0  ;;  %4077 = vmatpush1.bf16.msra.mxu0 %v10081_v1  ;;  %v10146_v0 = vcombine.high %v2521_v59, %v2525_v60  ;;  %v10143_v1 = vcombine.low %v2520_v57, %v2524_v58  ;;  %v2560_v58 = vld [vmem:[#allocation7 + $0x480] sm:$0xff] }
 0x288   :  { %3996 = vmatprep.subr.bf16.mxu1 %v10088_v2  ;;  %4078 = vmatprep.subr.bf16.mxu0 %v10090_v3  ;;  %v10145_v2 = vcombine.low %v2521_v59, %v2525_v60  ;;  %v2528_v3 = vld [vmem:[#allocation7 + $0x380] sm:$0xff] }
 0x289   :  { %v10152_v5 = vcombine.high %v2528_v3, %v2532_v4 }
 0x28b   :  { %3997 = vmatpush1.bf16.msra.mxu1 %v10087_v8  ;;  %4079 = vmatpush1.bf16.msra.mxu0 %v10089_v9  ;;  %v10151_v8 = vcombine.low %v2528_v3, %v2532_v4  ;;  %v10153_v9 = vcombine.low %v2529_v6, %v2533_v7 }
 0x28c   :  { %3998 = vmatprep.subr.bf16.mxu1 %v10096_v10  ;;  %4080 = vmatprep.subr.bf16.mxu0 %v10098_v11  ;;  %v10154_v10 = vcombine.high %v2529_v6, %v2533_v7  ;;  %v2536_v11 = vld [vmem:[#allocation7 + $0x3c0] sm:$0xff]  ;;  %v2569_v7 = vld [vmem:[#allocation7 + $0x4c8] sm:$0xff] }
 0x28d   :  { %v10160_v14 = vcombine.high %v2536_v11, %v2540_v12  ;;  %v2572_v6 = vld [vmem:[#allocation7 + $0x4e0] sm:$0xff] }
 0x28f   :  { %3999 = vmatpush1.bf16.msra.mxu1 %v10095_v16  ;;  %4081 = vmatpush1.bf16.msra.mxu0 %v10097_v18  ;;  %v10159_v16 = vcombine.low %v2536_v11, %v2540_v12  ;;  %v10161_v18 = vcombine.low %v2537_v13, %v2541_v15 }
 0x290   :  { %4000 = vmatprep.subr.bf16.mxu1 %v10104_v19  ;;  %4082 = vmatprep.subr.bf16.mxu0 %v10106_v20  ;;  %v10162_v19 = vcombine.high %v2537_v13, %v2541_v15  ;;  %v2544_v20 = vld [vmem:[#allocation7 + $0x400] sm:$0xff]  ;;  %v2577_v15 = vld [vmem:[#allocation7 + $0x508] sm:$0xff] }
 0x291   :  { %v10168_v25 = vcombine.high %v2544_v20, %v2548_v23  ;;  %v2576_v13 = vld [vmem:[#allocation7 + $0x500] sm:$0xff] }
 0x293   :  { %4001 = vmatpush1.bf16.msra.mxu1 %v10103_v27  ;;  %4083 = vmatpush1.bf16.msra.mxu0 %v10105_v17  ;;  %v10167_v27 = vcombine.low %v2544_v20, %v2548_v23  ;;  %v10169_v17 = vcombine.low %v2545_v24, %v2549_v26 }
 0x294   :  { %4002 = vmatprep.subr.bf16.mxu1 %v10112_v28  ;;  %4084 = vmatprep.subr.bf16.mxu0 %v10114_v29  ;;  %v10170_v28 = vcombine.high %v2545_v24, %v2549_v26  ;;  %v13022_v29 = vsub.s32 1, %v12997_v46  ;;  %v2584_v24 = vld [vmem:[#allocation7 + $0x540] sm:$0xff]  ;;  %v2585_v26 = vld [vmem:[#allocation7 + $0x548] sm:$0xff] }
 0x296   :  { %v1747_v31 = vrot.slane %v13008_v21, %v13022_v29  ;;  %v1751_v32 = vrot.slane %v13013_v22, %v13022_v29  ;;  %v1759_v33 = vrot.slane %v149_v30, %v13022_v29  ;;  %v2552_v22 = vld [vmem:[#allocation7 + $0x440] sm:$0xff] }
 0x297   :  { %4003 = vmatpush1.bf16.msra.mxu1 %v10111_v34  ;;  %4085 = vmatpush1.bf16.msra.mxu0 %v10113_v35 }
 0x298   :  { %4004 = vmatprep.subr.bf16.mxu1 %v10120_v36  ;;  %4086 = vmatprep.subr.bf16.mxu0 %v10122_v37 }
 0x29b   :  { %4005 = vmatpush1.bf16.msra.mxu1 %v10119_v43  ;;  %4087 = vmatpush1.bf16.msra.mxu0 %v10121_v44 }
 0x29c   :  { %4006 = vmatprep.subr.bf16.mxu1 %v10128_v45  ;;  %4088 = vmatprep.subr.bf16.mxu0 %v10130_v47 }
 0x29f   :  { %4007 = vmatpush1.bf16.msra.mxu1 %v10127_v53  ;;  %4089 = vmatpush1.bf16.msra.mxu0 %v10129_v54  ;;  %v2556_v53 = vld [vmem:[#allocation7 + $0x460] sm:$0xff]  ;;  %v2553_v54 = vld [vmem:[#allocation7 + $0x448] sm:$0xff] }
 0x2a0   :  { %4008 = vmatprep.subr.bf16.mxu1 %v10136_v55  ;;  %4090 = vmatprep.subr.bf16.mxu0 %v10138_v56  ;;  %v2557_v55 = vld [vmem:[#allocation7 + $0x468] sm:$0xff]  ;;  %v10176_v59 = vcombine.high %v2552_v22, %v2556_v53 }
 0x2a1   :  { %v10178_v60 = vcombine.high %v2553_v54, %v2557_v55 }
 0x2a3   :  { %4009 = vmatpush1.bf16.msra.mxu1 %v10135_v61  ;;  %4091 = vmatpush1.bf16.msra.mxu0 %v10137_v62  ;;  %v2564_v61 = vld [vmem:[#allocation7 + $0x4a0] sm:$0xff]  ;;  %v2561_v62 = vld [vmem:[#allocation7 + $0x488] sm:$0xff] }
 0x2a4   :  { %4010 = vmatprep.subr.bf16.mxu1 %v10144_v63  ;;  %4092 = vmatprep.subr.bf16.mxu0 %v10146_v0  ;;  %v2565_v63 = vld [vmem:[#allocation7 + $0x4a8] sm:$0xff]  ;;  %v10184_v3 = vcombine.high %v2560_v58, %v2564_v61 }
 0x2a5   :  { %v10186_v4 = vcombine.high %v2561_v62, %v2565_v63 }
 0x2a7   :  { %4011 = vmatpush1.bf16.msra.mxu1 %v10143_v1  ;;  %4093 = vmatpush1.bf16.msra.mxu0 %v10145_v2  ;;  %v10175_v1 = vcombine.low %v2552_v22, %v2556_v53  ;;  %v10177_v2 = vcombine.low %v2553_v54, %v2557_v55  ;;  %v2612_v22 = vld [vmem:[#allocation7 + $0x620] sm:$0xff]  ;;  %v2613_v53 = vld [vmem:[#allocation7 + $0x628] sm:$0xff] }
 0x2a8   :  { %4012 = vmatprep.subr.bf16.mxu1 %v10152_v5  ;;  %4094 = vmatprep.subr.bf16.mxu0 %v10154_v10  ;;  %v2568_v5 = vld [vmem:[#allocation7 + $0x4c0] sm:$0xff]  ;;  %v10185_v10 = vcombine.low %v2561_v62, %v2565_v63  ;;  %v2617_v62 = vld [vmem:[#allocation7 + $0x648] sm:$0xff] }
 0x2a9   :  { %v10192_v11 = vcombine.high %v2568_v5, %v2572_v6  ;;  %v2621_v63 = vld [vmem:[#allocation7 + $0x668] sm:$0xff] }
 0x2ab   :  { %4013 = vmatpush1.bf16.msra.mxu1 %v10151_v8  ;;  %4095 = vmatpush1.bf16.msra.mxu0 %v10153_v9  ;;  %v2573_v8 = vld [vmem:[#allocation7 + $0x4e8] sm:$0xff]  ;;  %v10183_v9 = vcombine.low %v2560_v58, %v2564_v61  ;;  %v2620_v61 = vld [vmem:[#allocation7 + $0x660] sm:$0xff] }
 0x2ac   :  { %4014 = vmatprep.subr.bf16.mxu1 %v10160_v14  ;;  %4096 = vmatprep.subr.bf16.mxu0 %v10162_v19  ;;  %v10194_v12 = vcombine.high %v2569_v7, %v2573_v8  ;;  %v2580_v14 = vld [vmem:[#allocation7 + $0x520] sm:$0xff]  ;;  %v10193_v19 = vcombine.low %v2569_v7, %v2573_v8  ;;  %v2625_v7 = vld [vmem:[#allocation7 + $0x688] sm:$0xff] }
 0x2ad   :  { %v10200_v20 = vcombine.high %v2576_v13, %v2580_v14  ;;  %v2629_v8 = vld [vmem:[#allocation7 + $0x6a8] sm:$0xff] }
 0x2af   :  { %4015 = vmatpush1.bf16.msra.mxu1 %v10159_v16  ;;  %4097 = vmatpush1.bf16.msra.mxu0 %v10161_v18  ;;  %v2581_v16 = vld [vmem:[#allocation7 + $0x528] sm:$0xff]  ;;  %v10191_v18 = vcombine.low %v2568_v5, %v2572_v6  ;;  %v2624_v5 = vld [vmem:[#allocation7 + $0x680] sm:$0xff] }
 0x2b0   :  { %4025 = vmatprep.subr.bf16.mxu1 %v10168_v25  ;;  %4107 = vmatprep.subr.bf16.mxu0 %v10170_v28  ;;  %v10202_v23 = vcombine.high %v2577_v15, %v2581_v16  ;;  %v2588_v25 = vld [vmem:[#allocation7 + $0x560] sm:$0xff]  ;;  %v10201_v28 = vcombine.low %v2577_v15, %v2581_v16  ;;  %v2633_v15 = vld [vmem:[#allocation7 + $0x6c8] sm:$0xff] }
 0x2b1   :  { %v10208_v30 = vcombine.high %v2584_v24, %v2588_v25  ;;  %v2628_v6 = vld [vmem:[#allocation7 + $0x6a0] sm:$0xff]  ;;  %v2637_v16 = vld [vmem:[#allocation7 + $0x6e8] sm:$0xff] }
 0x345   :  { %v2315_v34 = vpop.f32.mrb[16].mxu1  ;;  %v13032_v35 = vpop.f32.mrb[4].mxu0 }
 0x346   :  { %v11223_v36 = vadd.f32 %v2315_v34, %v1747_v31  ;;  %v2317_v37 = vpop.f32.mrb[17].mxu1  ;;  %v2399_v38 = vpop.f32.mrb[5].mxu0  ;;  %v2593_v34 = vld [vmem:[#allocation7 + $0x588] sm:$0xff] }
 0x347   :  { %v11224_v39 = vadd.f32 %v2317_v37, %v1751_v32  ;;  %v11226_v41 = vadd.f32 %v2399_v38, %v1759_v33  ;;  %v2319_v42 = vpop.f32.mrb[18].mxu1  ;;  %v2401_v43 = vpop.f32.mrb[6].mxu0  ;;  %v2592_v32 = vld [vmem:[#allocation7 + $0x580] sm:$0xff]  ;;  %v10207_v37 = vcombine.low %v2584_v24, %v2588_v25 }
 0x348   :  { %v2404_v44 = vmul.f32 0.01, %v11223_v36  ;;  %v2320_v45 = vpop.f32.mrb[19].mxu1  ;;  %v2402_v47 = vpop.f32.mrb[7].mxu0  ;;  %v2596_v33 = vld [vmem:[#allocation7 + $0x5a0] sm:$0xff] }
 0x349   :  { %v2405_v48 = vmul.f32 0.01, %v11224_v39  ;;  %v2407_v21 = vmul.f32 0.01, %v11226_v41  ;;  %v2600_v42 = vld [vmem:[#allocation7 + $0x5c0] sm:$0xff]  ;;  %v2605_v45 = vld [vmem:[#allocation7 + $0x5e8] sm:$0xff]  ;;  %v10215_v47 = vcombine.low %v2592_v32, %v2596_v33 }
 0x34a   :  { %v2408_v49 = vmax.f32 %v11223_v36, %v2404_v44  ;;  %v2597_v36 = vld [vmem:[#allocation7 + $0x5a8] sm:$0xff]  ;;  %v2604_v43 = vld [vmem:[#allocation7 + $0x5e0] sm:$0xff] }
 0x34b   :  { %v2409_v50 = vmax.f32 %v11224_v39, %v2405_v48  ;;  %v2411_v51 = vmax.f32 %v11226_v41, %v2407_v21  ;;  %v10216_v39 = vcombine.high %v2592_v32, %v2596_v33  ;;  %v10218_v41 = vcombine.high %v2593_v34, %v2597_v36  ;;  %v2601_v44 = vld [vmem:[#allocation7 + $0x5c8] sm:$0xff]  ;;  %v2640_v24 = vld [vmem:[#allocation7 + $0x700] sm:$0xff] }
 0x34c   :  { %v13036_v57 = vpack.c.bf16 %v2408_v49, %v2408_v49  ;;  %v10217_v48 = vcombine.low %v2593_v34, %v2597_v36  ;;  %v10224_v21 = vcombine.high %v2600_v42, %v2604_v43  ;;  %v10226_v49 = vcombine.high %v2601_v44, %v2605_v45  ;;  %v2644_v25 = vld [vmem:[#allocation7 + $0x720] sm:$0xff]  ;;  %v2649_v34 = vld [vmem:[#allocation7 + $0x748] sm:$0xff] }
 0x34d   :  { %v13034_v56 = vpack.c.bf16 %v2409_v50, %v2409_v50  ;;  %v13040_v0 = vpack.c.bf16 %v2411_v51, %v2411_v51  ;;  %v2608_v50 = vld [vmem:[#allocation7 + $0x600] sm:$0xff]  ;;  %v2609_v51 = vld [vmem:[#allocation7 + $0x608] sm:$0xff]  ;;  %v10223_v54 = vcombine.low %v2600_v42, %v2604_v43  ;;  %v10225_v55 = vcombine.low %v2601_v44, %v2605_v45 }
 0x34e   :  { %v10232_v58 = vcombine.high %v2608_v50, %v2612_v22  ;;  %v2648_v32 = vld [vmem:[#allocation7 + $0x740] sm:$0xff]  ;;  %v2653_v36 = vld [vmem:[#allocation7 + $0x768] sm:$0xff] }
 0x34f   :  { %4016 = vmatprep.mubr.bf16.mxu1 %v13034_v56  ;;  %4098 = vmatprep.mubr.bf16.mxu0 %v13034_v56  ;;  %v2652_v33 = vld [vmem:[#allocation7 + $0x760] sm:$0xff]  ;;  %v10274_v43 = vcombine.high %v2649_v34, %v2653_v36 }
 0x350   :  { %4017 = vmatmul.mubr.bf16.vlgmr.msra.gmra.mrb[20].mxu1 %v13036_v57  ;;  %4099 = vmatmul.mubr.bf16.vlgmr.msra.gmra.mrb[8].mxu0 %v13036_v57  ;;  %v10272_v42 = vcombine.high %v2648_v32, %v2652_v33  ;;  %v2656_v44 = vld [vmem:[#allocation7 + $0x780] sm:$0xff] }
 0x351   :  { %4026 = vmatpush1.bf16.msra.mxu1 %v10167_v27  ;;  %4108 = vmatpush1.bf16.msra.mxu0 %v10169_v17  ;;  %v2589_v27 = vld [vmem:[#allocation7 + $0x568] sm:$0xff]  ;;  %v10199_v17 = vcombine.low %v2576_v13, %v2580_v14  ;;  %v2632_v13 = vld [vmem:[#allocation7 + $0x6c0] sm:$0xff] }
 0x352   :  { %4057 = vmatprep.mubr.bf16.mxu1 %v13040_v0  ;;  %4139 = vmatprep.mubr.bf16.mxu0 %v13040_v0  ;;  %v10210_v31 = vcombine.high %v2585_v26, %v2589_v27  ;;  %v10209_v38 = vcombine.low %v2585_v26, %v2589_v27  ;;  %v2636_v14 = vld [vmem:[#allocation7 + $0x6e0] sm:$0xff]  ;;  %v2641_v26 = vld [vmem:[#allocation7 + $0x708] sm:$0xff] }
 0x353   :  { %4027 = vmatprep.subr.bf16.mxu1 %v10176_v59  ;;  %4109 = vmatprep.subr.bf16.mxu0 %v10178_v60  ;;  %v10234_v59 = vcombine.high %v2609_v51, %v2613_v53  ;;  %v2616_v60 = vld [vmem:[#allocation7 + $0x640] sm:$0xff]  ;;  %v2645_v27 = vld [vmem:[#allocation7 + $0x728] sm:$0xff] }
 0x354   :  { %v2660_v45 = vld [vmem:[#allocation7 + $0x7a0] sm:$0xff] }
 0x355   :  { %4028 = vmatpush1.bf16.msra.mxu1 %v10175_v1  ;;  %4110 = vmatpush1.bf16.msra.mxu0 %v10177_v2  ;;  %v10231_v1 = vcombine.low %v2608_v50, %v2612_v22  ;;  %v10233_v2 = vcombine.low %v2609_v51, %v2613_v53  ;;  %v10280_v22 = vcombine.high %v2656_v44, %v2660_v45  ;;  %v2664_v53 = vld [vmem:[#allocation7 + $0x7c0] sm:$0xff] }
 0x356   :  { %4029 = vmatprep.subr.bf16.mxu1 %v10184_v3  ;;  %4111 = vmatprep.subr.bf16.mxu0 %v10186_v4  ;;  %v10240_v3 = vcombine.high %v2616_v60, %v2620_v61  ;;  %v10242_v4 = vcombine.high %v2617_v62, %v2621_v63 }
 0x359   :  { %4030 = vmatpush1.bf16.msra.mxu1 %v10183_v9  ;;  %4112 = vmatpush1.bf16.msra.mxu0 %v10185_v10  ;;  %v10239_v9 = vcombine.low %v2616_v60, %v2620_v61  ;;  %v10241_v10 = vcombine.low %v2617_v62, %v2621_v63  ;;  %v2418_v63 = vld [vmem:[#allocation7 + $0x10] sm:$0xff] }
 0x35a   :  { %4031 = vmatprep.subr.bf16.mxu1 %v10192_v11  ;;  %4113 = vmatprep.subr.bf16.mxu0 %v10194_v12  ;;  %v10248_v11 = vcombine.high %v2624_v5, %v2628_v6  ;;  %v10250_v12 = vcombine.high %v2625_v7, %v2629_v8 }
 0x35d   :  { %4032 = vmatpush1.bf16.msra.mxu1 %v10191_v18  ;;  %4114 = vmatpush1.bf16.msra.mxu0 %v10193_v19  ;;  %v10247_v18 = vcombine.low %v2624_v5, %v2628_v6  ;;  %v10249_v19 = vcombine.low %v2625_v7, %v2629_v8  ;;  %v2426_v8 = vld [vmem:[#allocation7 + $0x50] sm:$0xff] }
 0x35e   :  { %4033 = vmatprep.subr.bf16.mxu1 %v10200_v20  ;;  %4115 = vmatprep.subr.bf16.mxu0 %v10202_v23  ;;  %v10256_v20 = vcombine.high %v2632_v13, %v2636_v14  ;;  %v10258_v23 = vcombine.high %v2633_v15, %v2637_v16 }
 0x361   :  { %4034 = vmatpush1.bf16.msra.mxu1 %v10199_v17  ;;  %4116 = vmatpush1.bf16.msra.mxu0 %v10201_v28  ;;  %v10255_v17 = vcombine.low %v2632_v13, %v2636_v14  ;;  %v10257_v28 = vcombine.low %v2633_v15, %v2637_v16 }
 0x362   :  { %4035 = vmatprep.subr.bf16.mxu1 %v10208_v30  ;;  %4117 = vmatprep.subr.bf16.mxu0 %v10210_v31  ;;  %v10264_v30 = vcombine.high %v2640_v24, %v2644_v25  ;;  %v10266_v31 = vcombine.high %v2641_v26, %v2645_v27 }
 0x365   :  { %4036 = vmatpush1.bf16.msra.mxu1 %v10207_v37  ;;  %4118 = vmatpush1.bf16.msra.mxu0 %v10209_v38  ;;  %v10263_v37 = vcombine.low %v2640_v24, %v2644_v25  ;;  %v10265_v38 = vcombine.low %v2641_v26, %v2645_v27 }
 0x366   :  { %4037 = vmatprep.subr.bf16.mxu1 %v10216_v39  ;;  %4119 = vmatprep.subr.bf16.mxu0 %v10218_v41  ;;  %v12536_v39 = vld [vmem:[%s13277_s9 + $0x10] sm:$0xff] }
 0x367   :  { %v1755_v41 = vrot.slane %v12536_v39, %v13022_v29  ;;  %v2668_v29 = vld [vmem:[#allocation7 + $0x7e0] sm:$0xff]  ;;  %v2455_v39 = vld [vmem:[#allocation7 + $0x138] sm:$0xff] }
 0x368   :  { %v10288_v61 = vcombine.high %v2664_v53, %v2668_v29 }
 0x369   :  { %4038 = vmatpush1.bf16.msra.mxu1 %v10215_v47  ;;  %4120 = vmatpush1.bf16.msra.mxu0 %v10217_v48  ;;  %v2657_v47 = vld [vmem:[#allocation7 + $0x788] sm:$0xff]  ;;  %v11225_v50 = vadd.f32 %v13032_v35, %v1755_v41  ;;  %v2419_v35 = vld [vmem:[#allocation7 + $0x18] sm:$0xff] }
 0x36a   :  { %4039 = vmatprep.subr.bf16.mxu1 %v10224_v21  ;;  %4121 = vmatprep.subr.bf16.mxu0 %v10226_v49  ;;  %v2661_v48 = vld [vmem:[#allocation7 + $0x7a8] sm:$0xff]  ;;  %v10271_v21 = vcombine.low %v2648_v32, %v2652_v33  ;;  %v10273_v49 = vcombine.low %v2649_v34, %v2653_v36 }
 0x36b   :  { %v10282_v51 = vcombine.high %v2657_v47, %v2661_v48  ;;  %v2406_v60 = vmul.f32 0.01, %v11225_v50 }
 0x36d   :  { %4040 = vmatpush1.bf16.msra.mxu1 %v10223_v54  ;;  %4122 = vmatpush1.bf16.msra.mxu0 %v10225_v55  ;;  %v2665_v54 = vld [vmem:[#allocation7 + $0x7c8] sm:$0xff]  ;;  %v2410_v5 = vmax.f32 %v11225_v50, %v2406_v60 }
 0x36e   :  { %4041 = vmatprep.subr.bf16.mxu1 %v10232_v58  ;;  %4123 = vmatprep.subr.bf16.mxu0 %v10234_v59  ;;  %v2669_v55 = vld [vmem:[#allocation7 + $0x7e8] sm:$0xff]  ;;  %v10279_v58 = vcombine.low %v2656_v44, %v2660_v45  ;;  %v10281_v59 = vcombine.low %v2657_v47, %v2661_v48  ;;  %v2458_v45 = vld [vmem:[#allocation7 + $0x150] sm:$0xff]  ;;  %v2459_v48 = vld [vmem:[#allocation7 + $0x158] sm:$0xff] }
 0x36f   :  { %v10290_v62 = vcombine.high %v2665_v54, %v2669_v55  ;;  %v13051_v13 = vpack.c.bf16 %v2410_v5, %v2410_v5  ;;  %v2462_v47 = vld [vmem:[#allocation7 + $0x170] sm:$0xff] }
 0x371   :  { %4042 = vmatpush1.bf16.msra.mxu1 %v10231_v1  ;;  %4124 = vmatpush1.bf16.msra.mxu0 %v10233_v2  ;;  %v2422_v1 = vld [vmem:[#allocation7 + $0x30] sm:$0xff]  ;;  %v2423_v2 = vld [vmem:[#allocation7 + $0x38] sm:$0xff] }
 0x372   :  { %4043 = vmatprep.subr.bf16.mxu1 %v10240_v3  ;;  %4125 = vmatprep.subr.bf16.mxu0 %v10242_v4  ;;  %v10287_v3 = vcombine.low %v2664_v53, %v2668_v29  ;;  %v10289_v4 = vcombine.low %v2665_v54, %v2669_v55  ;;  %v10044_v6 = vcombine.high %v2418_v63, %v2422_v1  ;;  %v2466_v53 = vld [vmem:[#allocation7 + $0x190] sm:$0xff]  ;;  %v2467_v54 = vld [vmem:[#allocation7 + $0x198] sm:$0xff] }
 0x373   :  { %v10046_v7 = vcombine.high %v2419_v35, %v2423_v2  ;;  %v10045_v14 = vcombine.low %v2419_v35, %v2423_v2  ;;  %v2470_v29 = vld [vmem:[#allocation7 + $0x1b0] sm:$0xff]  ;;  %v2471_v55 = vld [vmem:[#allocation7 + $0x1b8] sm:$0xff] }
 0x374   :  { %v10092_v60 = vcombine.high %v2466_v53, %v2470_v29  ;;  %v2479_v35 = vld [vmem:[#allocation7 + $0x1f8] sm:$0xff]  ;;  %v10091_v2 = vcombine.low %v2466_v53, %v2470_v29 }
 0x375   :  { %4044 = vmatpush1.bf16.msra.mxu1 %v10239_v9  ;;  %4126 = vmatpush1.bf16.msra.mxu0 %v10241_v10  ;;  %v2430_v9 = vld [vmem:[#allocation7 + $0x70] sm:$0xff]  ;;  %v2427_v10 = vld [vmem:[#allocation7 + $0x58] sm:$0xff] }
 0x376   :  { %4045 = vmatprep.subr.bf16.mxu1 %v10248_v11  ;;  %4127 = vmatprep.subr.bf16.mxu0 %v10250_v12  ;;  %v2431_v11 = vld [vmem:[#allocation7 + $0x78] sm:$0xff]  ;;  %v10043_v12 = vcombine.low %v2418_v63, %v2422_v1  ;;  %v10052_v15 = vcombine.high %v2426_v8, %v2430_v9  ;;  %v10051_v24 = vcombine.low %v2426_v8, %v2430_v9  ;;  %v2478_v63 = vld [vmem:[#allocation7 + $0x1f0] sm:$0xff] }
 0x377   :  { %v10054_v16 = vcombine.high %v2427_v10, %v2431_v11  ;;  %v10053_v25 = vcombine.low %v2427_v10, %v2431_v11  ;;  %v2475_v1 = vld [vmem:[#allocation7 + $0x1d8] sm:$0xff] }
 0x378   :  { %v10102_v5 = vcombine.high %v2475_v1, %v2479_v35  ;;  %v2483_v8 = vld [vmem:[#allocation7 + $0x218] sm:$0xff]  ;;  %v10101_v11 = vcombine.low %v2475_v1, %v2479_v35 }
 0x379   :  { %4046 = vmatpush1.bf16.msra.mxu1 %v10247_v18  ;;  %4128 = vmatpush1.bf16.msra.mxu0 %v10249_v19  ;;  %v2434_v18 = vld [vmem:[#allocation7 + $0x90] sm:$0xff]  ;;  %v2487_v9 = vld [vmem:[#allocation7 + $0x238] sm:$0xff] }
 0x37a   :  { %4047 = vmatprep.subr.bf16.mxu1 %v10256_v20  ;;  %4129 = vmatprep.subr.bf16.mxu0 %v10258_v23  ;;  %v2438_v19 = vld [vmem:[#allocation7 + $0xb0] sm:$0xff]  ;;  %v2435_v20 = vld [vmem:[#allocation7 + $0x98] sm:$0xff] }
 0x37b   :  { %v2439_v23 = vld [vmem:[#allocation7 + $0xb8] sm:$0xff]  ;;  %v10060_v26 = vcombine.high %v2434_v18, %v2438_v19  ;;  %v10059_v32 = vcombine.low %v2434_v18, %v2438_v19 }
 0x37c   :  { %v10062_v27 = vcombine.high %v2435_v20, %v2439_v23  ;;  %v10061_v33 = vcombine.low %v2435_v20, %v2439_v23  ;;  %v2491_v18 = vld [vmem:[#allocation7 + $0x258] sm:$0xff]  ;;  %v10109_v23 = vcombine.low %v2483_v8, %v2487_v9 }
 0x37d   :  { %4048 = vmatpush1.bf16.msra.mxu1 %v10255_v17  ;;  %4130 = vmatpush1.bf16.msra.mxu0 %v10257_v28  ;;  %v2442_v17 = vld [vmem:[#allocation7 + $0xd0] sm:$0xff]  ;;  %v2495_v19 = vld [vmem:[#allocation7 + $0x278] sm:$0xff] }
 0x37e   :  { %4049 = vmatprep.subr.bf16.mxu1 %v10264_v30  ;;  %4131 = vmatprep.subr.bf16.mxu0 %v10266_v31  ;;  %v2446_v28 = vld [vmem:[#allocation7 + $0xf0] sm:$0xff]  ;;  %v2443_v30 = vld [vmem:[#allocation7 + $0xd8] sm:$0xff] }
 0x37f   :  { %v2447_v31 = vld [vmem:[#allocation7 + $0xf8] sm:$0xff]  ;;  %v10068_v34 = vcombine.high %v2442_v17, %v2446_v28  ;;  %v10067_v41 = vcombine.low %v2442_v17, %v2446_v28 }
 0x380   :  { %v10070_v36 = vcombine.high %v2443_v30, %v2447_v31  ;;  %v2499_v17 = vld [vmem:[#allocation7 + $0x298] sm:$0xff] }
 0x381   :  { %4050 = vmatpush1.bf16.msra.mxu1 %v10263_v37  ;;  %4132 = vmatpush1.bf16.msra.mxu0 %v10265_v38  ;;  %v2450_v37 = vld [vmem:[#allocation7 + $0x110] sm:$0xff]  ;;  %v2503_v28 = vld [vmem:[#allocation7 + $0x2b8] sm:$0xff] }
 0x382   :  { %4051 = vmatprep.subr.bf16.mxu1 %v10272_v42  ;;  %4133 = vmatprep.subr.bf16.mxu0 %v10274_v43  ;;  %v2454_v38 = vld [vmem:[#allocation7 + $0x130] sm:$0xff]  ;;  %v10069_v42 = vcombine.low %v2443_v30, %v2447_v31  ;;  %v10117_v31 = vcombine.low %v2491_v18, %v2495_v19  ;;  %v2523_v53 = vld [vmem:[#allocation7 + $0x358] sm:$0xff] }
 0x383   :  { %v10076_v43 = vcombine.high %v2450_v37, %v2454_v38  ;;  %v2527_v29 = vld [vmem:[#allocation7 + $0x378] sm:$0xff] }
 0x384   :  { %v10149_v35 = vcombine.low %v2523_v53, %v2527_v29 }
 0x385   :  { %4052 = vmatpush1.bf16.msra.mxu1 %v10271_v21  ;;  %4134 = vmatpush1.bf16.msra.mxu0 %v10273_v49  ;;  %v2463_v21 = vld [vmem:[#allocation7 + $0x178] sm:$0xff]  ;;  %v10075_v49 = vcombine.low %v2450_v37, %v2454_v38 }
 0x386   :  { %4053 = vmatprep.subr.bf16.mxu1 %v10280_v22  ;;  %4135 = vmatprep.subr.bf16.mxu0 %v10282_v51  ;;  %v10084_v22 = vcombine.high %v2458_v45, %v2462_v47  ;;  %v10086_v51 = vcombine.high %v2459_v48, %v2463_v21  ;;  %v2507_v37 = vld [vmem:[#allocation7 + $0x2d8] sm:$0xff] }
 0x387   :  { %v2511_v38 = vld [vmem:[#allocation7 + $0x2f8] sm:$0xff] }
 0x389   :  { %4054 = vmatpush1.bf16.msra.mxu1 %v10279_v58  ;;  %4136 = vmatpush1.bf16.msra.mxu0 %v10281_v59  ;;  %v10083_v58 = vcombine.low %v2458_v45, %v2462_v47  ;;  %v10085_v59 = vcombine.low %v2459_v48, %v2463_v21  ;;  %v2515_v45 = vld [vmem:[#allocation7 + $0x318] sm:$0xff]  ;;  %v10133_v21 = vcombine.low %v2507_v37, %v2511_v38 }
 0x38a   :  { %4055 = vmatprep.subr.bf16.mxu1 %v10288_v61  ;;  %4137 = vmatprep.subr.bf16.mxu0 %v10290_v62  ;;  %v10094_v61 = vcombine.high %v2467_v54, %v2471_v55  ;;  %v2474_v62 = vld [vmem:[#allocation7 + $0x1d0] sm:$0xff]  ;;  %v2519_v47 = vld [vmem:[#allocation7 + $0x338] sm:$0xff] }
 0x38b   :  { %v10099_v10 = vcombine.low %v2474_v62, %v2478_v63 }
 0x38d   :  { %4056 = vmatpush1.bf16.msra.mxu1 %v10287_v3  ;;  %4138 = vmatpush1.bf16.msra.mxu0 %v10289_v4  ;;  %v10093_v3 = vcombine.low %v2467_v54, %v2471_v55  ;;  %v10100_v4 = vcombine.high %v2474_v62, %v2478_v63  ;;  %v10141_v55 = vcombine.low %v2515_v45, %v2519_v47  ;;  %v2531_v62 = vld [vmem:[#allocation7 + $0x398] sm:$0xff] }
 0x38e   :  { %4148 = vmatprep.subr.bf16.mxu1 %v10044_v6  ;;  %4230 = vmatprep.subr.bf16.mxu0 %v10046_v7  ;;  %v2482_v6 = vld [vmem:[#allocation7 + $0x210] sm:$0xff]  ;;  %v2535_v63 = vld [vmem:[#allocation7 + $0x3b8] sm:$0xff] }
 0x38f   :  { %v2486_v7 = vld [vmem:[#allocation7 + $0x230] sm:$0xff] }
 0x390   :  { %4058 = vmatmul.mubr.bf16.vlgmr.msra.gmra.mrb[20].mxu1 %v13051_v13  ;;  %4140 = vmatmul.mubr.bf16.vlgmr.msra.gmra.mrb[8].mxu0 %v13051_v13  ;;  %v10107_v20 = vcombine.low %v2482_v6, %v2486_v7 }
 0x391   :  { %4149 = vmatpush1.bf16.msra.mxu1 %v10043_v12  ;;  %4180 = vmatprep.mubr.bf16.mxu1 %v13034_v56  ;;  %v10108_v12 = vcombine.high %v2482_v6, %v2486_v7  ;;  %v2539_v6 = vld [vmem:[#allocation7 + $0x3d8] sm:$0xff] }
 0x392   :  { %4231 = vmatpush1.bf16.msra.mxu0 %v10045_v14  ;;  %4262 = vmatprep.mubr.bf16.mxu0 %v13034_v56  ;;  %v2451_v56 = vld [vmem:[#allocation7 + $0x118] sm:$0xff]  ;;  %v10110_v14 = vcombine.high %v2483_v8, %v2487_v9  ;;  %v10157_v9 = vcombine.low %v2531_v62, %v2535_v63 }
 0x393   :  { %4150 = vmatprep.subr.bf16.mxu1 %v10052_v15  ;;  %4232 = vmatprep.subr.bf16.mxu0 %v10054_v16  ;;  %v10078_v44 = vcombine.high %v2451_v56, %v2455_v39  ;;  %v10077_v50 = vcombine.low %v2451_v56, %v2455_v39  ;;  %v2490_v15 = vld [vmem:[#allocation7 + $0x250] sm:$0xff]  ;;  %v10125_v39 = vcombine.low %v2499_v17, %v2503_v28  ;;  %v2543_v7 = vld [vmem:[#allocation7 + $0x3f8] sm:$0xff] }
 0x394   :  { %v2494_v16 = vld [vmem:[#allocation7 + $0x270] sm:$0xff] }
 0x395   :  { %4151 = vmatpush1.bf16.msra.mxu1 %v10051_v24  ;;  %v10116_v24 = vcombine.high %v2490_v15, %v2494_v16  ;;  %v10115_v30 = vcombine.low %v2490_v15, %v2494_v16  ;;  %v2547_v15 = vld [vmem:[#allocation7 + $0x418] sm:$0xff] }
 0x396   :  { %4233 = vmatpush1.bf16.msra.mxu0 %v10053_v25  ;;  %4152 = vmatprep.subr.bf16.mxu1 %v10060_v26  ;;  %v10118_v25 = vcombine.high %v2491_v18, %v2495_v19  ;;  %v2498_v26 = vld [vmem:[#allocation7 + $0x290] sm:$0xff]  ;;  %v2551_v16 = vld [vmem:[#allocation7 + $0x438] sm:$0xff]  ;;  %v10165_v19 = vcombine.low %v2539_v6, %v2543_v7 }
 0x397   :  { %4234 = vmatprep.subr.bf16.mxu0 %v10062_v27  ;;  %v2502_v27 = vld [vmem:[#allocation7 + $0x2b0] sm:$0xff] }
 0x398   :  { %v10123_v56 = vcombine.low %v2498_v26, %v2502_v27 }
 0x399   :  { %4153 = vmatpush1.bf16.msra.mxu1 %v10059_v32  ;;  %v10124_v32 = vcombine.high %v2498_v26, %v2502_v27  ;;  %v2555_v27 = vld [vmem:[#allocation7 + $0x458] sm:$0xff] }
 0x39a   :  { %4235 = vmatpush1.bf16.msra.mxu0 %v10061_v33  ;;  %4154 = vmatprep.subr.bf16.mxu1 %v10068_v34  ;;  %v10126_v33 = vcombine.high %v2499_v17, %v2503_v28  ;;  %v2506_v34 = vld [vmem:[#allocation7 + $0x2d0] sm:$0xff]  ;;  %v2559_v17 = vld [vmem:[#allocation7 + $0x478] sm:$0xff]  ;;  %v10173_v28 = vcombine.low %v2547_v15, %v2551_v16 }
 0x39b   :  { %4236 = vmatprep.subr.bf16.mxu0 %v10070_v36  ;;  %v2510_v36 = vld [vmem:[#allocation7 + $0x2f0] sm:$0xff] }
 0x39c   :  { %v10131_v48 = vcombine.low %v2506_v34, %v2510_v36 }
 0x39d   :  { %4155 = vmatpush1.bf16.msra.mxu1 %v10067_v41  ;;  %v10132_v41 = vcombine.high %v2506_v34, %v2510_v36  ;;  %v2563_v34 = vld [vmem:[#allocation7 + $0x498] sm:$0xff] }
 0x39e   :  { %4237 = vmatpush1.bf16.msra.mxu0 %v10069_v42  ;;  %4156 = vmatprep.subr.bf16.mxu1 %v10076_v43  ;;  %v10134_v42 = vcombine.high %v2507_v37, %v2511_v38  ;;  %v2514_v43 = vld [vmem:[#allocation7 + $0x310] sm:$0xff]  ;;  %v2567_v36 = vld [vmem:[#allocation7 + $0x4b8] sm:$0xff]  ;;  %v10181_v38 = vcombine.low %v2555_v27, %v2559_v17 }
 0x39f   :  { %4238 = vmatprep.subr.bf16.mxu0 %v10078_v44  ;;  %v2518_v44 = vld [vmem:[#allocation7 + $0x330] sm:$0xff] }
 0x3a0   :  { %v10139_v54 = vcombine.low %v2514_v43, %v2518_v44 }
 0x3a1   :  { %4157 = vmatpush1.bf16.msra.mxu1 %v10075_v49  ;;  %v10140_v49 = vcombine.high %v2514_v43, %v2518_v44  ;;  %v2571_v43 = vld [vmem:[#allocation7 + $0x4d8] sm:$0xff] }
 0x3a2   :  { %4239 = vmatpush1.bf16.msra.mxu0 %v10077_v50  ;;  %4158 = vmatprep.subr.bf16.mxu1 %v10084_v22  ;;  %v10142_v50 = vcombine.high %v2515_v45, %v2519_v47  ;;  %v2522_v22 = vld [vmem:[#allocation7 + $0x350] sm:$0xff]  ;;  %v2575_v44 = vld [vmem:[#allocation7 + $0x4f8] sm:$0xff] }
 0x3a3   :  { %4240 = vmatprep.subr.bf16.mxu0 %v10086_v51  ;;  %v2526_v51 = vld [vmem:[#allocation7 + $0x370] sm:$0xff] }
 0x3a4   :  { %v10147_v1 = vcombine.low %v2522_v22, %v2526_v51 }
 0x3a5   :  { %4159 = vmatpush1.bf16.msra.mxu1 %v10083_v58  ;;  %v10148_v58 = vcombine.high %v2522_v22, %v2526_v51  ;;  %v2583_v22 = vld [vmem:[#allocation7 + $0x538] sm:$0xff]  ;;  %v10197_v51 = vcombine.low %v2571_v43, %v2575_v44 }
 0x3a6   :  { %4241 = vmatpush1.bf16.msra.mxu0 %v10085_v59  ;;  %4160 = vmatprep.subr.bf16.mxu1 %v10092_v60  ;;  %v10150_v59 = vcombine.high %v2523_v53, %v2527_v29  ;;  %v2530_v60 = vld [vmem:[#allocation7 + $0x390] sm:$0xff] }
 0x3a7   :  { %4242 = vmatprep.subr.bf16.mxu0 %v10094_v61  ;;  %v2534_v61 = vld [vmem:[#allocation7 + $0x3b0] sm:$0xff] }
 0x3a8   :  { %v10155_v8 = vcombine.low %v2530_v60, %v2534_v61 }
 0x3a9   :  { %4161 = vmatpush1.bf16.msra.mxu1 %v10091_v2  ;;  %v10156_v2 = vcombine.high %v2530_v60, %v2534_v61 }
 0x3aa   :  { %4243 = vmatpush1.bf16.msra.mxu0 %v10093_v3  ;;  %4162 = vmatprep.subr.bf16.mxu1 %v10100_v4  ;;  %v10158_v3 = vcombine.high %v2531_v62, %v2535_v63  ;;  %v2538_v4 = vld [vmem:[#allocation7 + $0x3d0] sm:$0xff] }
 0x3ab   :  { %4244 = vmatprep.subr.bf16.mxu0 %v10102_v5  ;;  %v2542_v5 = vld [vmem:[#allocation7 + $0x3f0] sm:$0xff] }
 0x3ac   :  { %v10163_v18 = vcombine.low %v2538_v4, %v2542_v5 }
 0x3ad   :  { %4163 = vmatpush1.bf16.msra.mxu1 %v10099_v10  ;;  %v10164_v10 = vcombine.high %v2538_v4, %v2542_v5 }
 0x3ae   :  { %4245 = vmatpush1.bf16.msra.mxu0 %v10101_v11  ;;  %4164 = vmatprep.subr.bf16.mxu1 %v10108_v12  ;;  %v10166_v11 = vcombine.high %v2539_v6, %v2543_v7  ;;  %v2546_v12 = vld [vmem:[#allocation7 + $0x410] sm:$0xff] }
 0x3af   :  { %4246 = vmatprep.subr.bf16.mxu0 %v10110_v14  ;;  %v2550_v14 = vld [vmem:[#allocation7 + $0x430] sm:$0xff] }
 0x3b0   :  { %v10171_v26 = vcombine.low %v2546_v12, %v2550_v14 }
 0x3b1   :  { %4165 = vmatpush1.bf16.msra.mxu1 %v10107_v20  ;;  %v10172_v20 = vcombine.high %v2546_v12, %v2550_v14 }
 0x3b2   :  { %4247 = vmatpush1.bf16.msra.mxu0 %v10109_v23  ;;  %4166 = vmatprep.subr.bf16.mxu1 %v10116_v24  ;;  %v10174_v23 = vcombine.high %v2547_v15, %v2551_v16  ;;  %v2554_v24 = vld [vmem:[#allocation7 + $0x450] sm:$0xff] }
 0x3b3   :  { %4248 = vmatprep.subr.bf16.mxu0 %v10118_v25  ;;  %v2558_v25 = vld [vmem:[#allocation7 + $0x470] sm:$0xff] }
 0x3b4   :  { %v10179_v37 = vcombine.low %v2554_v24, %v2558_v25 }
 0x3b5   :  { %4167 = vmatpush1.bf16.msra.mxu1 %v10115_v30  ;;  %v10180_v30 = vcombine.high %v2554_v24, %v2558_v25 }
 0x3b6   :  { %4249 = vmatpush1.bf16.msra.mxu0 %v10117_v31  ;;  %4168 = vmatprep.subr.bf16.mxu1 %v10124_v32  ;;  %v2562_v31 = vld [vmem:[#allocation7 + $0x490] sm:$0xff] }
 0x3b7   :  { %4250 = vmatprep.subr.bf16.mxu0 %v10126_v33  ;;  %v2566_v32 = vld [vmem:[#allocation7 + $0x4b0] sm:$0xff]  ;;  %v10182_v33 = vcombine.high %v2555_v27, %v2559_v17 }
 0x3b8   :  { %v10187_v45 = vcombine.low %v2562_v31, %v2566_v32  ;;  %v2618_v17 = vld [vmem:[#allocation7 + $0x650] sm:$0xff] }
 0x3b9   :  { %4169 = vmatpush1.bf16.msra.mxu1 %v10123_v56  ;;  %v10188_v56 = vcombine.high %v2562_v31, %v2566_v32  ;;  %v2623_v31 = vld [vmem:[#allocation7 + $0x678] sm:$0xff] }
 0x3ba   :  { %4251 = vmatpush1.bf16.msra.mxu0 %v10125_v39  ;;  %4170 = vmatprep.subr.bf16.mxu1 %v10132_v41  ;;  %v10190_v39 = vcombine.high %v2563_v34, %v2567_v36  ;;  %v2570_v41 = vld [vmem:[#allocation7 + $0x4d0] sm:$0xff] }
 0x3bb   :  { %4252 = vmatprep.subr.bf16.mxu0 %v10134_v42  ;;  %v2574_v42 = vld [vmem:[#allocation7 + $0x4f0] sm:$0xff] }
 0x3bc   :  { %v10196_v47 = vcombine.high %v2570_v41, %v2574_v42 }
 0x3bd   :  { %4171 = vmatpush1.bf16.msra.mxu1 %v10131_v48  ;;  %v10198_v48 = vcombine.high %v2571_v43, %v2575_v44 }
 0x3be   :  { %4253 = vmatpush1.bf16.msra.mxu0 %v10133_v21  ;;  %4172 = vmatprep.subr.bf16.mxu1 %v10140_v49  ;;  %v2578_v21 = vld [vmem:[#allocation7 + $0x510] sm:$0xff] }
 0x3bf   :  { %4254 = vmatprep.subr.bf16.mxu0 %v10142_v50  ;;  %v2582_v49 = vld [vmem:[#allocation7 + $0x530] sm:$0xff]  ;;  %v2579_v50 = vld [vmem:[#allocation7 + $0x518] sm:$0xff] }
 0x3c0   :  { %v10204_v53 = vcombine.high %v2578_v21, %v2582_v49  ;;  %v10206_v29 = vcombine.high %v2579_v50, %v2583_v22  ;;  %v10203_v60 = vcombine.low %v2578_v21, %v2582_v49  ;;  %v10205_v61 = vcombine.low %v2579_v50, %v2583_v22 }
 0x3c1   :  { %4173 = vmatpush1.bf16.msra.mxu1 %v10139_v54  ;;  %v2586_v54 = vld [vmem:[#allocation7 + $0x550] sm:$0xff] }
 0x3c2   :  { %4255 = vmatpush1.bf16.msra.mxu0 %v10141_v55  ;;  %4174 = vmatprep.subr.bf16.mxu1 %v10148_v58  ;;  %v2590_v55 = vld [vmem:[#allocation7 + $0x570] sm:$0xff]  ;;  %v2587_v58 = vld [vmem:[#allocation7 + $0x558] sm:$0xff] }
 0x3c3   :  { %4256 = vmatprep.subr.bf16.mxu0 %v10150_v59  ;;  %v2591_v59 = vld [vmem:[#allocation7 + $0x578] sm:$0xff]  ;;  %v10212_v62 = vcombine.high %v2586_v54, %v2590_v55  ;;  %v10211_v4 = vcombine.low %v2586_v54, %v2590_v55 }
 0x3c4   :  { %v10214_v63 = vcombine.high %v2587_v58, %v2591_v59  ;;  %v10213_v5 = vcombine.low %v2587_v58, %v2591_v59 }
 0x3c5   :  { %4175 = vmatpush1.bf16.msra.mxu1 %v10147_v1  ;;  %v2594_v1 = vld [vmem:[#allocation7 + $0x590] sm:$0xff] }
 0x3c6   :  { %4257 = vmatpush1.bf16.msra.mxu0 %v10149_v35  ;;  %4176 = vmatprep.subr.bf16.mxu1 %v10156_v2  ;;  %v2598_v35 = vld [vmem:[#allocation7 + $0x5b0] sm:$0xff]  ;;  %v2595_v2 = vld [vmem:[#allocation7 + $0x598] sm:$0xff] }
 0x3c7   :  { %4258 = vmatprep.subr.bf16.mxu0 %v10158_v3  ;;  %v2599_v3 = vld [vmem:[#allocation7 + $0x5b8] sm:$0xff]  ;;  %v10220_v6 = vcombine.high %v2594_v1, %v2598_v35  ;;  %v10219_v12 = vcombine.low %v2594_v1, %v2598_v35 }
 0x3c8   :  { %v10222_v7 = vcombine.high %v2595_v2, %v2599_v3  ;;  %v10221_v14 = vcombine.low %v2595_v2, %v2599_v3 }
 0x3c9   :  { %4177 = vmatpush1.bf16.msra.mxu1 %v10155_v8  ;;  %v2602_v8 = vld [vmem:[#allocation7 + $0x5d0] sm:$0xff] }
 0x3ca   :  { %4259 = vmatpush1.bf16.msra.mxu0 %v10157_v9  ;;  %4178 = vmatprep.subr.bf16.mxu1 %v10164_v10  ;;  %v2606_v9 = vld [vmem:[#allocation7 + $0x5f0] sm:$0xff]  ;;  %v2603_v10 = vld [vmem:[#allocation7 + $0x5d8] sm:$0xff] }
 0x3cb   :  { %4260 = vmatprep.subr.bf16.mxu0 %v10166_v11  ;;  %v2607_v11 = vld [vmem:[#allocation7 + $0x5f8] sm:$0xff]  ;;  %v10228_v15 = vcombine.high %v2602_v8, %v2606_v9  ;;  %v10227_v24 = vcombine.low %v2602_v8, %v2606_v9 }
 0x3cc   :  { %v10230_v16 = vcombine.high %v2603_v10, %v2607_v11  ;;  %v10229_v25 = vcombine.low %v2603_v10, %v2607_v11 }
 0x3cd   :  { %4179 = vmatpush1.bf16.msra.mxu1 %v10163_v18  ;;  %v2610_v18 = vld [vmem:[#allocation7 + $0x610] sm:$0xff] }
 0x3ce   :  { %4261 = vmatpush1.bf16.msra.mxu0 %v10165_v19  ;;  %4189 = vmatprep.subr.bf16.mxu1 %v10172_v20  ;;  %v2614_v19 = vld [vmem:[#allocation7 + $0x630] sm:$0xff]  ;;  %v2611_v20 = vld [vmem:[#allocation7 + $0x618] sm:$0xff] }
 0x3cf   :  { %4271 = vmatprep.subr.bf16.mxu0 %v10174_v23  ;;  %v2615_v23 = vld [vmem:[#allocation7 + $0x638] sm:$0xff]  ;;  %v10235_v32 = vcombine.low %v2610_v18, %v2614_v19 }
 0x3d0   :  { %4181 = vmatmul.mubr.bf16.vlgmr.msra.gmra.mrb[24].mxu1 %v13036_v57  ;;  %v10238_v27 = vcombine.high %v2611_v20, %v2615_v23 }
 0x3d1   :  { %4263 = vmatmul.mubr.bf16.vlgmr.msra.gmra.mrb[12].mxu0 %v13036_v57  ;;  %4190 = vmatpush1.bf16.msra.mxu1 %v10171_v26  ;;  %v10189_v57 = vcombine.low %v2563_v34, %v2567_v36  ;;  %v10236_v26 = vcombine.high %v2610_v18, %v2614_v19 }
 0x3d2   :  { %4221 = vmatprep.mubr.bf16.mxu1 %v13040_v0  ;;  %4272 = vmatpush1.bf16.msra.mxu0 %v10173_v28  ;;  %v2622_v28 = vld [vmem:[#allocation7 + $0x670] sm:$0xff] }
 0x3d3   :  { %4303 = vmatprep.mubr.bf16.mxu0 %v13040_v0  ;;  %4191 = vmatprep.subr.bf16.mxu1 %v10180_v30  ;;  %v10195_v0 = vcombine.low %v2570_v41, %v2574_v42  ;;  %v2619_v30 = vld [vmem:[#allocation7 + $0x658] sm:$0xff]  ;;  %v10244_v34 = vcombine.high %v2618_v17, %v2622_v28  ;;  %v10243_v41 = vcombine.low %v2618_v17, %v2622_v28  ;;  %v11722_v17 = vld [vmem:[#allocation8 + $0x48] sm:$0xff]   ;;  %v11753_v28 = vld [vmem:[#allocation8 + $0x1c0] sm:$0xff]  }
 0x3d4   :  { %4273 = vmatprep.subr.bf16.mxu0 %v10182_v33  ;;  %v10237_v33 = vcombine.low %v2611_v20, %v2615_v23  ;;  %v10246_v36 = vcombine.high %v2619_v30, %v2623_v31  ;;  %v10245_v42 = vcombine.low %v2619_v30, %v2623_v31  ;;  %v11755_v30 = vld [vmem:[#allocation8 + $0x180] sm:$0xff]   ;;  %v11757_v31 = vld [vmem:[#allocation8 + $0x1c8] sm:$0xff]  }
 0x3d5   :  { %4192 = vmatpush1.bf16.msra.mxu1 %v10179_v37  ;;  %v2626_v37 = vld [vmem:[#allocation7 + $0x690] sm:$0xff] }
 0x3d6   :  { %4274 = vmatpush1.bf16.msra.mxu0 %v10181_v38  ;;  %4193 = vmatprep.subr.bf16.mxu1 %v10188_v56  ;;  %v2630_v38 = vld [vmem:[#allocation7 + $0x6b0] sm:$0xff]  ;;  %v2627_v56 = vld [vmem:[#allocation7 + $0x698] sm:$0xff] }
 0x3d7   :  { %4275 = vmatprep.subr.bf16.mxu0 %v10190_v39  ;;  %v2631_v39 = vld [vmem:[#allocation7 + $0x6b8] sm:$0xff]  ;;  %v10252_v43 = vcombine.high %v2626_v37, %v2630_v38  ;;  %v10251_v21 = vcombine.low %v2626_v37, %v2630_v38  ;;  %v11725_v37 = vld [vmem:[#allocation8 + $0x10] sm:$0xff]  }
 0x3d8   :  { %v10254_v44 = vcombine.high %v2627_v56, %v2631_v39  ;;  %v10253_v49 = vcombine.low %v2627_v56, %v2631_v39  ;;  %v11726_v38 = vld [vmem:[#allocation8 + $0x58] sm:$0xff]   ;;  %v11763_v56 = vld [vmem:[#allocation8 + $0x190] sm:$0xff]  }
 0x3d9   :  { %4194 = vmatpush1.bf16.msra.mxu1 %v10187_v45  ;;  %v2634_v45 = vld [vmem:[#allocation7 + $0x6d0] sm:$0xff]  ;;  %v11765_v39 = vld [vmem:[#allocation8 + $0x1d8] sm:$0xff]  }
 0x3da   :  { %4276 = vmatpush1.bf16.msra.mxu0 %v10189_v57  ;;  %4195 = vmatprep.subr.bf16.mxu1 %v10196_v47  ;;  %v2638_v57 = vld [vmem:[#allocation7 + $0x6f0] sm:$0xff]  ;;  %v2635_v47 = vld [vmem:[#allocation7 + $0x6d8] sm:$0xff] }
 0x3db   :  { %4277 = vmatprep.subr.bf16.mxu0 %v10198_v48  ;;  %v2639_v48 = vld [vmem:[#allocation7 + $0x6f8] sm:$0xff]  ;;  %v10260_v50 = vcombine.high %v2634_v45, %v2638_v57  ;;  %v10259_v54 = vcombine.low %v2634_v45, %v2638_v57  ;;  %v11730_v45 = vld [vmem:[#allocation8 + $0x68] sm:$0xff]   ;;  %v11771_v57 = vld [vmem:[#allocation8 + $0x1a0] sm:$0xff]  }
 0x3dc   :  { %v10262_v22 = vcombine.high %v2635_v47, %v2639_v48  ;;  %v10261_v55 = vcombine.low %v2635_v47, %v2639_v48  ;;  %v11773_v47 = vld [vmem:[#allocation8 + $0x1e8] sm:$0xff]  }
 0x3dd   :  { %4196 = vmatpush1.bf16.msra.mxu1 %v10195_v0  ;;  %v2642_v0 = vld [vmem:[#allocation7 + $0x710] sm:$0xff]  ;;  %v11731_v48 = vld [vmem:[#allocation8 + $0x28] sm:$0xff]  }
 0x3de   :  { %4278 = vmatpush1.bf16.msra.mxu0 %v10197_v51  ;;  %4197 = vmatprep.subr.bf16.mxu1 %v10204_v53  ;;  %v2646_v51 = vld [vmem:[#allocation7 + $0x730] sm:$0xff]  ;;  %v2643_v53 = vld [vmem:[#allocation7 + $0x718] sm:$0xff] }
 0x3df   :  { %4279 = vmatprep.subr.bf16.mxu0 %v10206_v29  ;;  %v2647_v29 = vld [vmem:[#allocation7 + $0x738] sm:$0xff]  ;;  %v10268_v58 = vcombine.high %v2642_v0, %v2646_v51  ;;  %v10267_v1 = vcombine.low %v2642_v0, %v2646_v51  ;;  %v11736_v0 = vld [vmem:[#allocation8 + $0xc0] sm:$0xff]   ;;  %v13064_v51 = vsub.s32 2, %v12997_v46 }
 0x3e0   :  { %v10270_v59 = vcombine.high %v2643_v53, %v2647_v29  ;;  %v10269_v35 = vcombine.low %v2643_v53, %v2647_v29  ;;  %v13069_v53 = vld [vmem:[%s13277_s9] sm:$0xff] }
 0x3e1   :  { %4198 = vmatpush1.bf16.msra.mxu1 %v10203_v60  ;;  %v2650_v60 = vld [vmem:[#allocation7 + $0x750] sm:$0xff]  ;;  %v2675_v29 = vrot.slane %v13069_v53, %v13064_v51 }
 0x3e2   :  { %4280 = vmatpush1.bf16.msra.mxu0 %v10205_v61  ;;  %4199 = vmatprep.subr.bf16.mxu1 %v10212_v62  ;;  %v2654_v61 = vld [vmem:[#allocation7 + $0x770] sm:$0xff]  ;;  %v2651_v62 = vld [vmem:[#allocation7 + $0x758] sm:$0xff] }
 0x3e3   :  { %4281 = vmatprep.subr.bf16.mxu0 %v10214_v63  ;;  %v2655_v63 = vld [vmem:[#allocation7 + $0x778] sm:$0xff]  ;;  %v10276_v2 = vcombine.high %v2650_v60, %v2654_v61  ;;  %v10275_v8 = vcombine.low %v2650_v60, %v2654_v61 }
 0x3e4   :  { %v10278_v3 = vcombine.high %v2651_v62, %v2655_v63  ;;  %v10277_v9 = vcombine.low %v2651_v62, %v2655_v63  ;;  %v11775_v62 = vld [vmem:[#allocation8 + $0x1a8] sm:$0xff]  }
 0x3e5   :  { %4200 = vmatpush1.bf16.msra.mxu1 %v10211_v4  ;;  %v2658_v4 = vld [vmem:[#allocation7 + $0x790] sm:$0xff] }
 0x3e6   :  { %4282 = vmatpush1.bf16.msra.mxu0 %v10213_v5  ;;  %4201 = vmatprep.subr.bf16.mxu1 %v10220_v6  ;;  %v2662_v5 = vld [vmem:[#allocation7 + $0x7b0] sm:$0xff]  ;;  %v2659_v6 = vld [vmem:[#allocation7 + $0x798] sm:$0xff] }
 0x3e7   :  { %4283 = vmatprep.subr.bf16.mxu0 %v10222_v7  ;;  %v2663_v7 = vld [vmem:[#allocation7 + $0x7b8] sm:$0xff]  ;;  %v10284_v10 = vcombine.high %v2658_v4, %v2662_v5  ;;  %v10283_v18 = vcombine.low %v2658_v4, %v2662_v5 }
 0x3e8   :  { %v10286_v11 = vcombine.high %v2659_v6, %v2663_v7  ;;  %v10285_v19 = vcombine.low %v2659_v6, %v2663_v7 }
 0x3e9   :  { %4202 = vmatpush1.bf16.msra.mxu1 %v10219_v12  ;;  %v2666_v12 = vld [vmem:[#allocation7 + $0x7d0] sm:$0xff] }
 0x3ea   :  { %4284 = vmatpush1.bf16.msra.mxu0 %v10221_v14  ;;  %4203 = vmatprep.subr.bf16.mxu1 %v10228_v15  ;;  %v2670_v14 = vld [vmem:[#allocation7 + $0x7f0] sm:$0xff]  ;;  %v2667_v15 = vld [vmem:[#allocation7 + $0x7d8] sm:$0xff] }
 0x3eb   :  { %4285 = vmatprep.subr.bf16.mxu0 %v10230_v16  ;;  %v2671_v16 = vld [vmem:[#allocation7 + $0x7f8] sm:$0xff]  ;;  %v10292_v20 = vcombine.high %v2666_v12, %v2670_v14 }
 0x3ec   :  { %v10294_v23 = vcombine.high %v2667_v15, %v2671_v16 }
 0x3ed   :  { %4204 = vmatpush1.bf16.msra.mxu1 %v10227_v24  ;;  %v10291_v24 = vcombine.low %v2666_v12, %v2670_v14  ;;  %v11779_v14 = vld [vmem:[#allocation8 + $0x1b0] sm:$0xff]  }
 0x3ee   :  { %4286 = vmatpush1.bf16.msra.mxu0 %v10229_v25  ;;  %4205 = vmatprep.subr.bf16.mxu1 %v10236_v26  ;;  %v10293_v25 = vcombine.low %v2667_v15, %v2671_v16  ;;  %v11720_v26 = vld [vmem:[#allocation8 + $0x40] sm:$0xff]  }
 0x3ef   :  { %4287 = vmatprep.subr.bf16.mxu0 %v10238_v27  ;;  %v11721_v27 = vld [vmem:[#allocation8] sm:$0xff]  }
 0x3f1   :  { %4206 = vmatpush1.bf16.msra.mxu1 %v10235_v32  ;;  %v11723_v32 = vld [vmem:[#allocation8 + $0x8] sm:$0xff]  }
 0x3f2   :  { %4288 = vmatpush1.bf16.msra.mxu0 %v10237_v33  ;;  %4207 = vmatprep.subr.bf16.mxu1 %v10244_v34  ;;  %v11724_v33 = vld [vmem:[#allocation8 + $0x50] sm:$0xff]   ;;  %v11759_v34 = vld [vmem:[#allocation8 + $0x188] sm:$0xff]  }
 0x3f3   :  { %4289 = vmatprep.subr.bf16.mxu0 %v10246_v36  ;;  %v11761_v36 = vld [vmem:[#allocation8 + $0x1d0] sm:$0xff]  }
 0x3f5   :  { %4208 = vmatpush1.bf16.msra.mxu1 %v10243_v41  ;;  %v11727_v41 = vld [vmem:[#allocation8 + $0x18] sm:$0xff]  }
 0x3f6   :  { %4290 = vmatpush1.bf16.msra.mxu0 %v10245_v42  ;;  %4209 = vmatprep.subr.bf16.mxu1 %v10252_v43  ;;  %v11767_v42 = vld [vmem:[#allocation8 + $0x198] sm:$0xff]   ;;  %v11769_v43 = vld [vmem:[#allocation8 + $0x1e0] sm:$0xff]  }
 0x3f7   :  { %4291 = vmatprep.subr.bf16.mxu0 %v10254_v44  ;;  %v11729_v44 = vld [vmem:[#allocation8 + $0x20] sm:$0xff]  }
 0x3f9   :  { %4210 = vmatpush1.bf16.msra.mxu1 %v10251_v21  ;;  %v11732_v21 = vld [vmem:[#allocation8 + $0x70] sm:$0xff]  }
 0x3fa   :  { %4292 = vmatpush1.bf16.msra.mxu0 %v10253_v49  ;;  %4211 = vmatprep.subr.bf16.mxu1 %v10260_v50  ;;  %v11733_v49 = vld [vmem:[#allocation8 + $0x30] sm:$0xff]   ;;  %v11734_v50 = vld [vmem:[#allocation8 + $0x78] sm:$0xff]  }
 0x3fb   :  { %4293 = vmatprep.subr.bf16.mxu0 %v10262_v22  ;;  %v11735_v22 = vld [vmem:[#allocation8 + $0x38] sm:$0xff]  }
 0x3fd   :  { %4212 = vmatpush1.bf16.msra.mxu1 %v10259_v54  ;;  %v13076_v54 = vld [vmem:[%s13277_s9 + $0x8] sm:$0xff] }
 0x3fe   :  { %4294 = vmatpush1.bf16.msra.mxu0 %v10261_v55  ;;  %4213 = vmatprep.subr.bf16.mxu1 %v10268_v58  ;;  %v2679_v55 = vrot.slane %v13076_v54, %v13064_v51  ;;  %v13083_v58 = vld [vmem:[%s13277_s9 + $0x18] sm:$0xff] }
 0x3ff   :  { %4295 = vmatprep.subr.bf16.mxu0 %v10270_v59  ;;  %v2687_v59 = vrot.slane %v13083_v58, %v13064_v51 }
 0x401   :  { %4214 = vmatpush1.bf16.msra.mxu1 %v10267_v1 }
 0x402   :  { %4296 = vmatpush1.bf16.msra.mxu0 %v10269_v35  ;;  %4215 = vmatprep.subr.bf16.mxu1 %v10276_v2 }
 0x403   :  { %4297 = vmatprep.subr.bf16.mxu0 %v10278_v3 }
 0x405   :  { %4216 = vmatpush1.bf16.msra.mxu1 %v10275_v8 }
 0x406   :  { %4298 = vmatpush1.bf16.msra.mxu0 %v10277_v9  ;;  %4217 = vmatprep.subr.bf16.mxu1 %v10284_v10 }
 0x407   :  { %4299 = vmatprep.subr.bf16.mxu0 %v10286_v11  ;;  %v11777_v11 = vld [vmem:[#allocation8 + $0x1f0] sm:$0xff]  }
 0x409   :  { %4218 = vmatpush1.bf16.msra.mxu1 %v10283_v18  ;;  %v11781_v18 = vld [vmem:[#allocation8 + $0x1f8] sm:$0xff]  }
 0x40a   :  { %4300 = vmatpush1.bf16.msra.mxu0 %v10285_v19  ;;  %4219 = vmatprep.subr.bf16.mxu1 %v10292_v20  ;;  %v11737_v20 = vld [vmem:[#allocation8 + $0x80] sm:$0xff]  }
 0x40b   :  { %4301 = vmatprep.subr.bf16.mxu0 %v10294_v23  ;;  %v11783_v23 = vld [vmem:[#allocation8 + $0x1b8] sm:$0xff]  }
 0x40d   :  { %4220 = vmatpush1.bf16.msra.mxu1 %v10291_v24 }
 0x40e   :  { %4302 = vmatpush1.bf16.msra.mxu0 %v10293_v25  ;;  %11018 = vmatprep.subr.bf16.mxu1 %v11720_v26  ;;  %v11738_v25 = vld [vmem:[#allocation8 + $0xc8] sm:$0xff]  }
 0x40f   :  { %11084 = vmatprep.subr.bf16.mxu0 %v11753_v28  ;;  %v11741_v28 = vld [vmem:[#allocation8 + $0x90] sm:$0xff]  }
 0x410   :  { %4222 = vmatmul.mubr.bf16.vlgmr.msra.gmra.mrb[24].mxu1 %v13051_v13 }
 0x411   :  { %4304 = vmatmul.mubr.bf16.vlgmr.msra.gmra.mrb[12].mxu0 %v13051_v13  ;;  %11019 = vmatpush3.bf16.msra.mxu1 %v11721_v27  ;;  %v11728_v13 = vld [vmem:[#allocation8 + $0x60] sm:$0xff]   ;;  %v11739_v27 = vld [vmem:[#allocation8 + $0x88] sm:$0xff]  }
 0x412   :  { %11020 = vmatprep.subr.bf16.mxu1 %v11722_v17  ;;  %11085 = vmatpush3.bf16.msra.mxu0 %v11755_v30  ;;  %v11740_v17 = vld [vmem:[#allocation8 + $0xd0] sm:$0xff]   ;;  %v11742_v30 = vld [vmem:[#allocation8 + $0xd8] sm:$0xff]  }
 0x413   :  { %11086 = vmatprep.subr.bf16.mxu0 %v11757_v31  ;;  %v11743_v31 = vld [vmem:[#allocation8 + $0x98] sm:$0xff]  }
 0x415   :  { %11021 = vmatpush3.bf16.msra.mxu1 %v11723_v32  ;;  %v11744_v32 = vld [vmem:[#allocation8 + $0xe0] sm:$0xff]  }
 0x416   :  { %11022 = vmatprep.subr.bf16.mxu1 %v11724_v33  ;;  %11087 = vmatpush3.bf16.msra.mxu0 %v11759_v34  ;;  %v11745_v33 = vld [vmem:[#allocation8 + $0xa0] sm:$0xff]   ;;  %v12540_v34 = vld [vmem:[%s13277_s9 + $0x10] sm:$0xff] }
 0x417   :  { %11088 = vmatprep.subr.bf16.mxu0 %v11761_v36  ;;  %v2683_v36 = vrot.slane %v12540_v34, %v13064_v51 }
 0x419   :  { %11023 = vmatpush3.bf16.msra.mxu1 %v11725_v37  ;;  %v11746_v37 = vld [vmem:[#allocation8 + $0xe8] sm:$0xff]  }
 0x41a   :  { %11024 = vmatprep.subr.bf16.mxu1 %v11726_v38  ;;  %11089 = vmatpush3.bf16.msra.mxu0 %v11763_v56  ;;  %v11747_v38 = vld [vmem:[#allocation8 + $0xa8] sm:$0xff]  }
 0x41b   :  { %11090 = vmatprep.subr.bf16.mxu0 %v11765_v39  ;;  %v11748_v39 = vld [vmem:[#allocation8 + $0xf0] sm:$0xff]  }
 0x41d   :  { %11025 = vmatpush3.bf16.msra.mxu1 %v11727_v41  ;;  %v11749_v41 = vld [vmem:[#allocation8 + $0xb0] sm:$0xff]  }
 0x41e   :  { %11026 = vmatprep.subr.bf16.mxu1 %v11728_v13  ;;  %11091 = vmatpush3.bf16.msra.mxu0 %v11767_v42  ;;  %v11750_v42 = vld [vmem:[#allocation8 + $0xf8] sm:$0xff]  }
 0x41f   :  { %11092 = vmatprep.subr.bf16.mxu0 %v11769_v43  ;;  %v11751_v43 = vld [vmem:[#allocation8 + $0xb8] sm:$0xff]  }
 0x421   :  { %11027 = vmatpush3.bf16.msra.mxu1 %v11729_v44 }
 0x422   :  { %11028 = vmatprep.subr.bf16.mxu1 %v11730_v45  ;;  %11093 = vmatpush3.bf16.msra.mxu0 %v11771_v57  ;;  %v11752_v45 = vld [vmem:[#allocation8 + $0x140] sm:$0xff]  }
 0x423   :  { %11094 = vmatprep.subr.bf16.mxu0 %v11773_v47  ;;  %v11754_v57 = vld [vmem:[#allocation8 + $0x100] sm:$0xff]  }
 0x425   :  { %11029 = vmatpush3.bf16.msra.mxu1 %v11731_v48  ;;  %v11756_v48 = vld [vmem:[#allocation8 + $0x148] sm:$0xff]  }
 0x426   :  { %11030 = vmatprep.subr.bf16.mxu1 %v11732_v21  ;;  %11095 = vmatpush3.bf16.msra.mxu0 %v11775_v62  ;;  %v11758_v21 = vld [vmem:[#allocation8 + $0x108] sm:$0xff]   ;;  %v11778_v62 = vld [vmem:[#allocation8 + $0x130] sm:$0xff]  }
 0x427   :  { %11096 = vmatprep.subr.bf16.mxu0 %v11777_v11 }
 0x429   :  { %11031 = vmatpush3.bf16.msra.mxu1 %v11733_v49  ;;  %v11760_v49 = vld [vmem:[#allocation8 + $0x150] sm:$0xff]  }
 0x42a   :  { %11032 = vmatprep.subr.bf16.mxu1 %v11734_v50  ;;  %11097 = vmatpush3.bf16.msra.mxu0 %v11779_v14  ;;  %v11762_v50 = vld [vmem:[#allocation8 + $0x110] sm:$0xff]  }
 0x42b   :  { %11098 = vmatprep.subr.bf16.mxu0 %v11781_v18 }
 0x42d   :  { %11033 = vmatpush3.bf16.msra.mxu1 %v11735_v22  ;;  %v11764_v22 = vld [vmem:[#allocation8 + $0x158] sm:$0xff]  }
 0x42e   :  { %11040 = vmatprep.subr.bf16.mxu1 %v11736_v0  ;;  %11099 = vmatpush3.bf16.msra.mxu0 %v11783_v23  ;;  %v11766_v0 = vld [vmem:[#allocation8 + $0x118] sm:$0xff]   ;;  %v5014_v23 = vld [vmem:[#allocation10 + $0x8] sm:$0xff] }
 0x463   :  { %v4059_v60 = vpop.f32.mrb[20].mxu1  ;;  %v4141_v61 = vpop.f32.mrb[8].mxu0 }
 0x464   :  { %v11227_v63 = vadd.f32 %v4059_v60, %v2675_v29  ;;  %v4061_v1 = vpop.f32.mrb[21].mxu1  ;;  %v4143_v35 = vpop.f32.mrb[9].mxu0  ;;  %v11229_v56 = vadd.f32 %v4141_v61, %v2683_v36  ;;  %v11768_v29 = vld [vmem:[#allocation8 + $0x160] sm:$0xff]   ;;  %v11774_v60 = vld [vmem:[#allocation8 + $0x128] sm:$0xff]   ;;  %v11776_v61 = vld [vmem:[#allocation8 + $0x170] sm:$0xff]  }
 0x465   :  { %v11228_v2 = vadd.f32 %v4061_v1, %v2679_v55  ;;  %v11230_v3 = vadd.f32 %v4143_v35, %v2687_v59  ;;  %v4063_v4 = vpop.f32.mrb[22].mxu1  ;;  %v4145_v5 = vpop.f32.mrb[10].mxu0  ;;  %v11770_v55 = vld [vmem:[#allocation8 + $0x120] sm:$0xff]   ;;  %v11772_v59 = vld [vmem:[#allocation8 + $0x168] sm:$0xff]   ;;  %v11782_v1 = vld [vmem:[#allocation8 + $0x138] sm:$0xff]  }
 0x466   :  { %v4312_v6 = vmul.f32 0.01, %v11227_v63  ;;  %v4064_v7 = vpop.f32.mrb[23].mxu1  ;;  %v4146_v8 = vpop.f32.mrb[11].mxu0  ;;  %v4314_v13 = vmul.f32 0.01, %v11229_v56 }
 0x467   :  { %v4313_v9 = vmul.f32 0.01, %v11228_v2  ;;  %v4315_v10 = vmul.f32 0.01, %v11230_v3  ;;  %v150_v35 = vld [vmem:[%s13277_s9 + $0x20] sm:$0xff]  ;;  %v153_v4 = vld [vmem:[%s13277_s9 + $0x38] sm:$0xff] }
 0x468   :  { %v4320_v12 = vmax.f32 %v11227_v63, %v4312_v6  ;;  %v4322_v44 = vmax.f32 %v11229_v56, %v4314_v13  ;;  %v11780_v63 = vld [vmem:[#allocation8 + $0x178] sm:$0xff]   ;;  %v2691_v5 = vrot.slane %v150_v35, %v13064_v51  ;;  %v2703_v8 = vrot.slane %v153_v4, %v13064_v51  ;;  %v5025_v56 = vld [vmem:[#allocation10 + $0x60] sm:$0xff]  ;;  %v5026_v13 = vld [vmem:[#allocation10 + $0x68] sm:$0xff] }
 0x469   :  { %v4321_v15 = vmax.f32 %v11228_v2, %v4313_v9  ;;  %v4323_v16 = vmax.f32 %v11230_v3, %v4315_v10  ;;  %v152_v2 = vld [vmem:[%s13277_s9 + $0x30] sm:$0xff]  ;;  %v151_v3 = vld [vmem:[%s13277_s9 + $0x28] sm:$0xff] }
 0x46a   :  { %v4328_v24 = vpack.c.bf16 %v4320_v12, %v4320_v12  ;;  %v4330_v47 = vpack.c.bf16 %v4322_v44, %v4322_v44  ;;  %v2699_v6 = vrot.slane %v152_v2, %v13064_v51  ;;  %v2695_v7 = vrot.slane %v151_v3, %v13064_v51 }
 0x46b   :  { %v4329_v19 = vpack.c.bf16 %v4321_v15, %v4321_v15  ;;  %v4331_v26 = vpack.c.bf16 %v4323_v16, %v4323_v16 }
 0x46d   :  { %4884 = vmatprep.mubr.bf16.mxu1 %v4329_v19  ;;  %v5013_v19 = vld [vmem:[#allocation10] sm:$0xff] }
 0x46e   :  { %4885 = vmatmul.mubr.bf16.vlgmr.msra.gmra.mrb[28].mxu1 %v4328_v24 }
 0x46f   :  { %11041 = vmatpush3.bf16.msra.mxu1 %v11737_v20  ;;  %4924 = vmatprep.mubr.bf16.mxu1 %v4331_v26  ;;  %v5017_v20 = vld [vmem:[#allocation10 + $0x20] sm:$0xff] }
 0x470   :  { %11042 = vmatprep.subr.bf16.mxu1 %v11738_v25 }
 0x473   :  { %11043 = vmatpush3.bf16.msra.mxu1 %v11739_v27 }
 0x474   :  { %11044 = vmatprep.subr.bf16.mxu1 %v11740_v17  ;;  %v10360_v17 = vcombine.high %v5013_v19, %v5017_v20 }
 0x477   :  { %11045 = vmatpush3.bf16.msra.mxu1 %v11741_v28  ;;  %v5018_v28 = vld [vmem:[#allocation10 + $0x28] sm:$0xff] }
 0x478   :  { %11046 = vmatprep.subr.bf16.mxu1 %v11742_v30 }
 0x47b   :  { %11047 = vmatpush3.bf16.msra.mxu1 %v11743_v31 }
 0x47c   :  { %11048 = vmatprep.subr.bf16.mxu1 %v11744_v32  ;;  %v10362_v32 = vcombine.high %v5014_v23, %v5018_v28 }
 0x47e   :  { %5470 = vmatprep.subr.bf16.mxu0 %v10362_v32  ;;  %v5066_v32 = vld [vmem:[#allocation10 + $0x1a8] sm:$0xff] }
 0x47f   :  { %11049 = vmatpush3.bf16.msra.mxu1 %v11745_v33 }
 0x480   :  { %11050 = vmatprep.subr.bf16.mxu1 %v11746_v37 }
 0x483   :  { %11051 = vmatpush3.bf16.msra.mxu1 %v11747_v38  ;;  %v5021_v38 = vld [vmem:[#allocation10 + $0x40] sm:$0xff] }
 0x484   :  { %11052 = vmatprep.subr.bf16.mxu1 %v11748_v39 }
 0x487   :  { %11053 = vmatpush3.bf16.msra.mxu1 %v11749_v41  ;;  %v5022_v41 = vld [vmem:[#allocation10 + $0x48] sm:$0xff] }
 0x488   :  { %11054 = vmatprep.subr.bf16.mxu1 %v11750_v42 }
 0x48b   :  { %11055 = vmatpush3.bf16.msra.mxu1 %v11751_v43  ;;  %v10359_v43 = vcombine.low %v5013_v19, %v5017_v20 }
 0x48c   :  { %11062 = vmatprep.subr.bf16.mxu1 %v11752_v45 }
 0x48e   :  { %4925 = vmatmul.mubr.bf16.vlgmr.msra.gmra.mrb[32].mxu1 %v4330_v47  ;;  %v10368_v47 = vcombine.high %v5021_v38, %v5025_v56 }
 0x48f   :  { %11063 = vmatpush3.bf16.msra.mxu1 %v11754_v57  ;;  %v10361_v57 = vcombine.low %v5014_v23, %v5018_v28  ;;  %v5065_v28 = vld [vmem:[#allocation10 + $0x1a0] sm:$0xff] }
 0x490   :  { %11064 = vmatprep.subr.bf16.mxu1 %v11756_v48 }
 0x493   :  { %11065 = vmatpush3.bf16.msra.mxu1 %v11758_v21  ;;  %v10370_v21 = vcombine.high %v5022_v41, %v5026_v13 }
 0x494   :  { %11066 = vmatprep.subr.bf16.mxu1 %v11760_v49  ;;  %v5029_v49 = vld [vmem:[#allocation10 + $0x80] sm:$0xff] }
 0x497   :  { %11067 = vmatpush3.bf16.msra.mxu1 %v11762_v50  ;;  %v5033_v50 = vld [vmem:[#allocation10 + $0xa0] sm:$0xff] }
 0x498   :  { %11068 = vmatprep.subr.bf16.mxu1 %v11764_v22  ;;  %v5030_v22 = vld [vmem:[#allocation10 + $0x88] sm:$0xff]  ;;  %v10375_v35 = vcombine.low %v5029_v49, %v5033_v50 }
 0x49b   :  { %11069 = vmatpush3.bf16.msra.mxu1 %v11766_v0  ;;  %v5034_v0 = vld [vmem:[#allocation10 + $0xa8] sm:$0xff] }
 0x49c   :  { %11070 = vmatprep.subr.bf16.mxu1 %v11768_v29  ;;  %v10367_v29 = vcombine.low %v5021_v38, %v5025_v56  ;;  %v10377_v2 = vcombine.low %v5030_v22, %v5034_v0 }
 0x49f   :  { %11071 = vmatpush3.bf16.msra.mxu1 %v11770_v55  ;;  %v10369_v55 = vcombine.low %v5022_v41, %v5026_v13  ;;  %v5073_v41 = vld [vmem:[#allocation10 + $0x1e0] sm:$0xff]  ;;  %v5070_v13 = vld [vmem:[#allocation10 + $0x1c8] sm:$0xff] }
 0x4a0   :  { %11072 = vmatprep.subr.bf16.mxu1 %v11772_v59  ;;  %v10376_v59 = vcombine.high %v5029_v49, %v5033_v50 }
 0x4a3   :  { %11073 = vmatpush3.bf16.msra.mxu1 %v11774_v60  ;;  %v10378_v60 = vcombine.high %v5030_v22, %v5034_v0  ;;  %v5020_v22 = vld [vmem:[#allocation10 + $0x38] sm:$0xff] }
 0x4a4   :  { %11074 = vmatprep.subr.bf16.mxu1 %v11776_v61  ;;  %v5037_v61 = vld [vmem:[#allocation10 + $0xc0] sm:$0xff] }
 0x4a7   :  { %11075 = vmatpush3.bf16.msra.mxu1 %v11778_v62  ;;  %v5041_v62 = vld [vmem:[#allocation10 + $0xe0] sm:$0xff] }
 0x4a8   :  { %11076 = vmatprep.subr.bf16.mxu1 %v11780_v63  ;;  %v5038_v63 = vld [vmem:[#allocation10 + $0xc8] sm:$0xff]  ;;  %v10384_v3 = vcombine.high %v5037_v61, %v5041_v62 }
 0x4ab   :  { %11077 = vmatpush3.bf16.msra.mxu1 %v11782_v1  ;;  %v5042_v1 = vld [vmem:[#allocation10 + $0xe8] sm:$0xff] }
 0x4ac   :  { %5429 = vmatprep.subr.bf16.mxu1 %v10360_v17  ;;  %v10386_v4 = vcombine.high %v5038_v63, %v5042_v1  ;;  %v5061_v17 = vld [vmem:[#allocation10 + $0x180] sm:$0xff] }
 0x4e3   :  { %v4223_v9 = vpop.f32.mrb[24].mxu1 }
 0x4e4   :  { %v11231_v10 = vadd.f32 %v4223_v9, %v2691_v5  ;;  %v4305_v11 = vpop.f32.mrb[12].mxu0  ;;  %v4225_v12 = vpop.f32.mrb[25].mxu1  ;;  %v5045_v5 = vld [vmem:[#allocation10 + $0x100] sm:$0xff]  ;;  %v10383_v9 = vcombine.low %v5037_v61, %v5041_v62 }
 0x4e5   :  { %v11233_v14 = vadd.f32 %v4305_v11, %v2699_v6  ;;  %v11232_v15 = vadd.f32 %v4225_v12, %v2695_v7  ;;  %v4307_v16 = vpop.f32.mrb[13].mxu0  ;;  %v4227_v18 = vpop.f32.mrb[26].mxu1  ;;  %v5049_v6 = vld [vmem:[#allocation10 + $0x120] sm:$0xff]  ;;  %v5046_v7 = vld [vmem:[#allocation10 + $0x108] sm:$0xff] }
 0x4e6   :  { %v4316_v24 = vmul.f32 0.01, %v11231_v10  ;;  %v11234_v25 = vadd.f32 %v4307_v16, %v2703_v8  ;;  %v4309_v26 = vpop.f32.mrb[14].mxu0  ;;  %v4228_v27 = vpop.f32.mrb[27].mxu1  ;;  %v5050_v8 = vld [vmem:[#allocation10 + $0x128] sm:$0xff]  ;;  %v10392_v11 = vcombine.high %v5045_v5, %v5049_v6  ;;  %v10391_v19 = vcombine.low %v5045_v5, %v5049_v6 }
 0x4e7   :  { %v4318_v30 = vmul.f32 0.01, %v11233_v14  ;;  %v4317_v31 = vmul.f32 0.01, %v11232_v15  ;;  %v4310_v51 = vpop.f32.mrb[15].mxu0  ;;  %v10394_v12 = vcombine.high %v5046_v7, %v5050_v8  ;;  %v5054_v16 = vld [vmem:[#allocation10 + $0x148] sm:$0xff]  ;;  %v10393_v20 = vcombine.low %v5046_v7, %v5050_v8 }
 0x4e8   :  { %v4324_v33 = vmax.f32 %v11231_v10, %v4316_v24  ;;  %v4319_v34 = vmul.f32 0.01, %v11234_v25  ;;  %v10385_v10 = vcombine.low %v5038_v63, %v5042_v1  ;;  %v5058_v18 = vld [vmem:[#allocation10 + $0x168] sm:$0xff]  ;;  %v10408_v51 = vcombine.high %v5061_v17, %v5065_v28 }
 0x4e9   :  { %v4326_v36 = vmax.f32 %v11233_v14, %v4318_v30  ;;  %v4325_v37 = vmax.f32 %v11232_v15, %v4317_v31  ;;  %v5053_v14 = vld [vmem:[#allocation10 + $0x140] sm:$0xff]  ;;  %v10402_v24 = vcombine.high %v5054_v16, %v5058_v18  ;;  %v10401_v26 = vcombine.low %v5054_v16, %v5058_v18  ;;  %v5062_v30 = vld [vmem:[#allocation10 + $0x188] sm:$0xff]  ;;  %v5027_v16 = vld [vmem:[#allocation10 + $0x70] sm:$0xff] }
 0x4ea   :  { %v4327_v39 = vmax.f32 %v11234_v25, %v4319_v34  ;;  %v4332_v44 = vpack.c.bf16 %v4324_v33, %v4324_v33  ;;  %v5057_v15 = vld [vmem:[#allocation10 + $0x160] sm:$0xff]  ;;  %v10410_v38 = vcombine.high %v5062_v30, %v5066_v32  ;;  %v5024_v18 = vld [vmem:[#allocation10 + $0x58] sm:$0xff] }
 0x4eb   :  { %v4333_v42 = vpack.c.bf16 %v4325_v37, %v4325_v37  ;;  %v4334_v48 = vpack.c.bf16 %v4326_v36, %v4326_v36  ;;  %v10400_v23 = vcombine.high %v5053_v14, %v5057_v15  ;;  %v10399_v25 = vcombine.low %v5053_v14, %v5057_v15  ;;  %v5023_v15 = vld [vmem:[#allocation10 + $0x50] sm:$0xff] }
 0x4ec   :  { %v4335_v45 = vpack.c.bf16 %v4327_v39, %v4327_v39  ;;  %v10407_v36 = vcombine.low %v5061_v17, %v5065_v28  ;;  %v10409_v37 = vcombine.low %v5062_v30, %v5066_v32  ;;  %v5069_v39 = vld [vmem:[#allocation10 + $0x1c0] sm:$0xff]  ;;  %v5032_v17 = vld [vmem:[#allocation10 + $0x98] sm:$0xff]  ;;  %v10371_v30 = vcombine.low %v5023_v15, %v5027_v16 }
 0x4ed   :  { %4964 = vmatprep.mubr.bf16.mxu1 %v4333_v42  ;;  %v10416_v42 = vcombine.high %v5069_v39, %v5073_v41  ;;  %v5036_v28 = vld [vmem:[#allocation10 + $0xb8] sm:$0xff] }
 0x4ee   :  { %5004 = vmatprep.mubr.bf16.mxu0 %v4335_v45  ;;  %4965 = vmatmul.mubr.bf16.vlgmr.msra.gmra.mrb[36].mxu1 %v4332_v44  ;;  %v10415_v44 = vcombine.low %v5069_v39, %v5073_v41  ;;  %v10382_v32 = vcombine.high %v5032_v17, %v5036_v28 }
 0x4ef   :  { %5005 = vmatmul.mubr.bf16.vlgmr.msra.gmra.mrb[16].mxu0 %v4334_v48  ;;  %5430 = vmatpush1.bf16.msra.mxu1 %v10359_v43  ;;  %v5074_v43 = vld [vmem:[#allocation10 + $0x1e8] sm:$0xff]  ;;  %v5019_v48 = vld [vmem:[#allocation10 + $0x30] sm:$0xff] }
 0x4f0   :  { %5471 = vmatpush1.bf16.msra.mxu0 %v10361_v57  ;;  %5431 = vmatprep.subr.bf16.mxu1 %v10368_v47  ;;  %v10417_v45 = vcombine.low %v5070_v13, %v5074_v43  ;;  %v10418_v57 = vcombine.high %v5070_v13, %v5074_v43  ;;  %v5015_v47 = vld [vmem:[#allocation10 + $0x10] sm:$0xff]  ;;  %v5048_v43 = vld [vmem:[#allocation10 + $0x118] sm:$0xff] }
 0x4f1   :  { %5472 = vmatprep.subr.bf16.mxu0 %v10370_v21  ;;  %5461 = vmatprep.mubr.bf16.mxu1 %v12786_v40  ;;  %v5016_v21 = vld [vmem:[#allocation10 + $0x18] sm:$0xff]  ;;  %v10363_v49 = vcombine.low %v5015_v47, %v5019_v48  ;;  %v10364_v50 = vcombine.high %v5015_v47, %v5019_v48  ;;  %v5047_v13 = vld [vmem:[#allocation10 + $0x110] sm:$0xff] }
 0x4f2   :  { %5502 = vmatprep.mubr.bf16.mxu0 %v12786_v40  ;;  %v10365_v0 = vcombine.low %v5016_v21, %v5020_v22 }
 0x4f3   :  { %5432 = vmatpush1.bf16.msra.mxu1 %v10367_v29  ;;  %v10366_v29 = vcombine.high %v5016_v21, %v5020_v22  ;;  %v5055_v21 = vld [vmem:[#allocation10 + $0x150] sm:$0xff]  ;;  %v5060_v22 = vld [vmem:[#allocation10 + $0x178] sm:$0xff] }
 0x4f4   :  { %5473 = vmatpush1.bf16.msra.mxu0 %v10369_v55  ;;  %5433 = vmatprep.subr.bf16.mxu1 %v10376_v59  ;;  %v4466_v55 = vsub.s32 3, %v12997_v46 }
 0x4f5   :  { %5474 = vmatprep.subr.bf16.mxu0 %v10378_v60 }
 0x4f6   :  { %v4467_v59 = vrot.slane %v13069_v53, %v4466_v55 }
 0x4f7   :  { %5434 = vmatpush1.bf16.msra.mxu1 %v10375_v35 }
 0x4f8   :  { %5475 = vmatpush1.bf16.msra.mxu0 %v10377_v2  ;;  %5435 = vmatprep.subr.bf16.mxu1 %v10384_v3 }
 0x4f9   :  { %5476 = vmatprep.subr.bf16.mxu0 %v10386_v4 }
 0x4fb   :  { %5436 = vmatpush1.bf16.msra.mxu1 %v10383_v9 }
 0x4fc   :  { %5477 = vmatpush1.bf16.msra.mxu0 %v10385_v10  ;;  %5437 = vmatprep.subr.bf16.mxu1 %v10392_v11 }
 0x4fd   :  { %5478 = vmatprep.subr.bf16.mxu0 %v10394_v12 }
 0x4ff   :  { %5438 = vmatpush1.bf16.msra.mxu1 %v10391_v19  ;;  %v5028_v19 = vld [vmem:[#allocation10 + $0x78] sm:$0xff] }
 0x500   :  { %5479 = vmatpush1.bf16.msra.mxu0 %v10393_v20  ;;  %5439 = vmatprep.subr.bf16.mxu1 %v10400_v23 }
 0x501   :  { %5480 = vmatprep.subr.bf16.mxu0 %v10402_v24  ;;  %v10372_v24 = vcombine.high %v5023_v15, %v5027_v16  ;;  %v11786_v15 = vld [vmem:[#allocation11 + $0x4] ss:$16 sps:$4 sm:$0xff]   ;;  %v11789_v16 = vld [vmem:[#allocation11 + $0xc] ss:$16 sps:$4 sm:$0xff]  }
 0x503   :  { %5440 = vmatpush1.bf16.msra.mxu1 %v10399_v25  ;;  %v10374_v25 = vcombine.high %v5024_v18, %v5028_v19 }
 0x504   :  { %5481 = vmatpush1.bf16.msra.mxu0 %v10401_v26  ;;  %5441 = vmatprep.subr.bf16.mxu1 %v10408_v51  ;;  %v5031_v26 = vld [vmem:[#allocation10 + $0x90] sm:$0xff] }
 0x505   :  { %5482 = vmatprep.subr.bf16.mxu0 %v10410_v38 }
 0x507   :  { %5442 = vmatpush1.bf16.msra.mxu1 %v10407_v36  ;;  %v5040_v36 = vld [vmem:[#allocation10 + $0xd8] sm:$0xff] }
 0x508   :  { %5483 = vmatpush1.bf16.msra.mxu0 %v10409_v37  ;;  %5443 = vmatprep.subr.bf16.mxu1 %v10416_v42  ;;  %v5044_v37 = vld [vmem:[#allocation10 + $0xf8] sm:$0xff]  ;;  %v5051_v42 = vld [vmem:[#allocation10 + $0x130] sm:$0xff] }
 0x509   :  { %5484 = vmatprep.subr.bf16.mxu0 %v10418_v57  ;;  %v10390_v41 = vcombine.high %v5040_v36, %v5044_v37  ;;  %v10389_v57 = vcombine.low %v5040_v36, %v5044_v37  ;;  %v10396_v47 = vcombine.high %v5047_v13, %v5051_v42  ;;  %v11808_v36 = vld [vmem:[#allocation11 + $0x80] ss:$16 sps:$4 sm:$0xff]   ;;  %v11811_v37 = vld [vmem:[#allocation11 + $0x88] ss:$16 sps:$4 sm:$0xff]  }
 0x50b   :  { %5444 = vmatpush1.bf16.msra.mxu1 %v10415_v44  ;;  %v5052_v44 = vld [vmem:[#allocation10 + $0x138] sm:$0xff] }
 0x50c   :  { %5485 = vmatpush1.bf16.msra.mxu0 %v10417_v45  ;;  %5511 = vmatprep.subr.bf16.mxu1 %v10364_v50  ;;  %v10398_v48 = vcombine.high %v5048_v43, %v5052_v44  ;;  %v5056_v50 = vld [vmem:[#allocation10 + $0x158] sm:$0xff] }
 0x50d   :  { %5552 = vmatprep.subr.bf16.mxu0 %v10366_v29  ;;  %v10397_v29 = vcombine.low %v5048_v43, %v5052_v44  ;;  %v11820_v43 = vld [vmem:[#allocation11 + $0xc0] ss:$16 sps:$4 sm:$0xff]   ;;  %v11823_v44 = vld [vmem:[#allocation11 + $0xc8] ss:$16 sps:$4 sm:$0xff]  }
 0x541   :  { %v11034_v27 = vpop.f32.mrb[28].mxu1 }
 0x542   :  { %v11035_v31 = vpop.f32.mrb[29].mxu1 }
 0x543   :  { %v11036_v33 = vadd.f32 %v11035_v31, %v11034_v27  ;;  %v11037_v34 = vpop.f32.mrb[30].mxu1  ;;  %v5035_v27 = vld [vmem:[#allocation10 + $0xb0] sm:$0xff]  ;;  %v10373_v31 = vcombine.low %v5024_v18, %v5028_v19  ;;  %v11787_v19 = vld [vmem:[#allocation11 + $0x8] ss:$16 sps:$4 sm:$0xff]  }
 0x544   :  { %v11038_v56 = vpop.f32.mrb[31].mxu1  ;;  %v10380_v51 = vcombine.high %v5031_v26, %v5035_v27  ;;  %v5043_v34 = vld [vmem:[#allocation10 + $0xf0] sm:$0xff]  ;;  %v10379_v38 = vcombine.low %v5031_v26, %v5035_v27  ;;  %v11793_v26 = vld [vmem:[#allocation11 + $0x28] ss:$16 sps:$4 sm:$0xff]  }
 0x545   :  { %v4887_v62 = vadd.f32 %v11036_v33, %v4467_v59  ;;  %v5039_v33 = vld [vmem:[#allocation10 + $0xd0] sm:$0xff]  ;;  %v10381_v56 = vcombine.low %v5032_v17, %v5036_v28  ;;  %v10406_v59 = vcombine.high %v5056_v50, %v5060_v22  ;;  %v11801_v17 = vld [vmem:[#allocation11 + $0x4c] ss:$16 sps:$4 sm:$0xff]  }
 0x546   :  { %v10388_v39 = vcombine.high %v5039_v33, %v5043_v34  ;;  %v10387_v45 = vcombine.low %v5039_v33, %v5043_v34  ;;  %v11784_v18 = vld [vmem:[#allocation11] ss:$16 sps:$4 sm:$0xff]   ;;  %v11798_v27 = vld [vmem:[#allocation11 + $0x44] ss:$16 sps:$4 sm:$0xff]   ;;  %v11813_v34 = vld [vmem:[#allocation11 + $0x8c] ss:$16 sps:$4 sm:$0xff]  }
 0x547   :  { %v11796_v28 = vld [vmem:[#allocation11 + $0x40] ss:$16 sps:$4 sm:$0xff]   ;;  %v11810_v33 = vld [vmem:[#allocation11 + $0x84] ss:$16 sps:$4 sm:$0xff]  }
 0x561   :  { %v11056_v60 = vpop.f32.mrb[32].mxu1 }
 0x562   :  { %v11057_v61 = vpop.f32.mrb[33].mxu1 }
 0x563   :  { %v11058_v63 = vadd.f32 %v11057_v61, %v11056_v60  ;;  %v11059_v1 = vpop.f32.mrb[34].mxu1  ;;  %v5063_v60 = vld [vmem:[#allocation10 + $0x190] sm:$0xff] }
 0x564   :  { %v11060_v35 = vpop.f32.mrb[35].mxu1  ;;  %v5067_v61 = vld [vmem:[#allocation10 + $0x1b0] sm:$0xff] }
 0x565   :  { %v4927_v2 = vadd.f32 %v11058_v63, %v4887_v62  ;;  %v5064_v62 = vld [vmem:[#allocation10 + $0x198] sm:$0xff]  ;;  %v10405_v35 = vcombine.low %v5056_v50, %v5060_v22  ;;  %v11832_v50 = vld [vmem:[#allocation11 + $0x100] ss:$16 sps:$4 sm:$0xff]  }
 0x566   :  { %v5068_v63 = vld [vmem:[#allocation10 + $0x1b8] sm:$0xff] }
 0x567   :  { %v11835_v22 = vld [vmem:[#allocation11 + $0x108] ss:$16 sps:$4 sm:$0xff]  }
 0x5c1   :  { %v11078_v3 = vpop.f32.mrb[36].mxu1 }
 0x5c2   :  { %v11100_v4 = vpop.f32.mrb[16].mxu0  ;;  %v11079_v5 = vpop.f32.mrb[37].mxu1 }
 0x5c3   :  { %v11080_v6 = vadd.f32 %v11079_v5, %v11078_v3  ;;  %v11101_v7 = vpop.f32.mrb[17].mxu0  ;;  %v11081_v8 = vpop.f32.mrb[38].mxu1  ;;  %v10414_v3 = vcombine.high %v5064_v62, %v5068_v63  ;;  %v5075_v5 = vld [vmem:[#allocation10 + $0x1f0] sm:$0xff] }
 0x5c4   :  { %v11102_v9 = vadd.f32 %v11101_v7, %v11100_v4  ;;  %v11103_v10 = vpop.f32.mrb[18].mxu0  ;;  %v11082_v11 = vpop.f32.mrb[39].mxu1  ;;  %v5071_v4 = vld [vmem:[#allocation10 + $0x1d0] sm:$0xff]  ;;  %v5076_v7 = vld [vmem:[#allocation10 + $0x1f8] sm:$0xff]  ;;  %v10411_v8 = vcombine.low %v5063_v60, %v5067_v61 }
 0x5c5   :  { %v4967_v12 = vadd.f32 %v11080_v6, %v4927_v2  ;;  %v11104_v14 = vpop.f32.mrb[19].mxu0  ;;  %v10412_v2 = vcombine.high %v5063_v60, %v5067_v61  ;;  %v5072_v6 = vld [vmem:[#allocation10 + $0x1d8] sm:$0xff]  ;;  %v10420_v10 = vcombine.high %v5071_v4, %v5075_v5  ;;  %v11846_v60 = vld [vmem:[#allocation11 + $0x144] ss:$16 sps:$4 sm:$0xff]  }
 0x5c6   :  { %v10422_v11 = vcombine.high %v5072_v6, %v5076_v7  ;;  %v10421_v14 = vcombine.low %v5072_v6, %v5076_v7  ;;  %v11849_v61 = vld [vmem:[#allocation11 + $0x14c] ss:$16 sps:$4 sm:$0xff]   ;;  %v11856_v6 = vld [vmem:[#allocation11 + $0x180] ss:$16 sps:$4 sm:$0xff]   ;;  %v11859_v7 = vld [vmem:[#allocation11 + $0x188] ss:$16 sps:$4 sm:$0xff]  }
 0x5c7   :  { %v5007_v20 = vadd.f32 %v11102_v9, %v4967_v12  ;;  %v10413_v9 = vcombine.low %v5064_v62, %v5068_v63  ;;  %v10419_v12 = vcombine.low %v5071_v4, %v5075_v5  ;;  %v11844_v62 = vld [vmem:[#allocation11 + $0x140] ss:$16 sps:$4 sm:$0xff]   ;;  %v11847_v63 = vld [vmem:[#allocation11 + $0x148] ss:$16 sps:$4 sm:$0xff]   ;;  %v11858_v4 = vld [vmem:[#allocation11 + $0x184] ss:$16 sps:$4 sm:$0xff]  }
 0x5c8   :  { %v11861_v5 = vld [vmem:[#allocation11 + $0x18c] ss:$16 sps:$4 sm:$0xff]  }
 0x5c9   :  { %v13111_v23 = vpack.c.bf16 %v5007_v20, %v5007_v20  ;;  %v11792_v20 = vld [vmem:[#allocation11 + $0x24] ss:$16 sps:$4 sm:$0xff]  }
 0x5cb   :  { %5462 = vmatmul.mubr.bf16.vlgmr.msra.gmra.mrb[40].mxu1 %v13111_v23  ;;  %5503 = vmatmul.mubr.bf16.vlgmr.msra.gmra.mrb[20].mxu0 %v13111_v23 }
 0x5cc   :  { %5512 = vmatpush1.bf16.msra.mxu1 %v10363_v49  ;;  %5553 = vmatpush1.bf16.msra.mxu0 %v10365_v0  ;;  %v5059_v49 = vld [vmem:[#allocation10 + $0x170] sm:$0xff]  ;;  %v10395_v0 = vcombine.low %v5047_v13, %v5051_v42  ;;  %v11825_v42 = vld [vmem:[#allocation11 + $0xcc] ss:$16 sps:$4 sm:$0xff]  }
 0x5cd   :  { %5513 = vmatprep.subr.bf16.mxu1 %v10372_v24  ;;  %5554 = vmatprep.subr.bf16.mxu0 %v10374_v25  ;;  %v10404_v55 = vcombine.high %v5055_v21, %v5059_v49  ;;  %v10403_v1 = vcombine.low %v5055_v21, %v5059_v49  ;;  %v11795_v24 = vld [vmem:[#allocation11 + $0x2c] ss:$16 sps:$4 sm:$0xff]   ;;  %v11790_v25 = vld [vmem:[#allocation11 + $0x20] ss:$16 sps:$4 sm:$0xff]   ;;  %v11822_v13 = vld [vmem:[#allocation11 + $0xc4] ss:$16 sps:$4 sm:$0xff]  }
 0x5ce   :  { %5543 = vmatprep.mubr.bf16.mxu1 %v12786_v40  ;;  %5584 = vmatprep.mubr.bf16.mxu0 %v12786_v40  ;;  %v11834_v21 = vld [vmem:[#allocation11 + $0x104] ss:$16 sps:$4 sm:$0xff]   ;;  %v11837_v49 = vld [vmem:[#allocation11 + $0x10c] ss:$16 sps:$4 sm:$0xff]  }
 0x5d0   :  { %5514 = vmatpush1.bf16.msra.mxu1 %v10371_v30  ;;  %5555 = vmatpush1.bf16.msra.mxu0 %v10373_v31  ;;  %v11799_v30 = vld [vmem:[#allocation11 + $0x48] ss:$16 sps:$4 sm:$0xff]   ;;  %v11804_v31 = vld [vmem:[#allocation11 + $0x64] ss:$16 sps:$4 sm:$0xff]  }
 0x5d1   :  { %5515 = vmatprep.subr.bf16.mxu1 %v10380_v51  ;;  %5556 = vmatprep.subr.bf16.mxu0 %v10382_v32  ;;  %v11807_v51 = vld [vmem:[#allocation11 + $0x6c] ss:$16 sps:$4 sm:$0xff]   ;;  %v11802_v32 = vld [vmem:[#allocation11 + $0x60] ss:$16 sps:$4 sm:$0xff]  }
 0x5d4   :  { %5516 = vmatpush1.bf16.msra.mxu1 %v10379_v38  ;;  %5557 = vmatpush1.bf16.msra.mxu0 %v10381_v56  ;;  %v11816_v38 = vld [vmem:[#allocation11 + $0xa4] ss:$16 sps:$4 sm:$0xff]   ;;  %v11819_v56 = vld [vmem:[#allocation11 + $0xac] ss:$16 sps:$4 sm:$0xff]  }
 0x5d5   :  { %5517 = vmatprep.subr.bf16.mxu1 %v10388_v39  ;;  %5558 = vmatprep.subr.bf16.mxu0 %v10390_v41  ;;  %v11814_v39 = vld [vmem:[#allocation11 + $0xa0] ss:$16 sps:$4 sm:$0xff]   ;;  %v11817_v41 = vld [vmem:[#allocation11 + $0xa8] ss:$16 sps:$4 sm:$0xff]  }
 0x5d8   :  { %5518 = vmatpush1.bf16.msra.mxu1 %v10387_v45  ;;  %5559 = vmatpush1.bf16.msra.mxu0 %v10389_v57  ;;  %v11828_v45 = vld [vmem:[#allocation11 + $0xe4] ss:$16 sps:$4 sm:$0xff]   ;;  %v11831_v57 = vld [vmem:[#allocation11 + $0xec] ss:$16 sps:$4 sm:$0xff]  }
 0x5d9   :  { %5519 = vmatprep.subr.bf16.mxu1 %v10396_v47  ;;  %5560 = vmatprep.subr.bf16.mxu0 %v10398_v48  ;;  %v11826_v47 = vld [vmem:[#allocation11 + $0xe0] ss:$16 sps:$4 sm:$0xff]   ;;  %v11829_v48 = vld [vmem:[#allocation11 + $0xe8] ss:$16 sps:$4 sm:$0xff]  }
 0x5dc   :  { %5520 = vmatpush1.bf16.msra.mxu1 %v10395_v0  ;;  %5561 = vmatpush1.bf16.msra.mxu0 %v10397_v29  ;;  %v11840_v0 = vld [vmem:[#allocation11 + $0x124] ss:$16 sps:$4 sm:$0xff]   ;;  %v11843_v29 = vld [vmem:[#allocation11 + $0x12c] ss:$16 sps:$4 sm:$0xff]  }
 0x5dd   :  { %5521 = vmatprep.subr.bf16.mxu1 %v10404_v55  ;;  %5562 = vmatprep.subr.bf16.mxu0 %v10406_v59  ;;  %v11838_v55 = vld [vmem:[#allocation11 + $0x120] ss:$16 sps:$4 sm:$0xff]   ;;  %v11841_v59 = vld [vmem:[#allocation11 + $0x128] ss:$16 sps:$4 sm:$0xff]  }
 0x5e0   :  { %5522 = vmatpush1.bf16.msra.mxu1 %v10403_v1  ;;  %5563 = vmatpush1.bf16.msra.mxu0 %v10405_v35  ;;  %v11852_v1 = vld [vmem:[#allocation11 + $0x164] ss:$16 sps:$4 sm:$0xff]   ;;  %v11855_v35 = vld [vmem:[#allocation11 + $0x16c] ss:$16 sps:$4 sm:$0xff]  }
 0x5e1   :  { %5523 = vmatprep.subr.bf16.mxu1 %v10412_v2  ;;  %5564 = vmatprep.subr.bf16.mxu0 %v10414_v3  ;;  %v11850_v2 = vld [vmem:[#allocation11 + $0x160] ss:$16 sps:$4 sm:$0xff]   ;;  %v11853_v3 = vld [vmem:[#allocation11 + $0x168] ss:$16 sps:$4 sm:$0xff]  }
 0x5e4   :  { %5524 = vmatpush1.bf16.msra.mxu1 %v10411_v8  ;;  %5565 = vmatpush1.bf16.msra.mxu0 %v10413_v9  ;;  %v11864_v8 = vld [vmem:[#allocation11 + $0x1a4] ss:$16 sps:$4 sm:$0xff]   ;;  %v11867_v9 = vld [vmem:[#allocation11 + $0x1ac] ss:$16 sps:$4 sm:$0xff]  }
 0x5e5   :  { %5525 = vmatprep.subr.bf16.mxu1 %v10420_v10  ;;  %5566 = vmatprep.subr.bf16.mxu0 %v10422_v11  ;;  %v11862_v10 = vld [vmem:[#allocation11 + $0x1a0] ss:$16 sps:$4 sm:$0xff]   ;;  %v11865_v11 = vld [vmem:[#allocation11 + $0x1a8] ss:$16 sps:$4 sm:$0xff]  }
 0x5e8   :  { %5526 = vmatpush1.bf16.msra.mxu1 %v10419_v12  ;;  %5567 = vmatpush1.bf16.msra.mxu0 %v10421_v14  ;;  %v11870_v12 = vld [vmem:[#allocation11 + $0x1c4] ss:$16 sps:$4 sm:$0xff]   ;;  %v11873_v14 = vld [vmem:[#allocation11 + $0x1cc] ss:$16 sps:$4 sm:$0xff]  }
 0x5e9   :  { %7169 = vmatprep.subr.bf16.mxu1 %v11786_v15  ;;  %7333 = vmatprep.subr.bf16.mxu0 %v11789_v16  ;;  %v11868_v15 = vld [vmem:[#allocation11 + $0x1c0] ss:$16 sps:$4 sm:$0xff]   ;;  %v11871_v16 = vld [vmem:[#allocation11 + $0x1c8] ss:$16 sps:$4 sm:$0xff]  }
 0x5eb   :  { %5544 = vmatmul.mubr.bf16.vlgmr.msra.gmra.mrb[44].mxu1 %v13111_v23  ;;  %5585 = vmatmul.mubr.bf16.vlgmr.msra.gmra.mrb[24].mxu0 %v13111_v23  ;;  %v11805_v23 = vld [vmem:[#allocation11 + $0x68] ss:$16 sps:$4 sm:$0xff]  }
 0x5ec   :  { %7170 = vmatpush1.bf16.msra.mxu1 %v11784_v18  ;;  %7334 = vmatpush1.bf16.msra.mxu0 %v11787_v19  ;;  %v11876_v18 = vld [vmem:[#allocation11 + $0x1e4] ss:$16 sps:$4 sm:$0xff]   ;;  %v11879_v19 = vld [vmem:[#allocation11 + $0x1ec] ss:$16 sps:$4 sm:$0xff]  }
 0x5ed   :  { %7171 = vmatprep.subr.bf16.mxu1 %v11792_v20  ;;  %7335 = vmatprep.subr.bf16.mxu0 %v11795_v24  ;;  %v11874_v20 = vld [vmem:[#allocation11 + $0x1e0] ss:$16 sps:$4 sm:$0xff]   ;;  %v11877_v24 = vld [vmem:[#allocation11 + $0x1e8] ss:$16 sps:$4 sm:$0xff]  }
 0x5f0   :  { %7172 = vmatpush1.bf16.msra.mxu1 %v11790_v25  ;;  %7336 = vmatpush1.bf16.msra.mxu0 %v11793_v26  ;;  %v11882_v25 = vld [vmem:[#allocation11 + $0x204] ss:$16 sps:$4 sm:$0xff]   ;;  %v11885_v26 = vld [vmem:[#allocation11 + $0x20c] ss:$16 sps:$4 sm:$0xff]  }
 0x5f1   :  { %7173 = vmatprep.subr.bf16.mxu1 %v11798_v27  ;;  %7337 = vmatprep.subr.bf16.mxu0 %v11801_v17  ;;  %v13120_v27 = vsub.s32 4, %v12997_v46 }
 0x5f3   :  { %v5080_v17 = vrot.slane %v13069_v53, %v13120_v27 }
 0x5f4   :  { %7174 = vmatpush1.bf16.msra.mxu1 %v11796_v28  ;;  %7338 = vmatpush1.bf16.msra.mxu0 %v11799_v30  ;;  %v5084_v28 = vrot.slane %v13076_v54, %v13120_v27  ;;  %v5092_v30 = vrot.slane %v13083_v58, %v13120_v27  ;;  %v11880_v58 = vld [vmem:[#allocation11 + $0x200] ss:$16 sps:$4 sm:$0xff]  }
 0x5f5   :  { %7175 = vmatprep.subr.bf16.mxu1 %v11804_v31  ;;  %7339 = vmatprep.subr.bf16.mxu0 %v11807_v51 }
 0x5f8   :  { %7176 = vmatpush1.bf16.msra.mxu1 %v11802_v32  ;;  %7340 = vmatpush1.bf16.msra.mxu0 %v11805_v23 }
 0x5f9   :  { %7177 = vmatprep.subr.bf16.mxu1 %v11810_v33  ;;  %7341 = vmatprep.subr.bf16.mxu0 %v11813_v34 }
 0x5fc   :  { %7178 = vmatpush1.bf16.msra.mxu1 %v11808_v36  ;;  %7342 = vmatpush1.bf16.msra.mxu0 %v11811_v37 }
 0x5fd   :  { %7179 = vmatprep.subr.bf16.mxu1 %v11816_v38  ;;  %7343 = vmatprep.subr.bf16.mxu0 %v11819_v56 }
 0x600   :  { %7180 = vmatpush1.bf16.msra.mxu1 %v11814_v39  ;;  %7344 = vmatpush1.bf16.msra.mxu0 %v11817_v41 }
 0x601   :  { %7181 = vmatprep.subr.bf16.mxu1 %v11822_v13  ;;  %7345 = vmatprep.subr.bf16.mxu0 %v11825_v42 }
 0x604   :  { %7182 = vmatpush1.bf16.msra.mxu1 %v11820_v43  ;;  %7346 = vmatpush1.bf16.msra.mxu0 %v11823_v44 }
 0x605   :  { %7183 = vmatprep.subr.bf16.mxu1 %v11828_v45  ;;  %7347 = vmatprep.subr.bf16.mxu0 %v11831_v57  ;;  %v11883_v45 = vld [vmem:[#allocation11 + $0x208] ss:$16 sps:$4 sm:$0xff]  }
 0x608   :  { %7184 = vmatpush1.bf16.msra.mxu1 %v11826_v47  ;;  %7348 = vmatpush1.bf16.msra.mxu0 %v11829_v48  ;;  %v11888_v47 = vld [vmem:[#allocation11 + $0x224] ss:$16 sps:$4 sm:$0xff]   ;;  %v11891_v48 = vld [vmem:[#allocation11 + $0x22c] ss:$16 sps:$4 sm:$0xff]  }
 0x609   :  { %7185 = vmatprep.subr.bf16.mxu1 %v11834_v21  ;;  %7349 = vmatprep.subr.bf16.mxu0 %v11837_v49  ;;  %v11886_v49 = vld [vmem:[#allocation11 + $0x220] ss:$16 sps:$4 sm:$0xff]  }
 0x60c   :  { %7186 = vmatpush1.bf16.msra.mxu1 %v11832_v50  ;;  %7350 = vmatpush1.bf16.msra.mxu0 %v11835_v22  ;;  %v11889_v50 = vld [vmem:[#allocation11 + $0x228] ss:$16 sps:$4 sm:$0xff]   ;;  %v11894_v22 = vld [vmem:[#allocation11 + $0x244] ss:$16 sps:$4 sm:$0xff]  }
 0x60d   :  { %7187 = vmatprep.subr.bf16.mxu1 %v11840_v0  ;;  %7351 = vmatprep.subr.bf16.mxu0 %v11843_v29  ;;  %v11897_v0 = vld [vmem:[#allocation11 + $0x24c] ss:$16 sps:$4 sm:$0xff]   ;;  %v11892_v29 = vld [vmem:[#allocation11 + $0x240] ss:$16 sps:$4 sm:$0xff]  }
 0x610   :  { %7188 = vmatpush1.bf16.msra.mxu1 %v11838_v55  ;;  %7352 = vmatpush1.bf16.msra.mxu0 %v11841_v59  ;;  %v11895_v55 = vld [vmem:[#allocation11 + $0x248] ss:$16 sps:$4 sm:$0xff]   ;;  %v11900_v59 = vld [vmem:[#allocation11 + $0x264] ss:$16 sps:$4 sm:$0xff]  }
 0x611   :  { %7189 = vmatprep.subr.bf16.mxu1 %v11846_v60  ;;  %7353 = vmatprep.subr.bf16.mxu0 %v11849_v61  ;;  %v11903_v60 = vld [vmem:[#allocation11 + $0x26c] ss:$16 sps:$4 sm:$0xff]   ;;  %v11898_v61 = vld [vmem:[#allocation11 + $0x260] ss:$16 sps:$4 sm:$0xff]  }
 0x614   :  { %7190 = vmatpush1.bf16.msra.mxu1 %v11844_v62  ;;  %7354 = vmatpush1.bf16.msra.mxu0 %v11847_v63  ;;  %v11901_v62 = vld [vmem:[#allocation11 + $0x268] ss:$16 sps:$4 sm:$0xff]   ;;  %v11906_v63 = vld [vmem:[#allocation11 + $0x284] ss:$16 sps:$4 sm:$0xff]  }
 0x615   :  { %7191 = vmatprep.subr.bf16.mxu1 %v11852_v1  ;;  %7355 = vmatprep.subr.bf16.mxu0 %v11855_v35  ;;  %v11909_v1 = vld [vmem:[#allocation11 + $0x28c] ss:$16 sps:$4 sm:$0xff]   ;;  %v11904_v35 = vld [vmem:[#allocation11 + $0x280] ss:$16 sps:$4 sm:$0xff]  }
 0x618   :  { %7192 = vmatpush1.bf16.msra.mxu1 %v11850_v2  ;;  %7356 = vmatpush1.bf16.msra.mxu0 %v11853_v3  ;;  %v11907_v2 = vld [vmem:[#allocation11 + $0x288] ss:$16 sps:$4 sm:$0xff]   ;;  %v11912_v3 = vld [vmem:[#allocation11 + $0x2a4] ss:$16 sps:$4 sm:$0xff]  }
 0x619   :  { %7193 = vmatprep.subr.bf16.mxu1 %v11858_v4  ;;  %7357 = vmatprep.subr.bf16.mxu0 %v11861_v5  ;;  %v11915_v4 = vld [vmem:[#allocation11 + $0x2ac] ss:$16 sps:$4 sm:$0xff]   ;;  %v11910_v5 = vld [vmem:[#allocation11 + $0x2a0] ss:$16 sps:$4 sm:$0xff]  }
 0x61c   :  { %7194 = vmatpush1.bf16.msra.mxu1 %v11856_v6  ;;  %7358 = vmatpush1.bf16.msra.mxu0 %v11859_v7  ;;  %v11913_v6 = vld [vmem:[#allocation11 + $0x2a8] ss:$16 sps:$4 sm:$0xff]   ;;  %v11918_v7 = vld [vmem:[#allocation11 + $0x2c4] ss:$16 sps:$4 sm:$0xff]  }
 0x61d   :  { %7195 = vmatprep.subr.bf16.mxu1 %v11864_v8  ;;  %7359 = vmatprep.subr.bf16.mxu0 %v11867_v9  ;;  %v11921_v8 = vld [vmem:[#allocation11 + $0x2cc] ss:$16 sps:$4 sm:$0xff]  }
 0x620   :  { %7196 = vmatpush1.bf16.msra.mxu1 %v11862_v10  ;;  %7360 = vmatpush1.bf16.msra.mxu0 %v11865_v11  ;;  %v11916_v11 = vld [vmem:[#allocation11 + $0x2c0] ss:$16 sps:$4 sm:$0xff]  }
 0x621   :  { %7197 = vmatprep.subr.bf16.mxu1 %v11870_v12  ;;  %7361 = vmatprep.subr.bf16.mxu0 %v11873_v14  ;;  %v11919_v12 = vld [vmem:[#allocation11 + $0x2c8] ss:$16 sps:$4 sm:$0xff]  }
 0x624   :  { %7198 = vmatpush1.bf16.msra.mxu1 %v11868_v15  ;;  %7362 = vmatpush1.bf16.msra.mxu0 %v11871_v16  ;;  %v11924_v16 = vld [vmem:[#allocation11 + $0x2e4] ss:$16 sps:$4 sm:$0xff]  }
 0x625   :  { %7199 = vmatprep.subr.bf16.mxu1 %v11876_v18  ;;  %7363 = vmatprep.subr.bf16.mxu0 %v11879_v19  ;;  %v11927_v18 = vld [vmem:[#allocation11 + $0x2ec] ss:$16 sps:$4 sm:$0xff]  }
 0x628   :  { %7200 = vmatpush1.bf16.msra.mxu1 %v11874_v20  ;;  %7364 = vmatpush1.bf16.msra.mxu0 %v11877_v24 }
 0x629   :  { %7210 = vmatprep.subr.bf16.mxu1 %v11882_v25  ;;  %7374 = vmatprep.subr.bf16.mxu0 %v11885_v26  ;;  %v11922_v26 = vld [vmem:[#allocation11 + $0x2e0] ss:$16 sps:$4 sm:$0xff]  }
 0x69e   :  { %v5463_v31 = vpop.f32.mrb[40].mxu1  ;;  %v13128_v51 = vpop.f32.mrb[20].mxu0 }
 0x69f   :  { %v5464_v32 = vadd.f32 %v5463_v31, %v5080_v17  ;;  %v5465_v23 = vpop.f32.mrb[41].mxu1  ;;  %v5506_v33 = vpop.f32.mrb[21].mxu0  ;;  %v11925_v17 = vld [vmem:[#allocation11 + $0x2e8] ss:$16 sps:$4 sm:$0xff]   ;;  %v11928_v31 = vld [vmem:[#allocation11 + $0x300] ss:$16 sps:$4 sm:$0xff]  }
 0x6a0   :  { %v5466_v34 = vadd.f32 %v5465_v23, %v5084_v28  ;;  %v5507_v36 = vadd.f32 %v5506_v33, %v5092_v30  ;;  %v5467_v37 = vpop.f32.mrb[42].mxu1  ;;  %v5508_v38 = vpop.f32.mrb[22].mxu0  ;;  %v11930_v28 = vld [vmem:[#allocation11 + $0x304] ss:$16 sps:$4 sm:$0xff]   ;;  %v11933_v30 = vld [vmem:[#allocation11 + $0x30c] ss:$16 sps:$4 sm:$0xff]  }
 0x6a1   :  { %v5593_v56 = vmul.f32 0.01, %v5464_v32  ;;  %v5468_v39 = vpop.f32.mrb[43].mxu1  ;;  %v5509_v41 = vpop.f32.mrb[23].mxu0  ;;  %v11936_v23 = vld [vmem:[#allocation11 + $0x324] ss:$16 sps:$4 sm:$0xff]  }
 0x6a2   :  { %v5594_v53 = vmul.f32 0.01, %v5466_v34  ;;  %v5596_v13 = vmul.f32 0.01, %v5507_v36  ;;  %v11939_v33 = vld [vmem:[#allocation11 + $0x32c] ss:$16 sps:$4 sm:$0xff]  }
 0x6a3   :  { %v5601_v42 = vmax.f32 %v5464_v32, %v5593_v56  ;;  %v11931_v32 = vld [vmem:[#allocation11 + $0x308] ss:$16 sps:$4 sm:$0xff]   ;;  %v11942_v37 = vld [vmem:[#allocation11 + $0x344] ss:$16 sps:$4 sm:$0xff]   ;;  %v11945_v38 = vld [vmem:[#allocation11 + $0x34c] ss:$16 sps:$4 sm:$0xff]  }
 0x6a4   :  { %v5602_v54 = vmax.f32 %v5466_v34, %v5594_v53  ;;  %v5604_v43 = vmax.f32 %v5507_v36, %v5596_v13  ;;  %v11934_v34 = vld [vmem:[#allocation11 + $0x320] ss:$16 sps:$4 sm:$0xff]   ;;  %v11937_v36 = vld [vmem:[#allocation11 + $0x328] ss:$16 sps:$4 sm:$0xff]   ;;  %v11948_v41 = vld [vmem:[#allocation11 + $0x364] ss:$16 sps:$4 sm:$0xff]  }
 0x6a5   :  { %v5609_v57 = vpack.c.bf16 %v5601_v42, %v5601_v42  ;;  %v11940_v56 = vld [vmem:[#allocation11 + $0x340] ss:$16 sps:$4 sm:$0xff]   ;;  %v11943_v39 = vld [vmem:[#allocation11 + $0x348] ss:$16 sps:$4 sm:$0xff]   ;;  %v11951_v53 = vld [vmem:[#allocation11 + $0x36c] ss:$16 sps:$4 sm:$0xff]  }
 0x6a6   :  { %v5610_v44 = vpack.c.bf16 %v5602_v54, %v5602_v54  ;;  %v5612_v21 = vpack.c.bf16 %v5604_v43, %v5604_v43  ;;  %v11946_v13 = vld [vmem:[#allocation11 + $0x360] ss:$16 sps:$4 sm:$0xff]   ;;  %v11949_v42 = vld [vmem:[#allocation11 + $0x368] ss:$16 sps:$4 sm:$0xff]   ;;  %v11954_v54 = vld [vmem:[#allocation11 + $0x384] ss:$16 sps:$4 sm:$0xff]  }
 0x6a7   :  { %v11957_v43 = vld [vmem:[#allocation11 + $0x38c] ss:$16 sps:$4 sm:$0xff]  }
 0x6a8   :  { %7201 = vmatprep.mubr.bf16.mxu1 %v5610_v44  ;;  %7365 = vmatprep.mubr.bf16.mxu0 %v5610_v44  ;;  %v11952_v44 = vld [vmem:[#allocation11 + $0x380] ss:$16 sps:$4 sm:$0xff]  }
 0x6a9   :  { %7202 = vmatmul.mubr.bf16.vlgmr.msra.gmra.mrb[48].mxu1 %v5609_v57  ;;  %7366 = vmatmul.mubr.bf16.vlgmr.msra.gmra.mrb[28].mxu0 %v5609_v57 }
 0x6aa   :  { %7211 = vmatpush1.bf16.msra.mxu1 %v11880_v58  ;;  %7375 = vmatpush1.bf16.msra.mxu0 %v11883_v45  ;;  %v11955_v58 = vld [vmem:[#allocation11 + $0x388] ss:$16 sps:$4 sm:$0xff]   ;;  %v13141_v45 = vld [vmem:[%s13277_s9 + $0x10] sm:$0xff] }
 0x6ab   :  { %7242 = vmatprep.mubr.bf16.mxu1 %v5612_v21  ;;  %7406 = vmatprep.mubr.bf16.mxu0 %v5612_v21  ;;  %v5088_v57 = vrot.slane %v13141_v45, %v13120_v27  ;;  %v12542_v21 = vld [vmem:[%s13277_s9 + $0x28] sm:$0xff] }
 0x6ac   :  { %7212 = vmatprep.subr.bf16.mxu1 %v11888_v47  ;;  %7376 = vmatprep.subr.bf16.mxu0 %v11891_v48  ;;  %v11960_v47 = vld [vmem:[#allocation11 + $0x3a4] ss:$16 sps:$4 sm:$0xff]   ;;  %v11963_v48 = vld [vmem:[#allocation11 + $0x3ac] ss:$16 sps:$4 sm:$0xff]  }
 0x6ae   :  { %7213 = vmatpush1.bf16.msra.mxu1 %v11886_v49  ;;  %7377 = vmatpush1.bf16.msra.mxu0 %v11889_v50  ;;  %v5100_v49 = vrot.slane %v12542_v21, %v13120_v27  ;;  %v11958_v50 = vld [vmem:[#allocation11 + $0x3a0] ss:$16 sps:$4 sm:$0xff]   ;;  %v12032_v21 = vld [vmem:[#allocation11 + $0x524] ss:$16 sps:$4 sm:$0xff]  }
 0x6af   :  { %7214 = vmatprep.subr.bf16.mxu1 %v11894_v22  ;;  %7378 = vmatprep.subr.bf16.mxu0 %v11897_v0  ;;  %v11961_v22 = vld [vmem:[#allocation11 + $0x3a8] ss:$16 sps:$4 sm:$0xff]   ;;  %v5505_v0 = vadd.f32 %v13128_v51, %v5088_v57  ;;  %v12029_v57 = vld [vmem:[#allocation11 + $0x50c] ss:$16 sps:$4 sm:$0xff]  }
 0x6b0   :  { %v11973_v51 = vld [vmem:[#allocation11 + $0x3e8] ss:$16 sps:$4 sm:$0xff]  }
 0x6b2   :  { %7215 = vmatpush1.bf16.msra.mxu1 %v11892_v29  ;;  %7379 = vmatpush1.bf16.msra.mxu0 %v11895_v55  ;;  %v11966_v29 = vld [vmem:[#allocation11 + $0x3c4] ss:$16 sps:$4 sm:$0xff]   ;;  %v11969_v55 = vld [vmem:[#allocation11 + $0x3cc] ss:$16 sps:$4 sm:$0xff]  }
 0x6b3   :  { %7216 = vmatprep.subr.bf16.mxu1 %v11900_v59  ;;  %7380 = vmatprep.subr.bf16.mxu0 %v11903_v60  ;;  %v11964_v60 = vld [vmem:[#allocation11 + $0x3c0] ss:$16 sps:$4 sm:$0xff]  }
 0x6b6   :  { %7217 = vmatpush1.bf16.msra.mxu1 %v11898_v61  ;;  %7381 = vmatpush1.bf16.msra.mxu0 %v11901_v62  ;;  %v11967_v61 = vld [vmem:[#allocation11 + $0x3c8] ss:$16 sps:$4 sm:$0xff]   ;;  %v5595_v62 = vmul.f32 0.01, %v5505_v0 }
 0x6b7   :  { %7218 = vmatprep.subr.bf16.mxu1 %v11906_v63  ;;  %7382 = vmatprep.subr.bf16.mxu0 %v11909_v1  ;;  %v11972_v63 = vld [vmem:[#allocation11 + $0x3e4] ss:$16 sps:$4 sm:$0xff]   ;;  %v11975_v1 = vld [vmem:[#allocation11 + $0x3ec] ss:$16 sps:$4 sm:$0xff]  }
 0x6ba   :  { %7219 = vmatpush1.bf16.msra.mxu1 %v11904_v35  ;;  %7383 = vmatpush1.bf16.msra.mxu0 %v11907_v2  ;;  %v11970_v2 = vld [vmem:[#allocation11 + $0x3e0] ss:$16 sps:$4 sm:$0xff]  }
 0x6bb   :  { %7220 = vmatprep.subr.bf16.mxu1 %v11912_v3  ;;  %7384 = vmatprep.subr.bf16.mxu0 %v11915_v4  ;;  %v5603_v3 = vmax.f32 %v5505_v0, %v5595_v62  ;;  %v11978_v4 = vld [vmem:[#allocation11 + $0x404] ss:$16 sps:$4 sm:$0xff]   ;;  %v12042_v62 = vld [vmem:[#allocation11 + $0x560] ss:$16 sps:$4 sm:$0xff]  }
 0x6bc   :  { %v12038_v0 = vld [vmem:[#allocation11 + $0x544] ss:$16 sps:$4 sm:$0xff]  }
 0x6be   :  { %v13130_v9 = vpop.f32.mrb[44].mxu1  ;;  %v13132_v10 = vpop.f32.mrb[24].mxu0  ;;  %7221 = vmatpush1.bf16.msra.mxu1 %v11910_v5  ;;  %7385 = vmatpush1.bf16.msra.mxu0 %v11913_v6  ;;  %v11981_v5 = vld [vmem:[#allocation11 + $0x40c] ss:$16 sps:$4 sm:$0xff]  }
 0x6bf   :  { %v13134_v14 = vpop.f32.mrb[45].mxu1  ;;  %v13136_v15 = vpop.f32.mrb[25].mxu0  ;;  %7222 = vmatprep.subr.bf16.mxu1 %v11918_v7  ;;  %7386 = vmatprep.subr.bf16.mxu0 %v11921_v8  ;;  %v11976_v7 = vld [vmem:[#allocation11 + $0x400] ss:$16 sps:$4 sm:$0xff]   ;;  %v5611_v8 = vpack.c.bf16 %v5603_v3, %v5603_v3 }
 0x6c0   :  { %v5549_v19 = vpop.f32.mrb[46].mxu1  ;;  %v5590_v20 = vpop.f32.mrb[26].mxu0  ;;  %v5548_v59 = vadd.f32 %v13134_v14, %v5100_v49  ;;  %v11984_v14 = vld [vmem:[#allocation11 + $0x424] ss:$16 sps:$4 sm:$0xff]   ;;  %v12035_v49 = vld [vmem:[#allocation11 + $0x52c] ss:$16 sps:$4 sm:$0xff]  }
 0x6c1   :  { %v5550_v24 = vpop.f32.mrb[47].mxu1  ;;  %v5591_v25 = vpop.f32.mrb[27].mxu0  ;;  %v11985_v19 = vld [vmem:[#allocation11 + $0x428] ss:$16 sps:$4 sm:$0xff]   ;;  %v11990_v20 = vld [vmem:[#allocation11 + $0x444] ss:$16 sps:$4 sm:$0xff]  }
 0x6c2   :  { %7223 = vmatpush1.bf16.msra.mxu1 %v11916_v11  ;;  %7387 = vmatpush1.bf16.msra.mxu0 %v11919_v12  ;;  %v5598_v35 = vmul.f32 0.01, %v5548_v59  ;;  %v11979_v11 = vld [vmem:[#allocation11 + $0x408] ss:$16 sps:$4 sm:$0xff]   ;;  %v11993_v24 = vld [vmem:[#allocation11 + $0x44c] ss:$16 sps:$4 sm:$0xff]  }
 0x6c3   :  { %7224 = vmatprep.subr.bf16.mxu1 %v11924_v16  ;;  %7388 = vmatprep.subr.bf16.mxu0 %v11927_v18  ;;  %v11987_v16 = vld [vmem:[#allocation11 + $0x42c] ss:$16 sps:$4 sm:$0xff]   ;;  %v11982_v18 = vld [vmem:[#allocation11 + $0x420] ss:$16 sps:$4 sm:$0xff]  }
 0x6c4   :  { %v5606_v6 = vmax.f32 %v5548_v59, %v5598_v35  ;;  %v11988_v25 = vld [vmem:[#allocation11 + $0x440] ss:$16 sps:$4 sm:$0xff]   ;;  %v12039_v59 = vld [vmem:[#allocation11 + $0x548] ss:$16 sps:$4 sm:$0xff]   ;;  %v12053_v35 = vld [vmem:[#allocation11 + $0x58c] ss:$16 sps:$4 sm:$0xff]  }
 0x6c6   :  { %7225 = vmatpush1.bf16.msra.mxu1 %v11922_v26  ;;  %7389 = vmatpush1.bf16.msra.mxu0 %v11925_v17  ;;  %v5614_v12 = vpack.c.bf16 %v5606_v6, %v5606_v6  ;;  %v11991_v26 = vld [vmem:[#allocation11 + $0x448] ss:$16 sps:$4 sm:$0xff]   ;;  %v11996_v17 = vld [vmem:[#allocation11 + $0x464] ss:$16 sps:$4 sm:$0xff]   ;;  %v12059_v6 = vld [vmem:[#allocation11 + $0x5ac] ss:$16 sps:$4 sm:$0xff]  }
 0x6c7   :  { %7226 = vmatprep.subr.bf16.mxu1 %v11930_v28  ;;  %7390 = vmatprep.subr.bf16.mxu0 %v11933_v30  ;;  %v11999_v28 = vld [vmem:[#allocation11 + $0x46c] ss:$16 sps:$4 sm:$0xff]   ;;  %v11994_v30 = vld [vmem:[#allocation11 + $0x460] ss:$16 sps:$4 sm:$0xff]  }
 0x6ca   :  { %7227 = vmatpush1.bf16.msra.mxu1 %v11928_v31  ;;  %7391 = vmatpush1.bf16.msra.mxu0 %v11931_v32  ;;  %v11997_v31 = vld [vmem:[#allocation11 + $0x468] ss:$16 sps:$4 sm:$0xff]   ;;  %v12002_v32 = vld [vmem:[#allocation11 + $0x484] ss:$16 sps:$4 sm:$0xff]  }
 0x6cb   :  { %7228 = vmatprep.subr.bf16.mxu1 %v11936_v23  ;;  %7392 = vmatprep.subr.bf16.mxu0 %v11939_v33  ;;  %v12005_v23 = vld [vmem:[#allocation11 + $0x48c] ss:$16 sps:$4 sm:$0xff]   ;;  %v12000_v33 = vld [vmem:[#allocation11 + $0x480] ss:$16 sps:$4 sm:$0xff]  }
 0x6ce   :  { %7229 = vmatpush1.bf16.msra.mxu1 %v11934_v34  ;;  %7393 = vmatpush1.bf16.msra.mxu0 %v11937_v36  ;;  %v12003_v34 = vld [vmem:[#allocation11 + $0x488] ss:$16 sps:$4 sm:$0xff]   ;;  %v12008_v36 = vld [vmem:[#allocation11 + $0x4a4] ss:$16 sps:$4 sm:$0xff]  }
 0x6cf   :  { %7230 = vmatprep.subr.bf16.mxu1 %v11942_v37  ;;  %7394 = vmatprep.subr.bf16.mxu0 %v11945_v38  ;;  %v12011_v37 = vld [vmem:[#allocation11 + $0x4ac] ss:$16 sps:$4 sm:$0xff]   ;;  %v12006_v38 = vld [vmem:[#allocation11 + $0x4a0] ss:$16 sps:$4 sm:$0xff]  }
 0x6d2   :  { %7231 = vmatpush1.bf16.msra.mxu1 %v11940_v56  ;;  %7395 = vmatpush1.bf16.msra.mxu0 %v11943_v39  ;;  %v12009_v56 = vld [vmem:[#allocation11 + $0x4a8] ss:$16 sps:$4 sm:$0xff]   ;;  %v12014_v39 = vld [vmem:[#allocation11 + $0x4c4] ss:$16 sps:$4 sm:$0xff]  }
 0x6d3   :  { %7232 = vmatprep.subr.bf16.mxu1 %v11948_v41  ;;  %7396 = vmatprep.subr.bf16.mxu0 %v11951_v53  ;;  %v12017_v41 = vld [vmem:[#allocation11 + $0x4cc] ss:$16 sps:$4 sm:$0xff]   ;;  %v12012_v53 = vld [vmem:[#allocation11 + $0x4c0] ss:$16 sps:$4 sm:$0xff]  }
 0x6d6   :  { %7233 = vmatpush1.bf16.msra.mxu1 %v11946_v13  ;;  %7397 = vmatpush1.bf16.msra.mxu0 %v11949_v42  ;;  %v12015_v13 = vld [vmem:[#allocation11 + $0x4c8] ss:$16 sps:$4 sm:$0xff]   ;;  %v12020_v42 = vld [vmem:[#allocation11 + $0x4e4] ss:$16 sps:$4 sm:$0xff]  }
 0x6d7   :  { %7234 = vmatprep.subr.bf16.mxu1 %v11954_v54  ;;  %7398 = vmatprep.subr.bf16.mxu0 %v11957_v43  ;;  %v12023_v54 = vld [vmem:[#allocation11 + $0x4ec] ss:$16 sps:$4 sm:$0xff]   ;;  %v12018_v43 = vld [vmem:[#allocation11 + $0x4e0] ss:$16 sps:$4 sm:$0xff]  }
 0x6da   :  { %7235 = vmatpush1.bf16.msra.mxu1 %v11952_v44  ;;  %7399 = vmatpush1.bf16.msra.mxu0 %v11955_v58  ;;  %v12021_v44 = vld [vmem:[#allocation11 + $0x4e8] ss:$16 sps:$4 sm:$0xff]   ;;  %v12026_v58 = vld [vmem:[#allocation11 + $0x504] ss:$16 sps:$4 sm:$0xff]  }
 0x6db   :  { %7236 = vmatprep.subr.bf16.mxu1 %v11960_v47  ;;  %7400 = vmatprep.subr.bf16.mxu0 %v11963_v48  ;;  %v12024_v47 = vld [vmem:[#allocation11 + $0x500] ss:$16 sps:$4 sm:$0xff]   ;;  %v12027_v48 = vld [vmem:[#allocation11 + $0x508] ss:$16 sps:$4 sm:$0xff]  }
 0x6de   :  { %7237 = vmatpush1.bf16.msra.mxu1 %v11958_v50  ;;  %7401 = vmatpush1.bf16.msra.mxu0 %v11961_v22  ;;  %v12030_v50 = vld [vmem:[#allocation11 + $0x520] ss:$16 sps:$4 sm:$0xff]   ;;  %v12033_v22 = vld [vmem:[#allocation11 + $0x528] ss:$16 sps:$4 sm:$0xff]  }
 0x6df   :  { %7238 = vmatprep.subr.bf16.mxu1 %v11966_v29  ;;  %7402 = vmatprep.subr.bf16.mxu0 %v11969_v55  ;;  %v12041_v29 = vld [vmem:[#allocation11 + $0x54c] ss:$16 sps:$4 sm:$0xff]   ;;  %v12036_v55 = vld [vmem:[#allocation11 + $0x540] ss:$16 sps:$4 sm:$0xff]  }
 0x6e2   :  { %7239 = vmatpush1.bf16.msra.mxu1 %v11964_v60  ;;  %7403 = vmatpush1.bf16.msra.mxu0 %v11967_v61  ;;  %v12044_v60 = vld [vmem:[#allocation11 + $0x564] ss:$16 sps:$4 sm:$0xff]   ;;  %v12047_v61 = vld [vmem:[#allocation11 + $0x56c] ss:$16 sps:$4 sm:$0xff]  }
 0x6e3   :  { %7240 = vmatprep.subr.bf16.mxu1 %v11972_v63  ;;  %7404 = vmatprep.subr.bf16.mxu0 %v11975_v1  ;;  %v12045_v63 = vld [vmem:[#allocation11 + $0x568] ss:$16 sps:$4 sm:$0xff]   ;;  %v12050_v1 = vld [vmem:[#allocation11 + $0x584] ss:$16 sps:$4 sm:$0xff]  }
 0x6e6   :  { %7241 = vmatpush1.bf16.msra.mxu1 %v11970_v2  ;;  %7405 = vmatpush1.bf16.msra.mxu0 %v11973_v51  ;;  %v12048_v2 = vld [vmem:[#allocation11 + $0x580] ss:$16 sps:$4 sm:$0xff]  }
 0x6e7   :  { %7251 = vmatprep.subr.bf16.mxu1 %v11978_v4  ;;  %7415 = vmatprep.subr.bf16.mxu0 %v11981_v5  ;;  %v12543_v51 = vld [vmem:[%s13277_s9 + $0x20] sm:$0xff]  ;;  %v12051_v4 = vld [vmem:[#allocation11 + $0x588] ss:$16 sps:$4 sm:$0xff]  }
 0x6e8   :  { %v5096_v3 = vrot.slane %v12543_v51, %v13120_v27  ;;  %v12056_v5 = vld [vmem:[#allocation11 + $0x5a4] ss:$16 sps:$4 sm:$0xff]   ;;  %v12125_v51 = vld [vmem:[#allocation11 + $0x70c] ss:$16 sps:$4 sm:$0xff]  }
 0x6e9   :  { %7243 = vmatmul.mubr.bf16.vlgmr.msra.gmra.mrb[48].mxu1 %v5611_v8  ;;  %7407 = vmatmul.mubr.bf16.vlgmr.msra.gmra.mrb[28].mxu0 %v5611_v8 }
 0x6ea   :  { %7252 = vmatpush1.bf16.msra.mxu1 %v11976_v7  ;;  %7283 = vmatprep.mubr.bf16.mxu1 %v5614_v12  ;;  %v12544_v7 = vld [vmem:[%s13277_s9 + $0x38] sm:$0xff] }
 0x6eb   :  { %7416 = vmatpush1.bf16.msra.mxu0 %v11979_v11  ;;  %7447 = vmatprep.mubr.bf16.mxu0 %v5614_v12  ;;  %v5108_v8 = vrot.slane %v12544_v7, %v13120_v27  ;;  %v12054_v11 = vld [vmem:[#allocation11 + $0x5a0] ss:$16 sps:$4 sm:$0xff]   ;;  %v5546_v12 = vadd.f32 %v13130_v9, %v5096_v3 }
 0x6ec   :  { %7253 = vmatprep.subr.bf16.mxu1 %v11984_v14  ;;  %7417 = vmatprep.subr.bf16.mxu0 %v11987_v16  ;;  %v12057_v14 = vld [vmem:[#allocation11 + $0x5a8] ss:$16 sps:$4 sm:$0xff]   ;;  %v12062_v16 = vld [vmem:[#allocation11 + $0x5c4] ss:$16 sps:$4 sm:$0xff]   ;;  %v12066_v9 = vld [vmem:[#allocation11 + $0x5e0] ss:$16 sps:$4 sm:$0xff]  }
 0x6ed   :  { %v12120_v3 = vld [vmem:[#allocation11 + $0x700] ss:$16 sps:$4 sm:$0xff]  }
 0x6ee   :  { %7254 = vmatpush1.bf16.msra.mxu1 %v11982_v18  ;;  %v12065_v18 = vld [vmem:[#allocation11 + $0x5cc] ss:$16 sps:$4 sm:$0xff]   ;;  %v12126_v7 = vld [vmem:[#allocation11 + $0x720] ss:$16 sps:$4 sm:$0xff]  }
 0x6ef   :  { %7418 = vmatpush1.bf16.msra.mxu0 %v11985_v19  ;;  %7255 = vmatprep.subr.bf16.mxu1 %v11990_v20  ;;  %v5589_v19 = vadd.f32 %v13136_v15, %v5108_v8  ;;  %v12060_v20 = vld [vmem:[#allocation11 + $0x5c0] ss:$16 sps:$4 sm:$0xff]   ;;  %v12129_v8 = vld [vmem:[#allocation11 + $0x728] ss:$16 sps:$4 sm:$0xff]  }
 0x6f0   :  { %7419 = vmatprep.subr.bf16.mxu0 %v11993_v24  ;;  %v5597_v24 = vmul.f32 0.01, %v5546_v12 }
 0x6f2   :  { %7256 = vmatpush1.bf16.msra.mxu1 %v11988_v25  ;;  %v12063_v25 = vld [vmem:[#allocation11 + $0x5c8] ss:$16 sps:$4 sm:$0xff]  }
 0x6f3   :  { %7420 = vmatpush1.bf16.msra.mxu0 %v11991_v26  ;;  %7257 = vmatprep.subr.bf16.mxu1 %v11996_v17  ;;  %v12068_v26 = vld [vmem:[#allocation11 + $0x5e4] ss:$16 sps:$4 sm:$0xff]   ;;  %v12071_v17 = vld [vmem:[#allocation11 + $0x5ec] ss:$16 sps:$4 sm:$0xff]  }
 0x6f4   :  { %7421 = vmatprep.subr.bf16.mxu0 %v11999_v28  ;;  %v5600_v28 = vmul.f32 0.01, %v5589_v19 }
 0x6f6   :  { %7258 = vmatpush1.bf16.msra.mxu1 %v11994_v30  ;;  %v5605_v30 = vmax.f32 %v5546_v12, %v5597_v24  ;;  %v5608_v15 = vmax.f32 %v5589_v19, %v5600_v28  ;;  %v12137_v12 = vld [vmem:[#allocation11 + $0x74c] ss:$16 sps:$4 sm:$0xff]   ;;  %v12141_v24 = vld [vmem:[#allocation11 + $0x768] ss:$16 sps:$4 sm:$0xff]   ;;  %v12545_v28 = vld [vmem:[%s13277_s9 + $0x30] sm:$0xff] }
 0x6f7   :  { %7422 = vmatpush1.bf16.msra.mxu0 %v11997_v31  ;;  %7259 = vmatprep.subr.bf16.mxu1 %v12002_v32  ;;  %v12069_v31 = vld [vmem:[#allocation11 + $0x5e8] ss:$16 sps:$4 sm:$0xff]   ;;  %v12074_v32 = vld [vmem:[#allocation11 + $0x604] ss:$16 sps:$4 sm:$0xff]   ;;  %v12143_v19 = vld [vmem:[#allocation11 + $0x76c] ss:$16 sps:$4 sm:$0xff]  }
 0x6f8   :  { %7423 = vmatprep.subr.bf16.mxu0 %v12005_v23  ;;  %v12077_v23 = vld [vmem:[#allocation11 + $0x60c] ss:$16 sps:$4 sm:$0xff]  }
 0x6fa   :  { %7260 = vmatpush1.bf16.msra.mxu1 %v12000_v33  ;;  %v12072_v33 = vld [vmem:[#allocation11 + $0x600] ss:$16 sps:$4 sm:$0xff]  }
 0x6fb   :  { %7424 = vmatpush1.bf16.msra.mxu0 %v12003_v34  ;;  %7261 = vmatprep.subr.bf16.mxu1 %v12008_v36  ;;  %v5613_v34 = vpack.c.bf16 %v5605_v30, %v5605_v30  ;;  %v12075_v36 = vld [vmem:[#allocation11 + $0x608] ss:$16 sps:$4 sm:$0xff]  }
 0x6fc   :  { %7425 = vmatprep.subr.bf16.mxu0 %v12011_v37  ;;  %v12080_v37 = vld [vmem:[#allocation11 + $0x624] ss:$16 sps:$4 sm:$0xff]   ;;  %v12147_v30 = vld [vmem:[#allocation11 + $0x788] ss:$16 sps:$4 sm:$0xff]  }
 0x6fe   :  { %7262 = vmatpush1.bf16.msra.mxu1 %v12006_v38  ;;  %v5616_v38 = vpack.c.bf16 %v5608_v15, %v5608_v15 }
 0x6ff   :  { %7426 = vmatpush1.bf16.msra.mxu0 %v12009_v56  ;;  %7263 = vmatprep.subr.bf16.mxu1 %v12014_v39  ;;  %v12083_v56 = vld [vmem:[#allocation11 + $0x62c] ss:$16 sps:$4 sm:$0xff]   ;;  %v12078_v39 = vld [vmem:[#allocation11 + $0x620] ss:$16 sps:$4 sm:$0xff]  }
 0x700   :  { %7427 = vmatprep.subr.bf16.mxu0 %v12017_v41  ;;  %v12081_v41 = vld [vmem:[#allocation11 + $0x628] ss:$16 sps:$4 sm:$0xff]  }
 0x702   :  { %7264 = vmatpush1.bf16.msra.mxu1 %v12012_v53  ;;  %v12086_v53 = vld [vmem:[#allocation11 + $0x644] ss:$16 sps:$4 sm:$0xff]  }
 0x703   :  { %7428 = vmatpush1.bf16.msra.mxu0 %v12015_v13  ;;  %7265 = vmatprep.subr.bf16.mxu1 %v12020_v42  ;;  %v12089_v13 = vld [vmem:[#allocation11 + $0x64c] ss:$16 sps:$4 sm:$0xff]   ;;  %v12084_v42 = vld [vmem:[#allocation11 + $0x640] ss:$16 sps:$4 sm:$0xff]  }
 0x704   :  { %7429 = vmatprep.subr.bf16.mxu0 %v12023_v54  ;;  %v12087_v54 = vld [vmem:[#allocation11 + $0x648] ss:$16 sps:$4 sm:$0xff]  }
 0x706   :  { %7266 = vmatpush1.bf16.msra.mxu1 %v12018_v43  ;;  %v12092_v43 = vld [vmem:[#allocation11 + $0x664] ss:$16 sps:$4 sm:$0xff]  }
 0x707   :  { %7430 = vmatpush1.bf16.msra.mxu0 %v12021_v44  ;;  %7267 = vmatprep.subr.bf16.mxu1 %v12026_v58  ;;  %v12095_v44 = vld [vmem:[#allocation11 + $0x66c] ss:$16 sps:$4 sm:$0xff]   ;;  %v12090_v58 = vld [vmem:[#allocation11 + $0x660] ss:$16 sps:$4 sm:$0xff]  }
 0x708   :  { %7431 = vmatprep.subr.bf16.mxu0 %v12029_v57  ;;  %v12093_v57 = vld [vmem:[#allocation11 + $0x668] ss:$16 sps:$4 sm:$0xff]  }
 0x70a   :  { %7268 = vmatpush1.bf16.msra.mxu1 %v12024_v47  ;;  %v12098_v47 = vld [vmem:[#allocation11 + $0x684] ss:$16 sps:$4 sm:$0xff]  }
 0x70b   :  { %7432 = vmatpush1.bf16.msra.mxu0 %v12027_v48  ;;  %7269 = vmatprep.subr.bf16.mxu1 %v12032_v21  ;;  %v12101_v48 = vld [vmem:[#allocation11 + $0x68c] ss:$16 sps:$4 sm:$0xff]   ;;  %v12096_v21 = vld [vmem:[#allocation11 + $0x680] ss:$16 sps:$4 sm:$0xff]  }
 0x70c   :  { %7433 = vmatprep.subr.bf16.mxu0 %v12035_v49  ;;  %v12099_v49 = vld [vmem:[#allocation11 + $0x688] ss:$16 sps:$4 sm:$0xff]  }
 0x70e   :  { %7270 = vmatpush1.bf16.msra.mxu1 %v12030_v50  ;;  %v12104_v50 = vld [vmem:[#allocation11 + $0x6a4] ss:$16 sps:$4 sm:$0xff]  }
 0x70f   :  { %7434 = vmatpush1.bf16.msra.mxu0 %v12033_v22  ;;  %7271 = vmatprep.subr.bf16.mxu1 %v12038_v0  ;;  %v12107_v22 = vld [vmem:[#allocation11 + $0x6ac] ss:$16 sps:$4 sm:$0xff]   ;;  %v12102_v0 = vld [vmem:[#allocation11 + $0x6a0] ss:$16 sps:$4 sm:$0xff]  }
 0x710   :  { %7435 = vmatprep.subr.bf16.mxu0 %v12041_v29  ;;  %v12105_v29 = vld [vmem:[#allocation11 + $0x6a8] ss:$16 sps:$4 sm:$0xff]  }
 0x712   :  { %7272 = vmatpush1.bf16.msra.mxu1 %v12036_v55  ;;  %v12110_v55 = vld [vmem:[#allocation11 + $0x6c4] ss:$16 sps:$4 sm:$0xff]  }
 0x713   :  { %7436 = vmatpush1.bf16.msra.mxu0 %v12039_v59  ;;  %7273 = vmatprep.subr.bf16.mxu1 %v12044_v60  ;;  %v12113_v59 = vld [vmem:[#allocation11 + $0x6cc] ss:$16 sps:$4 sm:$0xff]   ;;  %v12108_v60 = vld [vmem:[#allocation11 + $0x6c0] ss:$16 sps:$4 sm:$0xff]  }
 0x714   :  { %7437 = vmatprep.subr.bf16.mxu0 %v12047_v61  ;;  %v12111_v61 = vld [vmem:[#allocation11 + $0x6c8] ss:$16 sps:$4 sm:$0xff]  }
 0x716   :  { %7274 = vmatpush1.bf16.msra.mxu1 %v12042_v62  ;;  %v12116_v62 = vld [vmem:[#allocation11 + $0x6e4] ss:$16 sps:$4 sm:$0xff]  }
 0x717   :  { %7438 = vmatpush1.bf16.msra.mxu0 %v12045_v63  ;;  %7275 = vmatprep.subr.bf16.mxu1 %v12050_v1  ;;  %v12119_v63 = vld [vmem:[#allocation11 + $0x6ec] ss:$16 sps:$4 sm:$0xff]   ;;  %v12114_v1 = vld [vmem:[#allocation11 + $0x6e0] ss:$16 sps:$4 sm:$0xff]  }
 0x718   :  { %7439 = vmatprep.subr.bf16.mxu0 %v12053_v35  ;;  %v12117_v35 = vld [vmem:[#allocation11 + $0x6e8] ss:$16 sps:$4 sm:$0xff]  }
 0x71a   :  { %7276 = vmatpush1.bf16.msra.mxu1 %v12048_v2  ;;  %v12122_v2 = vld [vmem:[#allocation11 + $0x704] ss:$16 sps:$4 sm:$0xff]  }
 0x71b   :  { %7440 = vmatpush1.bf16.msra.mxu0 %v12051_v4  ;;  %7277 = vmatprep.subr.bf16.mxu1 %v12056_v5  ;;  %v12123_v4 = vld [vmem:[#allocation11 + $0x708] ss:$16 sps:$4 sm:$0xff]   ;;  %v12128_v5 = vld [vmem:[#allocation11 + $0x724] ss:$16 sps:$4 sm:$0xff]  }
 0x71c   :  { %7441 = vmatprep.subr.bf16.mxu0 %v12059_v6  ;;  %v12131_v6 = vld [vmem:[#allocation11 + $0x72c] ss:$16 sps:$4 sm:$0xff]  }
 0x71e   :  { %7278 = vmatpush1.bf16.msra.mxu1 %v12054_v11  ;;  %v12134_v11 = vld [vmem:[#allocation11 + $0x744] ss:$16 sps:$4 sm:$0xff]  }
 0x71f   :  { %7442 = vmatpush1.bf16.msra.mxu0 %v12057_v14  ;;  %7279 = vmatprep.subr.bf16.mxu1 %v12062_v16  ;;  %v12132_v14 = vld [vmem:[#allocation11 + $0x740] ss:$16 sps:$4 sm:$0xff]   ;;  %v12135_v16 = vld [vmem:[#allocation11 + $0x748] ss:$16 sps:$4 sm:$0xff]  }
 0x720   :  { %7443 = vmatprep.subr.bf16.mxu0 %v12065_v18  ;;  %v12140_v18 = vld [vmem:[#allocation11 + $0x764] ss:$16 sps:$4 sm:$0xff]  }
 0x722   :  { %7280 = vmatpush1.bf16.msra.mxu1 %v12060_v20  ;;  %v12138_v20 = vld [vmem:[#allocation11 + $0x760] ss:$16 sps:$4 sm:$0xff]  }
 0x723   :  { %7444 = vmatpush1.bf16.msra.mxu0 %v12063_v25  ;;  %7281 = vmatprep.subr.bf16.mxu1 %v12068_v26  ;;  %v12146_v25 = vld [vmem:[#allocation11 + $0x784] ss:$16 sps:$4 sm:$0xff]   ;;  %v12149_v26 = vld [vmem:[#allocation11 + $0x78c] ss:$16 sps:$4 sm:$0xff]  }
 0x724   :  { %7445 = vmatprep.subr.bf16.mxu0 %v12071_v17  ;;  %v12144_v17 = vld [vmem:[#allocation11 + $0x780] ss:$16 sps:$4 sm:$0xff]  }
 0x726   :  { %7282 = vmatpush1.bf16.msra.mxu1 %v12066_v9  ;;  %v5104_v9 = vrot.slane %v12545_v28, %v13120_v27  ;;  %v12159_v27 = vld [vmem:[#allocation11 + $0x7c8] ss:$16 sps:$4 sm:$0xff]  }
 0x727   :  { %7446 = vmatpush1.bf16.msra.mxu0 %v12069_v31  ;;  %7292 = vmatprep.subr.bf16.mxu1 %v12074_v32  ;;  %v12152_v31 = vld [vmem:[#allocation11 + $0x7a4] ss:$16 sps:$4 sm:$0xff]   ;;  %v12155_v32 = vld [vmem:[#allocation11 + $0x7ac] ss:$16 sps:$4 sm:$0xff]  }
 0x728   :  { %7456 = vmatprep.subr.bf16.mxu0 %v12077_v23  ;;  %v12150_v23 = vld [vmem:[#allocation11 + $0x7a0] ss:$16 sps:$4 sm:$0xff]   ;;  %v5587_v15 = vadd.f32 %v13132_v10, %v5104_v9  ;;  %v12165_v10 = vld [vmem:[#allocation11 + $0x7e8] ss:$16 sps:$4 sm:$0xff]  }
 0x729   :  { %7284 = vmatmul.mubr.bf16.vlgmr.msra.gmra.mrb[48].mxu1 %v5613_v34  ;;  %v12225_v28 = vld [vmem:[#allocation13 + $0x158] ss:$12 sps:$4 sm:$0xff]   ;;  %v12222_v9 = vld [vmem:[#allocation13 + $0x150] ss:$12 sps:$4 sm:$0xff]  }
 0x72a   :  { %7448 = vmatmul.mubr.bf16.vlgmr.msra.gmra.mrb[28].mxu0 %v5613_v34  ;;  %7293 = vmatpush1.bf16.msra.mxu1 %v12072_v33  ;;  %v12153_v33 = vld [vmem:[#allocation11 + $0x7a8] ss:$16 sps:$4 sm:$0xff]   ;;  %v12158_v34 = vld [vmem:[#allocation11 + $0x7c4] ss:$16 sps:$4 sm:$0xff]  }
 0x72b   :  { %7324 = vmatprep.mubr.bf16.mxu1 %v5616_v38  ;;  %7457 = vmatpush1.bf16.msra.mxu0 %v12075_v36  ;;  %v12161_v36 = vld [vmem:[#allocation11 + $0x7cc] ss:$16 sps:$4 sm:$0xff]  }
 0x72c   :  { %7488 = vmatprep.mubr.bf16.mxu0 %v5616_v38  ;;  %7294 = vmatprep.subr.bf16.mxu1 %v12080_v37  ;;  %v12156_v37 = vld [vmem:[#allocation11 + $0x7c0] ss:$16 sps:$4 sm:$0xff]   ;;  %v5599_v38 = vmul.f32 0.01, %v5587_v15 }
 0x72d   :  { %7458 = vmatprep.subr.bf16.mxu0 %v12083_v56  ;;  %v12164_v56 = vld [vmem:[#allocation11 + $0x7e4] ss:$16 sps:$4 sm:$0xff]  }
 0x72e   :  { %7295 = vmatpush1.bf16.msra.mxu1 %v12078_v39  ;;  %v12167_v39 = vld [vmem:[#allocation11 + $0x7ec] ss:$16 sps:$4 sm:$0xff]  }
 0x72f   :  { %7459 = vmatpush1.bf16.msra.mxu0 %v12081_v41  ;;  %7296 = vmatprep.subr.bf16.mxu1 %v12086_v53  ;;  %v12162_v41 = vld [vmem:[#allocation11 + $0x7e0] ss:$16 sps:$4 sm:$0xff]   ;;  %v5607_v53 = vmax.f32 %v5587_v15, %v5599_v38 }
 0x730   :  { %7460 = vmatprep.subr.bf16.mxu0 %v12089_v13  ;;  %v12170_v13 = vld [vmem:[#allocation13 + $0x4] ss:$12 sps:$4 sm:$0xff]  }
 0x731   :  { %v12231_v15 = vld [vmem:[#allocation13 + $0xb0] ss:$12 sps:$4 sm:$0xff]  }
 0x732   :  { %7297 = vmatpush1.bf16.msra.mxu1 %v12084_v42  ;;  %v12195_v42 = vld [vmem:[#allocation13 + $0xc8] ss:$12 sps:$4 sm:$0xff]  }
 0x733   :  { %7461 = vmatpush1.bf16.msra.mxu0 %v12087_v54  ;;  %7298 = vmatprep.subr.bf16.mxu1 %v12092_v43  ;;  %v12168_v54 = vld [vmem:[#allocation13] ss:$12 sps:$4 sm:$0xff]   ;;  %v5615_v43 = vpack.c.bf16 %v5607_v53, %v5607_v53 }
 0x734   :  { %7462 = vmatprep.subr.bf16.mxu0 %v12095_v44  ;;  %v12173_v44 = vld [vmem:[#allocation13 + $0x1c] ss:$12 sps:$4 sm:$0xff]  }
 0x736   :  { %7299 = vmatpush1.bf16.msra.mxu1 %v12090_v58  ;;  %v12196_v58 = vld [vmem:[#allocation13 + $0x8] ss:$12 sps:$4 sm:$0xff]  }
 0x737   :  { %7463 = vmatpush1.bf16.msra.mxu0 %v12093_v57  ;;  %7300 = vmatprep.subr.bf16.mxu1 %v12098_v47  ;;  %v12200_v57 = vld [vmem:[#allocation13 + $0xe0] ss:$12 sps:$4 sm:$0xff]   ;;  %v12171_v47 = vld [vmem:[#allocation13 + $0x18] ss:$12 sps:$4 sm:$0xff]  }
 0x738   :  { %7464 = vmatprep.subr.bf16.mxu0 %v12101_v48  ;;  %v12176_v48 = vld [vmem:[#allocation13 + $0x34] ss:$12 sps:$4 sm:$0xff]  }
 0x73a   :  { %7301 = vmatpush1.bf16.msra.mxu1 %v12096_v21  ;;  %v12201_v21 = vld [vmem:[#allocation13 + $0x20] ss:$12 sps:$4 sm:$0xff]  }
 0x73b   :  { %7465 = vmatpush1.bf16.msra.mxu0 %v12099_v49  ;;  %7302 = vmatprep.subr.bf16.mxu1 %v12104_v50  ;;  %v12205_v49 = vld [vmem:[#allocation13 + $0xf8] ss:$12 sps:$4 sm:$0xff]   ;;  %v12174_v50 = vld [vmem:[#allocation13 + $0x30] ss:$12 sps:$4 sm:$0xff]  }
 0x73c   :  { %7466 = vmatprep.subr.bf16.mxu0 %v12107_v22  ;;  %v12179_v22 = vld [vmem:[#allocation13 + $0x4c] ss:$12 sps:$4 sm:$0xff]  }
 0x73e   :  { %7303 = vmatpush1.bf16.msra.mxu1 %v12102_v0  ;;  %v12206_v0 = vld [vmem:[#allocation13 + $0x38] ss:$12 sps:$4 sm:$0xff]  }
 0x73f   :  { %7467 = vmatpush1.bf16.msra.mxu0 %v12105_v29  ;;  %7304 = vmatprep.subr.bf16.mxu1 %v12110_v55  ;;  %v12210_v29 = vld [vmem:[#allocation13 + $0x110] ss:$12 sps:$4 sm:$0xff]   ;;  %v12177_v55 = vld [vmem:[#allocation13 + $0x48] ss:$12 sps:$4 sm:$0xff]  }
 0x740   :  { %7468 = vmatprep.subr.bf16.mxu0 %v12113_v59  ;;  %v12182_v59 = vld [vmem:[#allocation13 + $0x64] ss:$12 sps:$4 sm:$0xff]  }
 0x742   :  { %7305 = vmatpush1.bf16.msra.mxu1 %v12108_v60  ;;  %v12211_v60 = vld [vmem:[#allocation13 + $0x50] ss:$12 sps:$4 sm:$0xff]  }
 0x743   :  { %7469 = vmatpush1.bf16.msra.mxu0 %v12111_v61  ;;  %7306 = vmatprep.subr.bf16.mxu1 %v12116_v62  ;;  %v12215_v61 = vld [vmem:[#allocation13 + $0x128] ss:$12 sps:$4 sm:$0xff]   ;;  %v12180_v62 = vld [vmem:[#allocation13 + $0x60] ss:$12 sps:$4 sm:$0xff]  }
 0x744   :  { %7470 = vmatprep.subr.bf16.mxu0 %v12119_v63  ;;  %v12185_v63 = vld [vmem:[#allocation13 + $0x7c] ss:$12 sps:$4 sm:$0xff]  }
 0x746   :  { %7307 = vmatpush1.bf16.msra.mxu1 %v12114_v1  ;;  %v12216_v1 = vld [vmem:[#allocation13 + $0x68] ss:$12 sps:$4 sm:$0xff]  }
 0x747   :  { %7471 = vmatpush1.bf16.msra.mxu0 %v12117_v35  ;;  %7308 = vmatprep.subr.bf16.mxu1 %v12122_v2  ;;  %v12220_v35 = vld [vmem:[#allocation13 + $0x140] ss:$12 sps:$4 sm:$0xff]   ;;  %v12183_v2 = vld [vmem:[#allocation13 + $0x78] ss:$12 sps:$4 sm:$0xff]  }
 0x748   :  { %7472 = vmatprep.subr.bf16.mxu0 %v12125_v51  ;;  %v12188_v51 = vld [vmem:[#allocation13 + $0x94] ss:$12 sps:$4 sm:$0xff]  }
 0x74a   :  { %7309 = vmatpush1.bf16.msra.mxu1 %v12120_v3  ;;  %v12221_v3 = vld [vmem:[#allocation13 + $0x80] ss:$12 sps:$4 sm:$0xff]  }
 0x74b   :  { %7473 = vmatpush1.bf16.msra.mxu0 %v12123_v4  ;;  %7310 = vmatprep.subr.bf16.mxu1 %v12128_v5  ;;  %v12186_v4 = vld [vmem:[#allocation13 + $0x90] ss:$12 sps:$4 sm:$0xff]   ;;  %v12191_v5 = vld [vmem:[#allocation13 + $0xac] ss:$12 sps:$4 sm:$0xff]  }
 0x74c   :  { %7474 = vmatprep.subr.bf16.mxu0 %v12131_v6  ;;  %v12189_v6 = vld [vmem:[#allocation13 + $0xa8] ss:$12 sps:$4 sm:$0xff]  }
 0x74e   :  { %7311 = vmatpush1.bf16.msra.mxu1 %v12126_v7  ;;  %v12194_v7 = vld [vmem:[#allocation13 + $0xc4] ss:$12 sps:$4 sm:$0xff]  }
 0x74f   :  { %7475 = vmatpush1.bf16.msra.mxu0 %v12129_v8  ;;  %7312 = vmatprep.subr.bf16.mxu1 %v12134_v11  ;;  %v12192_v8 = vld [vmem:[#allocation13 + $0xc0] ss:$12 sps:$4 sm:$0xff]   ;;  %v12199_v11 = vld [vmem:[#allocation13 + $0xdc] ss:$12 sps:$4 sm:$0xff]  }
 0x750   :  { %7476 = vmatprep.subr.bf16.mxu0 %v12137_v12  ;;  %v12197_v12 = vld [vmem:[#allocation13 + $0xd8] ss:$12 sps:$4 sm:$0xff]  }
 0x752   :  { %7313 = vmatpush1.bf16.msra.mxu1 %v12132_v14  ;;  %v12204_v14 = vld [vmem:[#allocation13 + $0xf4] ss:$12 sps:$4 sm:$0xff]  }
 0x753   :  { %7477 = vmatpush1.bf16.msra.mxu0 %v12135_v16  ;;  %7314 = vmatprep.subr.bf16.mxu1 %v12140_v18  ;;  %v12202_v16 = vld [vmem:[#allocation13 + $0xf0] ss:$12 sps:$4 sm:$0xff]   ;;  %v12209_v18 = vld [vmem:[#allocation13 + $0x10c] ss:$12 sps:$4 sm:$0xff]  }
 0x754   :  { %7478 = vmatprep.subr.bf16.mxu0 %v12143_v19  ;;  %v12207_v19 = vld [vmem:[#allocation13 + $0x108] ss:$12 sps:$4 sm:$0xff]  }
 0x756   :  { %7315 = vmatpush1.bf16.msra.mxu1 %v12138_v20  ;;  %v12214_v20 = vld [vmem:[#allocation13 + $0x124] ss:$12 sps:$4 sm:$0xff]  }
 0x757   :  { %7479 = vmatpush1.bf16.msra.mxu0 %v12141_v24  ;;  %7316 = vmatprep.subr.bf16.mxu1 %v12146_v25  ;;  %v12212_v24 = vld [vmem:[#allocation13 + $0x120] ss:$12 sps:$4 sm:$0xff]   ;;  %v12219_v25 = vld [vmem:[#allocation13 + $0x13c] ss:$12 sps:$4 sm:$0xff]  }
 0x758   :  { %7480 = vmatprep.subr.bf16.mxu0 %v12149_v26  ;;  %v12217_v26 = vld [vmem:[#allocation13 + $0x138] ss:$12 sps:$4 sm:$0xff]  }
 0x75a   :  { %7317 = vmatpush1.bf16.msra.mxu1 %v12144_v17  ;;  %v12224_v17 = vld [vmem:[#allocation13 + $0x154] ss:$12 sps:$4 sm:$0xff]  }
 0x75b   :  { %7481 = vmatpush1.bf16.msra.mxu0 %v12147_v30  ;;  %7318 = vmatprep.subr.bf16.mxu1 %v12152_v31  ;;  %v12226_v30 = vld [vmem:[#allocation13 + $0x98] ss:$12 sps:$4 sm:$0xff]  }
 0x75c   :  { %7482 = vmatprep.subr.bf16.mxu0 %v12155_v32  ;;  %v12229_v31 = vld [vmem:[#allocation13 + $0x16c] ss:$12 sps:$4 sm:$0xff]   ;;  %v12230_v32 = vld [vmem:[#allocation13 + $0x170] ss:$12 sps:$4 sm:$0xff]  }
 0x75e   :  { %7319 = vmatpush1.bf16.msra.mxu1 %v12150_v23  ;;  %v12227_v23 = vld [vmem:[#allocation13 + $0x168] ss:$12 sps:$4 sm:$0xff]  }
 0x75f   :  { %7483 = vmatpush1.bf16.msra.mxu0 %v12153_v33  ;;  %7320 = vmatprep.subr.bf16.mxu1 %v12158_v34  ;;  %v12234_v33 = vld [vmem:[#allocation13 + $0x184] ss:$12 sps:$4 sm:$0xff]   ;;  %v12235_v34 = vld [vmem:[#allocation13 + $0x248] ss:$12 sps:$4 sm:$0xff]  }
 0x760   :  { %7484 = vmatprep.subr.bf16.mxu0 %v12161_v36  ;;  %v13167_v36 = vsub.s32 5, %v12997_v46 }
 0x762   :  { %7321 = vmatpush1.bf16.msra.mxu1 %v12156_v37  ;;  %v13172_v37 = vld [vmem:[%s13277_s9] sm:$0xff] }
 0x763   :  { %7485 = vmatpush1.bf16.msra.mxu0 %v12159_v27  ;;  %7322 = vmatprep.subr.bf16.mxu1 %v12164_v56  ;;  %v5876_v38 = vrot.slane %v13172_v37, %v13167_v36  ;;  %v13179_v27 = vld [vmem:[%s13277_s9 + $0x8] sm:$0xff] }
 0x764   :  { %7486 = vmatprep.subr.bf16.mxu0 %v12167_v39  ;;  %v5880_v56 = vrot.slane %v13179_v27, %v13167_v36  ;;  %v12548_v39 = vld [vmem:[%s13277_s9 + $0x18] sm:$0xff] }
 0x766   :  { %7323 = vmatpush1.bf16.msra.mxu1 %v12162_v41  ;;  %v5888_v41 = vrot.slane %v12548_v39, %v13167_v36  ;;  %v12277_v39 = vld [vmem:[#allocation13 + $0x25c] ss:$12 sps:$4 sm:$0xff]  }
 0x767   :  { %7487 = vmatpush1.bf16.msra.mxu0 %v12165_v10  ;;  %8161 = vmatprep.subr.bf16.mxu1 %v12170_v13 }
 0x768   :  { %11106 = vmatprep.subr.bf16.mxu0 %v12195_v42 }
 0x769   :  { %7325 = vmatmul.mubr.bf16.vlgmr.msra.gmra.mrb[48].mxu1 %v5615_v43 }
 0x76a   :  { %7489 = vmatmul.mubr.bf16.vlgmr.msra.gmra.mrb[28].mxu0 %v5615_v43  ;;  %8162 = vmatpush1.bf16.msra.mxu1 %v12168_v54 }
 0x76b   :  { %8163 = vmatprep.subr.bf16.mxu1 %v12173_v44  ;;  %11107 = vmatpush3.bf16.msra.mxu0 %v12196_v58 }
 0x76c   :  { %11108 = vmatprep.subr.bf16.mxu0 %v12200_v57 }
 0x76e   :  { %8164 = vmatpush1.bf16.msra.mxu1 %v12171_v47 }
 0x76f   :  { %8165 = vmatprep.subr.bf16.mxu1 %v12176_v48  ;;  %11109 = vmatpush3.bf16.msra.mxu0 %v12201_v21 }
 0x770   :  { %11110 = vmatprep.subr.bf16.mxu0 %v12205_v49 }
 0x772   :  { %8166 = vmatpush1.bf16.msra.mxu1 %v12174_v50 }
 0x773   :  { %8167 = vmatprep.subr.bf16.mxu1 %v12179_v22  ;;  %11111 = vmatpush3.bf16.msra.mxu0 %v12206_v0 }
 0x774   :  { %11112 = vmatprep.subr.bf16.mxu0 %v12210_v29 }
 0x776   :  { %8168 = vmatpush1.bf16.msra.mxu1 %v12177_v55 }
 0x777   :  { %8169 = vmatprep.subr.bf16.mxu1 %v12182_v59  ;;  %11113 = vmatpush3.bf16.msra.mxu0 %v12211_v60  ;;  %v12232_v59 = vld [vmem:[#allocation13 + $0x180] ss:$12 sps:$4 sm:$0xff]   ;;  %v12236_v60 = vld [vmem:[#allocation13 + $0x188] ss:$12 sps:$4 sm:$0xff]  }
 0x778   :  { %11114 = vmatprep.subr.bf16.mxu0 %v12215_v61 }
 0x77a   :  { %8170 = vmatpush1.bf16.msra.mxu1 %v12180_v62  ;;  %v12239_v62 = vld [vmem:[#allocation13 + $0x19c] ss:$12 sps:$4 sm:$0xff]  }
 0x77b   :  { %8171 = vmatprep.subr.bf16.mxu1 %v12185_v63  ;;  %11115 = vmatpush3.bf16.msra.mxu0 %v12216_v1  ;;  %v12240_v63 = vld [vmem:[#allocation13 + $0x260] ss:$12 sps:$4 sm:$0xff]  }
 0x77c   :  { %11116 = vmatprep.subr.bf16.mxu0 %v12220_v35  ;;  %v12237_v35 = vld [vmem:[#allocation13 + $0x198] ss:$12 sps:$4 sm:$0xff]  }
 0x77e   :  { %8172 = vmatpush1.bf16.msra.mxu1 %v12183_v2  ;;  %v12241_v2 = vld [vmem:[#allocation13 + $0x1a0] ss:$12 sps:$4 sm:$0xff]  }
 0x77f   :  { %8173 = vmatprep.subr.bf16.mxu1 %v12188_v51  ;;  %11117 = vmatpush3.bf16.msra.mxu0 %v12221_v3  ;;  %v12244_v51 = vld [vmem:[#allocation13 + $0x1b4] ss:$12 sps:$4 sm:$0xff]   ;;  %v12245_v3 = vld [vmem:[#allocation13 + $0x278] ss:$12 sps:$4 sm:$0xff]  }
 0x780   :  { %11118 = vmatprep.subr.bf16.mxu0 %v12225_v28  ;;  %v12264_v28 = vld [vmem:[#allocation13 + $0x214] ss:$12 sps:$4 sm:$0xff]  }
 0x782   :  { %8174 = vmatpush1.bf16.msra.mxu1 %v12186_v4  ;;  %v12242_v4 = vld [vmem:[#allocation13 + $0x1b0] ss:$12 sps:$4 sm:$0xff]  }
 0x783   :  { %8175 = vmatprep.subr.bf16.mxu1 %v12191_v5  ;;  %11119 = vmatpush3.bf16.msra.mxu0 %v12226_v30  ;;  %v12246_v5 = vld [vmem:[#allocation13 + $0x1b8] ss:$12 sps:$4 sm:$0xff]   ;;  %v12262_v30 = vld [vmem:[#allocation13 + $0x210] ss:$12 sps:$4 sm:$0xff]  }
 0x784   :  { %11120 = vmatprep.subr.bf16.mxu0 %v12230_v32 }
 0x786   :  { %8176 = vmatpush1.bf16.msra.mxu1 %v12189_v6  ;;  %v12249_v6 = vld [vmem:[#allocation13 + $0x1cc] ss:$12 sps:$4 sm:$0xff]  }
 0x787   :  { %8177 = vmatprep.subr.bf16.mxu1 %v12194_v7  ;;  %11121 = vmatpush3.bf16.msra.mxu0 %v12231_v15  ;;  %v12250_v7 = vld [vmem:[#allocation13 + $0x290] ss:$12 sps:$4 sm:$0xff]   ;;  %v12267_v15 = vld [vmem:[#allocation13 + $0x228] ss:$12 sps:$4 sm:$0xff]  }
 0x788   :  { %11128 = vmatprep.subr.bf16.mxu0 %v12235_v34 }
 0x78a   :  { %8178 = vmatpush1.bf16.msra.mxu1 %v12192_v8  ;;  %v12247_v8 = vld [vmem:[#allocation13 + $0x1c8] ss:$12 sps:$4 sm:$0xff]  }
 0x78b   :  { %8179 = vmatprep.subr.bf16.mxu1 %v12199_v11  ;;  %v12251_v11 = vld [vmem:[#allocation13 + $0x1d0] ss:$12 sps:$4 sm:$0xff]  }
 0x78e   :  { %8180 = vmatpush1.bf16.msra.mxu1 %v12197_v12  ;;  %v12254_v12 = vld [vmem:[#allocation13 + $0x1e4] ss:$12 sps:$4 sm:$0xff]  }
 0x78f   :  { %8181 = vmatprep.subr.bf16.mxu1 %v12204_v14  ;;  %v12255_v14 = vld [vmem:[#allocation13 + $0x2a8] ss:$12 sps:$4 sm:$0xff]  }
 0x792   :  { %8182 = vmatpush1.bf16.msra.mxu1 %v12202_v16  ;;  %v12252_v16 = vld [vmem:[#allocation13 + $0x1e0] ss:$12 sps:$4 sm:$0xff]  }
 0x793   :  { %8183 = vmatprep.subr.bf16.mxu1 %v12209_v18  ;;  %v12256_v18 = vld [vmem:[#allocation13 + $0x1e8] ss:$12 sps:$4 sm:$0xff]  }
 0x796   :  { %8184 = vmatpush1.bf16.msra.mxu1 %v12207_v19  ;;  %v5884_v19 = vrot.slane %v13141_v45, %v13167_v36  ;;  %v12269_v45 = vld [vmem:[#allocation13 + $0x22c] ss:$12 sps:$4 sm:$0xff]   ;;  %v12274_v36 = vld [vmem:[#allocation13 + $0x244] ss:$12 sps:$4 sm:$0xff]  }
 0x797   :  { %8185 = vmatprep.subr.bf16.mxu1 %v12214_v20  ;;  %v12259_v20 = vld [vmem:[#allocation13 + $0x1fc] ss:$12 sps:$4 sm:$0xff]  }
 0x79a   :  { %8186 = vmatpush1.bf16.msra.mxu1 %v12212_v24  ;;  %v12260_v24 = vld [vmem:[#allocation13 + $0x2c0] ss:$12 sps:$4 sm:$0xff]  }
 0x79b   :  { %8187 = vmatprep.subr.bf16.mxu1 %v12219_v25  ;;  %v12257_v25 = vld [vmem:[#allocation13 + $0x1f8] ss:$12 sps:$4 sm:$0xff]  }
 0x79e   :  { %8188 = vmatpush1.bf16.msra.mxu1 %v12217_v26  ;;  %v12261_v26 = vld [vmem:[#allocation13 + $0x200] ss:$12 sps:$4 sm:$0xff]  }
 0x79f   :  { %8189 = vmatprep.subr.bf16.mxu1 %v12224_v17 }
 0x7a2   :  { %8190 = vmatpush1.bf16.msra.mxu1 %v12222_v9  ;;  %v12265_v9 = vld [vmem:[#allocation13 + $0x2d8] ss:$12 sps:$4 sm:$0xff]  }
 0x7a3   :  { %8191 = vmatprep.subr.bf16.mxu1 %v12229_v31  ;;  %v12266_v31 = vld [vmem:[#allocation13 + $0x218] ss:$12 sps:$4 sm:$0xff]  }
 0x7a6   :  { %8192 = vmatpush1.bf16.msra.mxu1 %v12227_v23  ;;  %v12270_v23 = vld [vmem:[#allocation13 + $0x2f0] ss:$12 sps:$4 sm:$0xff]  }
 0x7a7   :  { %8202 = vmatprep.subr.bf16.mxu1 %v12234_v33  ;;  %v12271_v33 = vld [vmem:[#allocation13 + $0x230] ss:$12 sps:$4 sm:$0xff]  }
 0x83c   :  { %v7326_v53 = vpop.f32.mrb[48].mxu1 }
 0x83d   :  { %v11235_v10 = vadd.f32 %v7326_v53, %v5876_v38  ;;  %v13187_v13 = vpop.f32.mrb[28].mxu0  ;;  %v7328_v42 = vpop.f32.mrb[49].mxu1  ;;  %v12272_v38 = vld [vmem:[#allocation13 + $0x240] ss:$12 sps:$4 sm:$0xff]  }
 0x83e   :  { %v11236_v54 = vadd.f32 %v7328_v42, %v5880_v56  ;;  %v7492_v43 = vpop.f32.mrb[29].mxu0  ;;  %v7330_v44 = vpop.f32.mrb[50].mxu1  ;;  %v11237_v17 = vadd.f32 %v13187_v13, %v5884_v19  ;;  %v12280_v53 = vld [vmem:[#allocation13 + $0x274] ss:$12 sps:$4 sm:$0xff]   ;;  %v12283_v13 = vld [vmem:[#allocation13 + $0x28c] ss:$12 sps:$4 sm:$0xff]  }
 0x83f   :  { %v7497_v58 = vmul.f32 0.01, %v11235_v10  ;;  %v11238_v57 = vadd.f32 %v7492_v43, %v5888_v41  ;;  %v7494_v47 = vpop.f32.mrb[30].mxu0  ;;  %v7331_v48 = vpop.f32.mrb[51].mxu1  ;;  %v12275_v41 = vld [vmem:[#allocation13 + $0x258] ss:$12 sps:$4 sm:$0xff]  }
 0x840   :  { %v7498_v21 = vmul.f32 0.01, %v11236_v54  ;;  %v7495_v49 = vpop.f32.mrb[31].mxu0  ;;  %v7499_v32 = vmul.f32 0.01, %v11237_v17 }
 0x841   :  { %v7501_v50 = vmax.f32 %v11235_v10, %v7497_v58  ;;  %v7500_v22 = vmul.f32 0.01, %v11238_v57  ;;  %v12278_v10 = vld [vmem:[#allocation13 + $0x270] ss:$12 sps:$4 sm:$0xff]   ;;  %v12281_v42 = vld [vmem:[#allocation13 + $0x288] ss:$12 sps:$4 sm:$0xff]  }
 0x842   :  { %v7502_v0 = vmax.f32 %v11236_v54, %v7498_v21  ;;  %v7503_v34 = vmax.f32 %v11237_v17, %v7499_v32  ;;  %v12286_v54 = vld [vmem:[#allocation13 + $0x2a4] ss:$12 sps:$4 sm:$0xff]   ;;  %v12284_v43 = vld [vmem:[#allocation13 + $0x2a0] ss:$12 sps:$4 sm:$0xff]   ;;  %v12289_v44 = vld [vmem:[#allocation13 + $0x2bc] ss:$12 sps:$4 sm:$0xff]  }
 0x843   :  { %v7504_v29 = vmax.f32 %v11238_v57, %v7500_v22  ;;  %v7505_v61 = vpack.c.bf16 %v7501_v50, %v7501_v50  ;;  %v12287_v58 = vld [vmem:[#allocation13 + $0x2b8] ss:$12 sps:$4 sm:$0xff]   ;;  %v12292_v57 = vld [vmem:[#allocation13 + $0x2d4] ss:$12 sps:$4 sm:$0xff]   ;;  %v12290_v47 = vld [vmem:[#allocation13 + $0x2d0] ss:$12 sps:$4 sm:$0xff]  }
 0x844   :  { %v7506_v55 = vpack.c.bf16 %v7502_v0, %v7502_v0  ;;  %v7507_v56 = vpack.c.bf16 %v7503_v34, %v7503_v34  ;;  %v12295_v48 = vld [vmem:[#allocation13 + $0x2ec] ss:$12 sps:$4 sm:$0xff]   ;;  %v12293_v21 = vld [vmem:[#allocation13 + $0x2e8] ss:$12 sps:$4 sm:$0xff]   ;;  %v12296_v49 = vld [vmem:[#allocation14] ss:$28 sps:$4 sm:$0xff]  }
 0x845   :  { %v7508_v1 = vpack.c.bf16 %v7504_v29, %v7504_v29  ;;  %v12298_v50 = vld [vmem:[#allocation14 + $0x4] ss:$28 sps:$4 sm:$0xff]   ;;  %v12301_v0 = vld [vmem:[#allocation14 + $0xc] ss:$28 sps:$4 sm:$0xff]   ;;  %v12304_v29 = vld [vmem:[#allocation14 + $0x3c] ss:$28 sps:$4 sm:$0xff]  }
 0x846   :  { %8193 = vmatprep.mubr.bf16.mxu1 %v7506_v55  ;;  %8275 = vmatprep.mubr.bf16.mxu0 %v7506_v55  ;;  %v12299_v22 = vld [vmem:[#allocation14 + $0x8] ss:$28 sps:$4 sm:$0xff]   ;;  %v12332_v19 = vld [vmem:[#allocation14 + $0x150] ss:$28 sps:$4 sm:$0xff]   ;;  %v12352_v32 = vld [vmem:[#allocation14 + $0x1fc] ss:$28 sps:$4 sm:$0xff]  }
 0x847   :  { %8194 = vmatmul.mubr.bf16.vlgmr.msra.gmra.mrb[52].mxu1 %v7505_v61  ;;  %8276 = vmatmul.mubr.bf16.vlgmr.msra.gmra.mrb[32].mxu0 %v7505_v61  ;;  %v12307_v55 = vld [vmem:[#allocation14 + $0x44] ss:$28 sps:$4 sm:$0xff]   ;;  %v12310_v61 = vld [vmem:[#allocation14 + $0x74] ss:$28 sps:$4 sm:$0xff]   ;;  %v12361_v34 = vld [vmem:[#allocation14 + $0x23c] ss:$28 sps:$4 sm:$0xff]  }
 0x848   :  { %8203 = vmatpush1.bf16.msra.mxu1 %v12232_v59  ;;  %11129 = vmatpush3.bf16.msra.mxu0 %v12236_v60  ;;  %v12302_v59 = vld [vmem:[#allocation14 + $0x38] ss:$28 sps:$4 sm:$0xff]   ;;  %v12305_v60 = vld [vmem:[#allocation14 + $0x40] ss:$28 sps:$4 sm:$0xff]   ;;  %v12341_v17 = vld [vmem:[#allocation14 + $0x190] ss:$28 sps:$4 sm:$0xff]  }
 0x849   :  { %8234 = vmatprep.mubr.bf16.mxu1 %v7508_v1  ;;  %8315 = vmatprep.mubr.bf16.mxu0 %v7508_v1  ;;  %v12311_v1 = vld [vmem:[#allocation14 + $0x78] ss:$28 sps:$4 sm:$0xff]  }
 0x84a   :  { %8204 = vmatprep.subr.bf16.mxu1 %v12239_v62  ;;  %11130 = vmatprep.subr.bf16.mxu0 %v12240_v63  ;;  %v12313_v62 = vld [vmem:[#allocation14 + $0x7c] ss:$28 sps:$4 sm:$0xff]   ;;  %v12308_v63 = vld [vmem:[#allocation14 + $0x70] ss:$28 sps:$4 sm:$0xff]  }
 0x84c   :  { %8205 = vmatpush1.bf16.msra.mxu1 %v12237_v35  ;;  %11131 = vmatpush3.bf16.msra.mxu0 %v12241_v2  ;;  %v12316_v35 = vld [vmem:[#allocation14 + $0xac] ss:$28 sps:$4 sm:$0xff]   ;;  %v12319_v2 = vld [vmem:[#allocation14 + $0xb4] ss:$28 sps:$4 sm:$0xff]  }
 0x84d   :  { %8206 = vmatprep.subr.bf16.mxu1 %v12244_v51  ;;  %11132 = vmatprep.subr.bf16.mxu0 %v12245_v3  ;;  %v12314_v51 = vld [vmem:[#allocation14 + $0xa8] ss:$28 sps:$4 sm:$0xff]   ;;  %v12317_v3 = vld [vmem:[#allocation14 + $0xb0] ss:$28 sps:$4 sm:$0xff]  }
 0x850   :  { %8207 = vmatpush1.bf16.msra.mxu1 %v12242_v4  ;;  %11133 = vmatpush3.bf16.msra.mxu0 %v12246_v5  ;;  %v12322_v4 = vld [vmem:[#allocation14 + $0xe4] ss:$28 sps:$4 sm:$0xff]   ;;  %v12325_v5 = vld [vmem:[#allocation14 + $0xec] ss:$28 sps:$4 sm:$0xff]  }
 0x851   :  { %8208 = vmatprep.subr.bf16.mxu1 %v12249_v6  ;;  %11134 = vmatprep.subr.bf16.mxu0 %v12250_v7  ;;  %v12320_v6 = vld [vmem:[#allocation14 + $0xe0] ss:$28 sps:$4 sm:$0xff]   ;;  %v12323_v7 = vld [vmem:[#allocation14 + $0xe8] ss:$28 sps:$4 sm:$0xff]  }
 0x854   :  { %8209 = vmatpush1.bf16.msra.mxu1 %v12247_v8  ;;  %11135 = vmatpush3.bf16.msra.mxu0 %v12251_v11  ;;  %v12328_v8 = vld [vmem:[#allocation14 + $0x11c] ss:$28 sps:$4 sm:$0xff]   ;;  %v12331_v11 = vld [vmem:[#allocation14 + $0x124] ss:$28 sps:$4 sm:$0xff]  }
 0x855   :  { %8210 = vmatprep.subr.bf16.mxu1 %v12254_v12  ;;  %11136 = vmatprep.subr.bf16.mxu0 %v12255_v14  ;;  %v12326_v12 = vld [vmem:[#allocation14 + $0x118] ss:$28 sps:$4 sm:$0xff]   ;;  %v12329_v14 = vld [vmem:[#allocation14 + $0x120] ss:$28 sps:$4 sm:$0xff]  }
 0x858   :  { %8211 = vmatpush1.bf16.msra.mxu1 %v12252_v16  ;;  %11137 = vmatpush3.bf16.msra.mxu0 %v12256_v18  ;;  %v12334_v16 = vld [vmem:[#allocation14 + $0x154] ss:$28 sps:$4 sm:$0xff]   ;;  %v12337_v18 = vld [vmem:[#allocation14 + $0x15c] ss:$28 sps:$4 sm:$0xff]  }
 0x859   :  { %8212 = vmatprep.subr.bf16.mxu1 %v12259_v20  ;;  %11138 = vmatprep.subr.bf16.mxu0 %v12260_v24  ;;  %v12335_v20 = vld [vmem:[#allocation14 + $0x158] ss:$28 sps:$4 sm:$0xff]   ;;  %v12340_v24 = vld [vmem:[#allocation14 + $0x18c] ss:$28 sps:$4 sm:$0xff]  }
 0x85c   :  { %8213 = vmatpush1.bf16.msra.mxu1 %v12257_v25  ;;  %11139 = vmatpush3.bf16.msra.mxu0 %v12261_v26  ;;  %v12343_v25 = vld [vmem:[#allocation14 + $0x194] ss:$28 sps:$4 sm:$0xff]   ;;  %v12338_v26 = vld [vmem:[#allocation14 + $0x188] ss:$28 sps:$4 sm:$0xff]  }
 0x85d   :  { %8214 = vmatprep.subr.bf16.mxu1 %v12264_v28  ;;  %11140 = vmatprep.subr.bf16.mxu0 %v12265_v9  ;;  %v12346_v28 = vld [vmem:[#allocation14 + $0x1c4] ss:$28 sps:$4 sm:$0xff]   ;;  %v12349_v9 = vld [vmem:[#allocation14 + $0x1cc] ss:$28 sps:$4 sm:$0xff]  }
 0x860   :  { %8215 = vmatpush1.bf16.msra.mxu1 %v12262_v30  ;;  %11141 = vmatpush3.bf16.msra.mxu0 %v12266_v31  ;;  %v12344_v30 = vld [vmem:[#allocation14 + $0x1c0] ss:$28 sps:$4 sm:$0xff]   ;;  %v12347_v31 = vld [vmem:[#allocation14 + $0x1c8] ss:$28 sps:$4 sm:$0xff]  }
 0x861   :  { %8216 = vmatprep.subr.bf16.mxu1 %v12269_v45  ;;  %11142 = vmatprep.subr.bf16.mxu0 %v12270_v23  ;;  %v12355_v45 = vld [vmem:[#allocation14 + $0x204] ss:$28 sps:$4 sm:$0xff]   ;;  %v12350_v23 = vld [vmem:[#allocation14 + $0x1f8] ss:$28 sps:$4 sm:$0xff]  }
 0x864   :  { %8217 = vmatpush1.bf16.msra.mxu1 %v12267_v15  ;;  %11143 = vmatpush3.bf16.msra.mxu0 %v12271_v33  ;;  %v12353_v15 = vld [vmem:[#allocation14 + $0x200] ss:$28 sps:$4 sm:$0xff]   ;;  %v12358_v33 = vld [vmem:[#allocation14 + $0x234] ss:$28 sps:$4 sm:$0xff]  }
 0x865   :  { %8218 = vmatprep.subr.bf16.mxu1 %v12274_v36  ;;  %9416 = vmatprep.subr.bf16.mxu0 %v12298_v50  ;;  %v12356_v36 = vld [vmem:[#allocation14 + $0x230] ss:$28 sps:$4 sm:$0xff]  }
 0x866   :  { %v12388_v50 = vld [vmem:[#allocation14 + $0x34c] ss:$28 sps:$4 sm:$0xff]  }
 0x867   :  { %8316 = vmatmul.mubr.bf16.vlgmr.msra.gmra.mrb[36].mxu0 %v7507_v56 }
 0x868   :  { %8219 = vmatpush1.bf16.msra.mxu1 %v12272_v38  ;;  %9417 = vmatpush1.bf16.msra.mxu0 %v12296_v49  ;;  %v12359_v38 = vld [vmem:[#allocation14 + $0x238] ss:$28 sps:$4 sm:$0xff]  }
 0x869   :  { %8220 = vmatprep.subr.bf16.mxu1 %v12277_v39  ;;  %9418 = vmatprep.subr.bf16.mxu0 %v12304_v29  ;;  %v12367_v39 = vld [vmem:[#allocation14 + $0x274] ss:$28 sps:$4 sm:$0xff]  }
 0x86a   :  { %v12383_v49 = vld [vmem:[#allocation14 + $0x318] ss:$28 sps:$4 sm:$0xff]   ;;  %v12389_v29 = vld [vmem:[#allocation14 + $0x350] ss:$28 sps:$4 sm:$0xff]  }
 0x86c   :  { %8221 = vmatpush1.bf16.msra.mxu1 %v12275_v41  ;;  %9419 = vmatpush1.bf16.msra.mxu0 %v12302_v59  ;;  %v12362_v41 = vld [vmem:[#allocation14 + $0x268] ss:$28 sps:$4 sm:$0xff]  }
 0x86d   :  { %8222 = vmatprep.subr.bf16.mxu1 %v12280_v53  ;;  %9420 = vmatprep.subr.bf16.mxu0 %v12310_v61  ;;  %v12365_v53 = vld [vmem:[#allocation14 + $0x270] ss:$28 sps:$4 sm:$0xff]  }
 0x86e   :  { %v12397_v59 = vld [vmem:[#allocation14 + $0x38c] ss:$28 sps:$4 sm:$0xff]  }
 0x870   :  { %8223 = vmatpush1.bf16.msra.mxu1 %v12278_v10  ;;  %9421 = vmatpush1.bf16.msra.mxu0 %v12308_v63  ;;  %v12370_v10 = vld [vmem:[#allocation14 + $0x2a4] ss:$28 sps:$4 sm:$0xff]  }
 0x871   :  { %8224 = vmatprep.subr.bf16.mxu1 %v12283_v13  ;;  %9422 = vmatprep.subr.bf16.mxu0 %v12316_v35  ;;  %v12373_v13 = vld [vmem:[#allocation14 + $0x2ac] ss:$28 sps:$4 sm:$0xff]   ;;  %v7639_v35 = vsub.s32 6, %v12997_v46 }
 0x874   :  { %8225 = vmatpush1.bf16.msra.mxu1 %v12281_v42  ;;  %9423 = vmatpush1.bf16.msra.mxu0 %v12314_v51  ;;  %v12368_v42 = vld [vmem:[#allocation14 + $0x2a0] ss:$28 sps:$4 sm:$0xff]  }
 0x875   :  { %8226 = vmatprep.subr.bf16.mxu1 %v12286_v54  ;;  %9424 = vmatprep.subr.bf16.mxu0 %v12322_v4  ;;  %v12371_v54 = vld [vmem:[#allocation14 + $0x2a8] ss:$28 sps:$4 sm:$0xff]  }
 0x878   :  { %8227 = vmatpush1.bf16.msra.mxu1 %v12284_v43  ;;  %9425 = vmatpush1.bf16.msra.mxu0 %v12320_v6  ;;  %v12376_v43 = vld [vmem:[#allocation14 + $0x2dc] ss:$28 sps:$4 sm:$0xff]  }
 0x879   :  { %8228 = vmatprep.subr.bf16.mxu1 %v12289_v44  ;;  %9426 = vmatprep.subr.bf16.mxu0 %v12328_v8  ;;  %v12379_v44 = vld [vmem:[#allocation14 + $0x2e4] ss:$28 sps:$4 sm:$0xff]  }
 0x87c   :  { %8229 = vmatpush1.bf16.msra.mxu1 %v12287_v58  ;;  %9427 = vmatpush1.bf16.msra.mxu0 %v12326_v12  ;;  %v12374_v58 = vld [vmem:[#allocation14 + $0x2d8] ss:$28 sps:$4 sm:$0xff]   ;;  %v7640_v12 = vrot.slane %v13172_v37, %v7639_v35  ;;  %v12403_v37 = vld [vmem:[#allocation14 + $0x3c4] ss:$28 sps:$4 sm:$0xff]  }
 0x87d   :  { %8230 = vmatprep.subr.bf16.mxu1 %v12292_v57  ;;  %9428 = vmatprep.subr.bf16.mxu0 %v12334_v16  ;;  %v12377_v57 = vld [vmem:[#allocation14 + $0x2e0] ss:$28 sps:$4 sm:$0xff]  }
 0x880   :  { %8231 = vmatpush1.bf16.msra.mxu1 %v12290_v47  ;;  %9429 = vmatpush1.bf16.msra.mxu0 %v12332_v19  ;;  %v12382_v47 = vld [vmem:[#allocation14 + $0x314] ss:$28 sps:$4 sm:$0xff]  }
 0x881   :  { %8232 = vmatprep.subr.bf16.mxu1 %v12295_v48  ;;  %9430 = vmatprep.subr.bf16.mxu0 %v12340_v24  ;;  %v12385_v48 = vld [vmem:[#allocation14 + $0x31c] ss:$28 sps:$4 sm:$0xff]  }
 0x884   :  { %8233 = vmatpush1.bf16.msra.mxu1 %v12293_v21  ;;  %9431 = vmatpush1.bf16.msra.mxu0 %v12338_v26  ;;  %v12380_v21 = vld [vmem:[#allocation14 + $0x310] ss:$28 sps:$4 sm:$0xff]  }
 0x885   :  { %9498 = vmatprep.subr.bf16.mxu1 %v12301_v0  ;;  %9432 = vmatprep.subr.bf16.mxu0 %v12346_v28  ;;  %v12386_v0 = vld [vmem:[#allocation14 + $0x348] ss:$28 sps:$4 sm:$0xff]  }
 0x887   :  { %8235 = vmatmul.mubr.bf16.vlgmr.msra.gmra.mrb[52].mxu1 %v7507_v56  ;;  %v12364_v56 = vld [vmem:[#allocation14 + $0x26c] ss:$28 sps:$4 sm:$0xff]  }
 0x888   :  { %9499 = vmatpush1.bf16.msra.mxu1 %v12299_v22  ;;  %9433 = vmatpush1.bf16.msra.mxu0 %v12344_v30  ;;  %v12391_v22 = vld [vmem:[#allocation14 + $0x354] ss:$28 sps:$4 sm:$0xff]  }
 0x889   :  { %9500 = vmatprep.subr.bf16.mxu1 %v12307_v55  ;;  %9434 = vmatprep.subr.bf16.mxu0 %v12352_v32  ;;  %v12394_v55 = vld [vmem:[#allocation14 + $0x384] ss:$28 sps:$4 sm:$0xff]  }
 0x88a   :  { %v12395_v32 = vld [vmem:[#allocation14 + $0x388] ss:$28 sps:$4 sm:$0xff]  }
 0x88c   :  { %9501 = vmatpush1.bf16.msra.mxu1 %v12305_v60  ;;  %9435 = vmatpush1.bf16.msra.mxu0 %v12350_v23  ;;  %v12400_v23 = vld [vmem:[#allocation14 + $0x3bc] ss:$28 sps:$4 sm:$0xff]  }
 0x88d   :  { %9502 = vmatprep.subr.bf16.mxu1 %v12313_v62  ;;  %9436 = vmatprep.subr.bf16.mxu0 %v12358_v33  ;;  %v12406_v33 = vld [vmem:[#allocation14 + $0x3f4] ss:$28 sps:$4 sm:$0xff]  }
 0x890   :  { %9503 = vmatpush1.bf16.msra.mxu1 %v12311_v1  ;;  %9437 = vmatpush1.bf16.msra.mxu0 %v12356_v36  ;;  %v12404_v36 = vld [vmem:[#allocation14 + $0x3f0] ss:$28 sps:$4 sm:$0xff]  }
 0x891   :  { %9504 = vmatprep.subr.bf16.mxu1 %v12319_v2  ;;  %9438 = vmatprep.subr.bf16.mxu0 %v12364_v56  ;;  %v13196_v2 = vld [vmem:[%s13277_s9 + $0x10] sm:$0xff]  ;;  %v12412_v56 = vld [vmem:[#allocation14 + $0x42c] ss:$28 sps:$4 sm:$0xff]  }
 0x892   :  { %v7648_v51 = vrot.slane %v13196_v2, %v7639_v35 }
 0x894   :  { %9505 = vmatpush1.bf16.msra.mxu1 %v12317_v3  ;;  %9439 = vmatpush1.bf16.msra.mxu0 %v12362_v41  ;;  %v12410_v41 = vld [vmem:[#allocation14 + $0x428] ss:$28 sps:$4 sm:$0xff]  }
 0x895   :  { %9506 = vmatprep.subr.bf16.mxu1 %v12325_v5  ;;  %9440 = vmatprep.subr.bf16.mxu0 %v12370_v10  ;;  %v12418_v10 = vld [vmem:[#allocation14 + $0x464] ss:$28 sps:$4 sm:$0xff]  }
 0x898   :  { %9507 = vmatpush1.bf16.msra.mxu1 %v12323_v7  ;;  %9441 = vmatpush1.bf16.msra.mxu0 %v12368_v42  ;;  %v12416_v42 = vld [vmem:[#allocation14 + $0x460] ss:$28 sps:$4 sm:$0xff]  }
 0x899   :  { %9508 = vmatprep.subr.bf16.mxu1 %v12331_v11  ;;  %9442 = vmatprep.subr.bf16.mxu0 %v12376_v43  ;;  %v12424_v43 = vld [vmem:[#allocation14 + $0x49c] ss:$28 sps:$4 sm:$0xff]  }
 0x89c   :  { %9509 = vmatpush1.bf16.msra.mxu1 %v12329_v14  ;;  %9443 = vmatpush1.bf16.msra.mxu0 %v12374_v58  ;;  %v7644_v14 = vrot.slane %v13179_v27, %v7639_v35  ;;  %v12398_v27 = vld [vmem:[#allocation14 + $0x3b8] ss:$28 sps:$4 sm:$0xff]   ;;  %v12447_v35 = vld [vmem:[#allocation14 + $0x4c] ss:$28 sps:$4 sm:$0xff]  }
 0x89d   :  { %9510 = vmatprep.subr.bf16.mxu1 %v12337_v18  ;;  %9444 = vmatprep.subr.bf16.mxu0 %v12382_v47  ;;  %v12422_v58 = vld [vmem:[#allocation14 + $0x498] ss:$28 sps:$4 sm:$0xff]  }
 0x89e   :  { %v12430_v47 = vld [vmem:[#allocation14 + $0x4d4] ss:$28 sps:$4 sm:$0xff]  }
 0x8a0   :  { %9511 = vmatpush1.bf16.msra.mxu1 %v12335_v20  ;;  %9445 = vmatpush1.bf16.msra.mxu0 %v12380_v21  ;;  %v12428_v21 = vld [vmem:[#allocation14 + $0x4d0] ss:$28 sps:$4 sm:$0xff]  }
 0x8a1   :  { %9512 = vmatprep.subr.bf16.mxu1 %v12343_v25  ;;  %9446 = vmatprep.subr.bf16.mxu0 %v12388_v50 }
 0x8a4   :  { %9513 = vmatpush1.bf16.msra.mxu1 %v12341_v17  ;;  %9447 = vmatpush1.bf16.msra.mxu0 %v12386_v0  ;;  %v12439_v0 = vld [vmem:[#allocation14 + $0x514] ss:$28 sps:$4 sm:$0xff]  }
 0x8a5   :  { %9514 = vmatprep.subr.bf16.mxu1 %v12349_v9  ;;  %9457 = vmatprep.subr.bf16.mxu0 %v12394_v55  ;;  %v12437_v55 = vld [vmem:[#allocation14 + $0x510] ss:$28 sps:$4 sm:$0xff]  }
 0x8a8   :  { %9515 = vmatpush1.bf16.msra.mxu1 %v12347_v31  ;;  %v12392_v31 = vld [vmem:[#allocation14 + $0x380] ss:$28 sps:$4 sm:$0xff]  }
 0x8a9   :  { %9516 = vmatprep.subr.bf16.mxu1 %v12355_v45 }
 0x8ac   :  { %9517 = vmatpush1.bf16.msra.mxu1 %v12353_v15  ;;  %v12401_v15 = vld [vmem:[#allocation14 + $0x3c0] ss:$28 sps:$4 sm:$0xff]  }
 0x8ad   :  { %9518 = vmatprep.subr.bf16.mxu1 %v12361_v34  ;;  %v12409_v34 = vld [vmem:[#allocation14 + $0x3fc] ss:$28 sps:$4 sm:$0xff]  }
 0x8b0   :  { %9519 = vmatpush1.bf16.msra.mxu1 %v12359_v38  ;;  %v12407_v38 = vld [vmem:[#allocation14 + $0x3f8] ss:$28 sps:$4 sm:$0xff]  }
 0x8b1   :  { %9520 = vmatprep.subr.bf16.mxu1 %v12367_v39  ;;  %v12415_v39 = vld [vmem:[#allocation14 + $0x434] ss:$28 sps:$4 sm:$0xff]  }
 0x8b4   :  { %9521 = vmatpush1.bf16.msra.mxu1 %v12365_v53  ;;  %v12413_v53 = vld [vmem:[#allocation14 + $0x430] ss:$28 sps:$4 sm:$0xff]  }
 0x8b5   :  { %9522 = vmatprep.subr.bf16.mxu1 %v12373_v13  ;;  %v12421_v13 = vld [vmem:[#allocation14 + $0x46c] ss:$28 sps:$4 sm:$0xff]  }
 0x8b8   :  { %9523 = vmatpush1.bf16.msra.mxu1 %v12371_v54  ;;  %v12419_v54 = vld [vmem:[#allocation14 + $0x468] ss:$28 sps:$4 sm:$0xff]  }
 0x8b9   :  { %9524 = vmatprep.subr.bf16.mxu1 %v12379_v44  ;;  %v12427_v44 = vld [vmem:[#allocation14 + $0x4a4] ss:$28 sps:$4 sm:$0xff]  }
 0x8bc   :  { %9525 = vmatpush1.bf16.msra.mxu1 %v12377_v57  ;;  %v12425_v57 = vld [vmem:[#allocation14 + $0x4a0] ss:$28 sps:$4 sm:$0xff]  }
 0x8bd   :  { %9526 = vmatprep.subr.bf16.mxu1 %v12385_v48  ;;  %v12433_v48 = vld [vmem:[#allocation14 + $0x4dc] ss:$28 sps:$4 sm:$0xff]  }
 0x8c0   :  { %9527 = vmatpush1.bf16.msra.mxu1 %v12383_v49  ;;  %v12431_v49 = vld [vmem:[#allocation14 + $0x4d8] ss:$28 sps:$4 sm:$0xff]  }
 0x8c1   :  { %9528 = vmatprep.subr.bf16.mxu1 %v12391_v22  ;;  %v12436_v22 = vld [vmem:[#allocation14 + $0x50c] ss:$28 sps:$4 sm:$0xff]  }
 0x8c4   :  { %9529 = vmatpush1.bf16.msra.mxu1 %v12389_v29  ;;  %v12434_v29 = vld [vmem:[#allocation14 + $0x508] ss:$28 sps:$4 sm:$0xff]  }
 0x8c5   :  { %9539 = vmatprep.subr.bf16.mxu1 %v12397_v59 }
 0x91a   :  { %v11122_v60 = vpop.f32.mrb[32].mxu0 }
 0x91b   :  { %v11123_v61 = vpop.f32.mrb[33].mxu0 }
 0x91c   :  { %v11124_v62 = vadd.f32 %v11123_v61, %v11122_v60  ;;  %v11125_v63 = vpop.f32.mrb[34].mxu0  ;;  %v12442_v60 = vld [vmem:[#allocation14 + $0x14] ss:$28 sps:$4 sm:$0xff]  }
 0x91d   :  { %v11126_v1 = vpop.f32.mrb[35].mxu0  ;;  %v12443_v61 = vld [vmem:[#allocation14 + $0x1d8] ss:$28 sps:$4 sm:$0xff]  }
 0x91e   :  { %v8278_v5 = vadd.f32 %v11124_v62, %v7648_v51  ;;  %v12440_v62 = vld [vmem:[#allocation14 + $0x10] ss:$28 sps:$4 sm:$0xff]   ;;  %v12444_v1 = vld [vmem:[#allocation14 + $0x18] ss:$28 sps:$4 sm:$0xff]  }
 0x91f   :  { %v12448_v51 = vld [vmem:[#allocation14 + $0x210] ss:$28 sps:$4 sm:$0xff]  }
 0x93a   :  { %v11144_v3 = vpop.f32.mrb[36].mxu0 }
 0x93b   :  { %v11145_v4 = vpop.f32.mrb[37].mxu0 }
 0x93c   :  { %v11146_v6 = vadd.f32 %v11145_v4, %v11144_v3  ;;  %v11147_v7 = vpop.f32.mrb[38].mxu0  ;;  %v12445_v3 = vld [vmem:[#allocation14 + $0x48] ss:$28 sps:$4 sm:$0xff]   ;;  %v12449_v4 = vld [vmem:[#allocation14 + $0x50] ss:$28 sps:$4 sm:$0xff]  }
 0x93d   :  { %v11148_v8 = vpop.f32.mrb[39].mxu0  ;;  %v12450_v7 = vld [vmem:[#allocation14 + $0x80] ss:$28 sps:$4 sm:$0xff]  }
 0x93e   :  { %v13199_v11 = vadd.f32 %v11146_v6, %v8278_v5  ;;  %v12452_v5 = vld [vmem:[#allocation14 + $0x84] ss:$28 sps:$4 sm:$0xff]  }
 0x93f   :  { %v12453_v6 = vld [vmem:[#allocation14 + $0x248] ss:$28 sps:$4 sm:$0xff]  }
 0x940   :  { %v8325_v50 = vmul.f32 0.01, %v13199_v11  ;;  %v12454_v8 = vld [vmem:[#allocation14 + $0x88] ss:$28 sps:$4 sm:$0xff]  }
 0x942   :  { %v8328_v59 = vmax.f32 %v13199_v11, %v8325_v50  ;;  %v12457_v11 = vld [vmem:[#allocation14 + $0xbc] ss:$28 sps:$4 sm:$0xff]   ;;  %v12507_v50 = vld [vmem:[#allocation14 + $0x4e8] ss:$28 sps:$4 sm:$0xff]  }
 0x944   :  { %v13215_v63 = vpack.c.bf16 %v8328_v59, %v8328_v59  ;;  %v12512_v59 = vld [vmem:[#allocation14 + $0x390] ss:$28 sps:$4 sm:$0xff]  }
 0x95a   :  { %v8236_v16 = vpop.f32.mrb[52].mxu1 }
 0x95b   :  { %v11239_v18 = vadd.f32 %v8236_v16, %v7640_v12  ;;  %v8238_v19 = vpop.f32.mrb[53].mxu1  ;;  %v12458_v12 = vld [vmem:[#allocation14 + $0x280] ss:$28 sps:$4 sm:$0xff]  }
 0x95c   :  { %v11240_v20 = vadd.f32 %v8238_v19, %v7644_v14  ;;  %v8240_v24 = vpop.f32.mrb[54].mxu1  ;;  %v12455_v14 = vld [vmem:[#allocation14 + $0xb8] ss:$28 sps:$4 sm:$0xff]   ;;  %v12459_v16 = vld [vmem:[#allocation14 + $0xc0] ss:$28 sps:$4 sm:$0xff]  }
 0x95d   :  { %v8323_v25 = vmul.f32 0.01, %v11239_v18  ;;  %v8241_v26 = vpop.f32.mrb[55].mxu1  ;;  %v12463_v19 = vld [vmem:[#allocation14 + $0x2b8] ss:$28 sps:$4 sm:$0xff]  }
 0x95e   :  { %v8324_v17 = vmul.f32 0.01, %v11240_v20  ;;  %v12464_v24 = vld [vmem:[#allocation14 + $0xf8] ss:$28 sps:$4 sm:$0xff]   ;;  %v12468_v26 = vld [vmem:[#allocation14 + $0x2f0] ss:$28 sps:$4 sm:$0xff]  }
 0x95f   :  { %v8326_v28 = vmax.f32 %v11239_v18, %v8323_v25  ;;  %v12462_v18 = vld [vmem:[#allocation14 + $0xf4] ss:$28 sps:$4 sm:$0xff]   ;;  %v12467_v25 = vld [vmem:[#allocation14 + $0x12c] ss:$28 sps:$4 sm:$0xff]  }
 0x960   :  { %v8327_v9 = vmax.f32 %v11240_v20, %v8324_v17  ;;  %v12460_v20 = vld [vmem:[#allocation14 + $0xf0] ss:$28 sps:$4 sm:$0xff]   ;;  %v12465_v17 = vld [vmem:[#allocation14 + $0x128] ss:$28 sps:$4 sm:$0xff]  }
 0x961   :  { %v13205_v45 = vpack.c.bf16 %v8326_v28, %v8326_v28  ;;  %v12469_v28 = vld [vmem:[#allocation14 + $0x130] ss:$28 sps:$4 sm:$0xff]  }
 0x962   :  { %v13203_v30 = vpack.c.bf16 %v8327_v9, %v8327_v9  ;;  %v12472_v9 = vld [vmem:[#allocation14 + $0x164] ss:$28 sps:$4 sm:$0xff]  }
 0x964   :  { %9448 = vmatprep.mubr.bf16.mxu0 %v13203_v30  ;;  %9530 = vmatprep.mubr.bf16.mxu1 %v13203_v30 }
 0x965   :  { %9449 = vmatmul.mubr.bf16.vlgmr.msra.gmra.mrb[40].mxu0 %v13205_v45  ;;  %9531 = vmatmul.mubr.bf16.vlgmr.msra.gmra.mrb[56].mxu1 %v13205_v45 }
 0x966   :  { %9458 = vmatpush1.bf16.msra.mxu0 %v12392_v31  ;;  %9540 = vmatpush1.bf16.msra.mxu1 %v12395_v32  ;;  %v12470_v31 = vld [vmem:[#allocation14 + $0x160] ss:$28 sps:$4 sm:$0xff]   ;;  %v12474_v32 = vld [vmem:[#allocation14 + $0x168] ss:$28 sps:$4 sm:$0xff]  }
 0x967   :  { %9459 = vmatprep.subr.bf16.mxu0 %v12400_v23  ;;  %9541 = vmatprep.subr.bf16.mxu1 %v12403_v37  ;;  %v12477_v23 = vld [vmem:[#allocation14 + $0x19c] ss:$28 sps:$4 sm:$0xff]  }
 0x968   :  { %9489 = vmatprep.mubr.bf16.mxu0 %v12786_v40  ;;  %9571 = vmatprep.mubr.bf16.mxu1 %v12786_v40  ;;  %v12478_v37 = vld [vmem:[#allocation14 + $0x360] ss:$28 sps:$4 sm:$0xff]  }
 0x96a   :  { %9460 = vmatpush1.bf16.msra.mxu0 %v12398_v27  ;;  %9542 = vmatpush1.bf16.msra.mxu1 %v12401_v15  ;;  %v12475_v27 = vld [vmem:[#allocation14 + $0x198] ss:$28 sps:$4 sm:$0xff]   ;;  %v12479_v15 = vld [vmem:[#allocation14 + $0x1a0] ss:$28 sps:$4 sm:$0xff]  }
 0x96b   :  { %9461 = vmatprep.subr.bf16.mxu0 %v12406_v33  ;;  %9543 = vmatprep.subr.bf16.mxu1 %v12409_v34  ;;  %v12482_v33 = vld [vmem:[#allocation14 + $0x1d4] ss:$28 sps:$4 sm:$0xff]  }
 0x96c   :  { %v12480_v34 = vld [vmem:[#allocation14 + $0x1d0] ss:$28 sps:$4 sm:$0xff]  }
 0x96e   :  { %9462 = vmatpush1.bf16.msra.mxu0 %v12404_v36  ;;  %9544 = vmatpush1.bf16.msra.mxu1 %v12407_v38  ;;  %v12483_v36 = vld [vmem:[#allocation14 + $0x398] ss:$28 sps:$4 sm:$0xff]   ;;  %v12486_v38 = vld [vmem:[#allocation14 + $0x20c] ss:$28 sps:$4 sm:$0xff]  }
 0x96f   :  { %9463 = vmatprep.subr.bf16.mxu0 %v12412_v56  ;;  %9545 = vmatprep.subr.bf16.mxu1 %v12415_v39  ;;  %v12484_v56 = vld [vmem:[#allocation14 + $0x208] ss:$28 sps:$4 sm:$0xff]   ;;  %v12487_v39 = vld [vmem:[#allocation14 + $0x3d0] ss:$28 sps:$4 sm:$0xff]  }
 0x972   :  { %9464 = vmatpush1.bf16.msra.mxu0 %v12410_v41  ;;  %9546 = vmatpush1.bf16.msra.mxu1 %v12413_v53  ;;  %v12490_v41 = vld [vmem:[#allocation14 + $0x244] ss:$28 sps:$4 sm:$0xff]  }
 0x973   :  { %9465 = vmatprep.subr.bf16.mxu0 %v12418_v10  ;;  %9547 = vmatprep.subr.bf16.mxu1 %v12421_v13  ;;  %v12488_v53 = vld [vmem:[#allocation14 + $0x240] ss:$28 sps:$4 sm:$0xff]   ;;  %v12491_v10 = vld [vmem:[#allocation14 + $0x408] ss:$28 sps:$4 sm:$0xff]  }
 0x974   :  { %v12494_v13 = vld [vmem:[#allocation14 + $0x27c] ss:$28 sps:$4 sm:$0xff]  }
 0x976   :  { %9466 = vmatpush1.bf16.msra.mxu0 %v12416_v42  ;;  %9548 = vmatpush1.bf16.msra.mxu1 %v12419_v54  ;;  %v12492_v42 = vld [vmem:[#allocation14 + $0x278] ss:$28 sps:$4 sm:$0xff]   ;;  %v12495_v54 = vld [vmem:[#allocation14 + $0x440] ss:$28 sps:$4 sm:$0xff]  }
 0x977   :  { %9467 = vmatprep.subr.bf16.mxu0 %v12424_v43  ;;  %9549 = vmatprep.subr.bf16.mxu1 %v12427_v44  ;;  %v12498_v43 = vld [vmem:[#allocation14 + $0x2b4] ss:$28 sps:$4 sm:$0xff]  }
 0x978   :  { %v12496_v44 = vld [vmem:[#allocation14 + $0x2b0] ss:$28 sps:$4 sm:$0xff]  }
 0x97a   :  { %9468 = vmatpush1.bf16.msra.mxu0 %v12422_v58  ;;  %9550 = vmatpush1.bf16.msra.mxu1 %v12425_v57  ;;  %v12499_v58 = vld [vmem:[#allocation14 + $0x478] ss:$28 sps:$4 sm:$0xff]   ;;  %v12502_v57 = vld [vmem:[#allocation14 + $0x2ec] ss:$28 sps:$4 sm:$0xff]  }
 0x97b   :  { %9469 = vmatprep.subr.bf16.mxu0 %v12430_v47  ;;  %9551 = vmatprep.subr.bf16.mxu1 %v12433_v48  ;;  %v12500_v47 = vld [vmem:[#allocation14 + $0x2e8] ss:$28 sps:$4 sm:$0xff]   ;;  %v12503_v48 = vld [vmem:[#allocation14 + $0x4b0] ss:$28 sps:$4 sm:$0xff]  }
 0x97e   :  { %9470 = vmatpush1.bf16.msra.mxu0 %v12428_v21  ;;  %9552 = vmatpush1.bf16.msra.mxu1 %v12431_v49  ;;  %v12506_v21 = vld [vmem:[#allocation14 + $0x324] ss:$28 sps:$4 sm:$0xff]  }
 0x97f   :  { %9471 = vmatprep.subr.bf16.mxu0 %v12436_v22  ;;  %9553 = vmatprep.subr.bf16.mxu1 %v12439_v0  ;;  %v12504_v49 = vld [vmem:[#allocation14 + $0x320] ss:$28 sps:$4 sm:$0xff]   ;;  %v12508_v0 = vld [vmem:[#allocation14 + $0x358] ss:$28 sps:$4 sm:$0xff]  }
 0x980   :  { %v12510_v22 = vld [vmem:[#allocation14 + $0x35c] ss:$28 sps:$4 sm:$0xff]  }
 0x982   :  { %9472 = vmatpush1.bf16.msra.mxu0 %v12434_v29  ;;  %9554 = vmatpush1.bf16.msra.mxu1 %v12437_v55  ;;  %v12511_v29 = vld [vmem:[#allocation14 + $0x520] ss:$28 sps:$4 sm:$0xff]   ;;  %v12514_v55 = vld [vmem:[#allocation14 + $0x394] ss:$28 sps:$4 sm:$0xff]  }
 0x983   :  { %9580 = vmatprep.subr.bf16.mxu0 %v12442_v60  ;;  %11150 = vmatprep.subr.bf16.mxu1 %v12443_v61  ;;  %v12517_v60 = vld [vmem:[#allocation14 + $0x3cc] ss:$28 sps:$4 sm:$0xff]  }
 0x984   :  { %v12515_v61 = vld [vmem:[#allocation14 + $0x3c8] ss:$28 sps:$4 sm:$0xff]  }
 0x985   :  { %9490 = vmatmul.mubr.bf16.vlgmr.msra.gmra.mrb[40].mxu0 %v13215_v63  ;;  %9572 = vmatmul.mubr.bf16.vlgmr.msra.gmra.mrb[56].mxu1 %v13215_v63 }
 0x986   :  { %9581 = vmatpush1.bf16.msra.mxu0 %v12440_v62  ;;  %9612 = vmatprep.mubr.bf16.mxu0 %v13203_v30  ;;  %v12520_v62 = vld [vmem:[#allocation14 + $0x404] ss:$28 sps:$4 sm:$0xff]  }
 0x987   :  { %11151 = vmatpush3.bf16.msra.mxu1 %v12444_v1  ;;  %9694 = vmatprep.mubr.bf16.mxu1 %v13203_v30  ;;  %v12473_v30 = vld [vmem:[#allocation14 + $0x328] ss:$28 sps:$4 sm:$0xff]   ;;  %v12518_v1 = vld [vmem:[#allocation14 + $0x400] ss:$28 sps:$4 sm:$0xff]  }
 0x988   :  { %9582 = vmatprep.subr.bf16.mxu0 %v12447_v35  ;;  %11152 = vmatprep.subr.bf16.mxu1 %v12448_v51  ;;  %v12523_v35 = vld [vmem:[#allocation14 + $0x43c] ss:$28 sps:$4 sm:$0xff]   ;;  %v12526_v51 = vld [vmem:[#allocation14 + $0x474] ss:$28 sps:$4 sm:$0xff]  }
 0x98a   :  { %9583 = vmatpush1.bf16.msra.mxu0 %v12445_v3  ;;  %v12524_v3 = vld [vmem:[#allocation14 + $0x470] ss:$28 sps:$4 sm:$0xff]  }
 0x98b   :  { %11153 = vmatpush3.bf16.msra.mxu1 %v12449_v4  ;;  %9584 = vmatprep.subr.bf16.mxu0 %v12452_v5  ;;  %v12527_v4 = vld [vmem:[#allocation14 + $0x4a8] ss:$28 sps:$4 sm:$0xff]  }
 0x98c   :  { %11154 = vmatprep.subr.bf16.mxu1 %v12453_v6  ;;  %v12532_v5 = vld [vmem:[#allocation14 + $0x4e4] ss:$28 sps:$4 sm:$0xff]  }
 0x98d   :  { %v12530_v6 = vld [vmem:[#allocation14 + $0x4e0] ss:$28 sps:$4 sm:$0xff]  }
 0x98e   :  { %9585 = vmatpush1.bf16.msra.mxu0 %v12450_v7  ;;  %v12533_v7 = vld [vmem:[#allocation14 + $0x518] ss:$28 sps:$4 sm:$0xff]  }
 0x98f   :  { %11155 = vmatpush3.bf16.msra.mxu1 %v12454_v8  ;;  %9586 = vmatprep.subr.bf16.mxu0 %v12457_v11  ;;  %v8526_v8 = vsub.s32 7, %v12997_v46  ;;  %v12550_v11 = vld [vmem:[%s13277_s9] sm:$0xff] }
 0x990   :  { %11156 = vmatprep.subr.bf16.mxu1 %v12458_v12 }
 0x991   :  { %v8527_v12 = vrot.slane %v12550_v11, %v8526_v8 }
 0x992   :  { %9587 = vmatpush1.bf16.msra.mxu0 %v12455_v14  ;;  %v8535_v14 = vrot.slane %v13196_v2, %v8526_v8 }
 0x993   :  { %11157 = vmatpush3.bf16.msra.mxu1 %v12459_v16  ;;  %9588 = vmatprep.subr.bf16.mxu0 %v12462_v18  ;;  %v12551_v16 = vld [vmem:[%s13277_s9 + $0x8] sm:$0xff] }
 0x994   :  { %11158 = vmatprep.subr.bf16.mxu1 %v12463_v19  ;;  %v8531_v18 = vrot.slane %v12551_v16, %v8526_v8  ;;  %v12552_v19 = vld [vmem:[%s13277_s9 + $0x18] sm:$0xff] }
 0x996   :  { %9589 = vmatpush1.bf16.msra.mxu0 %v12460_v20  ;;  %v8539_v20 = vrot.slane %v12552_v19, %v8526_v8 }
 0x997   :  { %11159 = vmatpush3.bf16.msra.mxu1 %v12464_v24  ;;  %9590 = vmatprep.subr.bf16.mxu0 %v12467_v25 }
 0x998   :  { %11160 = vmatprep.subr.bf16.mxu1 %v12468_v26 }
 0x99a   :  { %9591 = vmatpush1.bf16.msra.mxu0 %v12465_v17 }
 0x99b   :  { %11161 = vmatpush3.bf16.msra.mxu1 %v12469_v28  ;;  %9592 = vmatprep.subr.bf16.mxu0 %v12472_v9 }
 0x99c   :  { %11162 = vmatprep.subr.bf16.mxu1 %v12473_v30 }
 0x99e   :  { %9593 = vmatpush1.bf16.msra.mxu0 %v12470_v31 }
 0x99f   :  { %11163 = vmatpush3.bf16.msra.mxu1 %v12474_v32  ;;  %9594 = vmatprep.subr.bf16.mxu0 %v12477_v23 }
 0x9a0   :  { %11164 = vmatprep.subr.bf16.mxu1 %v12478_v37 }
 0x9a2   :  { %9595 = vmatpush1.bf16.msra.mxu0 %v12475_v27 }
 0x9a3   :  { %11165 = vmatpush3.bf16.msra.mxu1 %v12479_v15  ;;  %9596 = vmatprep.subr.bf16.mxu0 %v12482_v33 }
 0x9a4   :  { %11201 = vmatprep.subr.bf16.mxu1 %v12784_v52 }
 0x9a6   :  { %9695 = vmatmul.mubr.bf16.vlgmr.msra.gmra.mrb[60].mxu1 %v13205_v45  ;;  %9597 = vmatpush1.bf16.msra.mxu0 %v12480_v34  ;;  %v12553_v34 = vld [vmem:[%s13277_s9 + $0x30] sm:$0xff] }
 0x9a7   :  { %11202 = vmatpush3.bf16.msra.mxu1 %v12483_v36  ;;  %9598 = vmatprep.subr.bf16.mxu0 %v12486_v38  ;;  %v8551_v36 = vrot.slane %v12553_v34, %v8526_v8 }
 0x9a8   :  { %11203 = vmatprep.subr.bf16.mxu1 %v12784_v52  ;;  %11217 = vmatprep.mubr.msk.bf16.mxu1 %vm12785_vm0, %v12784_v52 }
 0x9aa   :  { %9599 = vmatpush1.bf16.msra.mxu0 %v12484_v56 }
 0x9ab   :  { %11204 = vmatpush3.bf16.msra.mxu1 %v12487_v39  ;;  %9600 = vmatprep.subr.bf16.mxu0 %v12490_v41 }
 0x9ac   :  { %11205 = vmatprep.subr.bf16.mxu1 %v12784_v52 }
 0x9ae   :  { %9601 = vmatpush1.bf16.msra.mxu0 %v12488_v53 }
 0x9af   :  { %11206 = vmatpush3.bf16.msra.mxu1 %v12491_v10  ;;  %9602 = vmatprep.subr.bf16.mxu0 %v12494_v13  ;;  %v12554_v13 = vld [vmem:[%s13277_s9 + $0x20] sm:$0xff] }
 0x9b0   :  { %11207 = vmatprep.subr.bf16.mxu1 %v12784_v52 }
 0x9b2   :  { %9603 = vmatpush1.bf16.msra.mxu0 %v12492_v42  ;;  %v8543_v42 = vrot.slane %v12554_v13, %v8526_v8 }
 0x9b3   :  { %11208 = vmatpush3.bf16.msra.mxu1 %v12495_v54  ;;  %9604 = vmatprep.subr.bf16.mxu0 %v12498_v43  ;;  %v12555_v54 = vld [vmem:[%s13277_s9 + $0x28] sm:$0xff] }
 0x9b4   :  { %11209 = vmatprep.subr.bf16.mxu1 %v12784_v52  ;;  %v8547_v43 = vrot.slane %v12555_v54, %v8526_v8 }
 0x9b6   :  { %9605 = vmatpush1.bf16.msra.mxu0 %v12496_v44 }
 0x9b7   :  { %11210 = vmatpush3.bf16.msra.mxu1 %v12499_v58  ;;  %9606 = vmatprep.subr.bf16.mxu0 %v12502_v57 }
 0x9b8   :  { %11211 = vmatprep.subr.bf16.mxu1 %v12784_v52 }
 0x9ba   :  { %9607 = vmatpush1.bf16.msra.mxu0 %v12500_v47 }
 0x9bb   :  { %11212 = vmatpush3.bf16.msra.mxu1 %v12503_v48  ;;  %9608 = vmatprep.subr.bf16.mxu0 %v12506_v21 }
 0x9bc   :  { %11213 = vmatprep.subr.bf16.mxu1 %v12784_v52 }
 0x9be   :  { %9609 = vmatpush1.bf16.msra.mxu0 %v12504_v49 }
 0x9bf   :  { %11214 = vmatpush3.bf16.msra.mxu1 %v12507_v50  ;;  %9610 = vmatprep.subr.bf16.mxu0 %v12510_v22 }
 0x9c0   :  { %11215 = vmatprep.subr.bf16.mxu1 %v12784_v52  ;;  %v12521_v52 = vld [vmem:[#allocation14 + $0x438] ss:$28 sps:$4 sm:$0xff]  }
 0x9c2   :  { %9611 = vmatpush1.bf16.msra.mxu0 %v12508_v0 }
 0x9c3   :  { %11216 = vmatpush3.bf16.msra.mxu1 %v12511_v29  ;;  %9621 = vmatprep.subr.bf16.mxu0 %v12514_v55 }
 0x9c5   :  { %9613 = vmatmul.mubr.bf16.vlgmr.msra.gmra.mrb[44].mxu0 %v13205_v45  ;;  %v12529_v45 = vld [vmem:[#allocation14 + $0x4ac] ss:$28 sps:$4 sm:$0xff]  }
 0x9c6   :  { %11218 = vmatmul.mubr.bf16.vlgmr.msra.gmra.mrb[64].mxu1 %v13215_v63  ;;  %9622 = vmatpush1.bf16.msra.mxu0 %v12512_v59 }
 0x9c7   :  { %9623 = vmatprep.subr.bf16.mxu0 %v12517_v60  ;;  %9653 = vmatprep.mubr.bf16.mxu0 %v12786_v40  ;;  %v12535_v40 = vld [vmem:[#allocation14 + $0x51c] ss:$28 sps:$4 sm:$0xff]  }
 0x9ca   :  { %9624 = vmatpush1.bf16.msra.mxu0 %v12515_v61 }
 0x9cb   :  { %9625 = vmatprep.subr.bf16.mxu0 %v12520_v62 }
 0x9ce   :  { %9626 = vmatpush1.bf16.msra.mxu0 %v12518_v1 }
 0x9cf   :  { %9627 = vmatprep.subr.bf16.mxu0 %v12523_v35 }
 0x9d2   :  { %9628 = vmatpush1.bf16.msra.mxu0 %v12521_v52 }
 0x9d3   :  { %9629 = vmatprep.subr.bf16.mxu0 %v12526_v51 }
 0x9d6   :  { %9630 = vmatpush1.bf16.msra.mxu0 %v12524_v3 }
 0x9d7   :  { %9631 = vmatprep.subr.bf16.mxu0 %v12529_v45 }
 0x9da   :  { %9632 = vmatpush1.bf16.msra.mxu0 %v12527_v4 }
 0x9db   :  { %9633 = vmatprep.subr.bf16.mxu0 %v12532_v5 }
 0x9de   :  { %9634 = vmatpush1.bf16.msra.mxu0 %v12530_v6 }
 0x9df   :  { %9635 = vmatprep.subr.bf16.mxu0 %v12535_v40 }
 0x9e2   :  { %9636 = vmatpush1.bf16.msra.mxu0 %v12533_v7 }
 0x9e5   :  { %9654 = vmatmul.mubr.bf16.vlgmr.msra.gmra.mrb[44].mxu0 %v13215_v63 }
 0xa58   :  { %v9491_v63 = vpop.f32.mrb[40].mxu0  ;;  %v9573_v24 = vpop.f32.mrb[56].mxu1 }
 0xa59   :  { %v11241_v46 = vadd.f32 %v9491_v63, %v8527_v12  ;;  %v11243_v25 = vadd.f32 %v9573_v24, %v8535_v14  ;;  %v9493_v26 = vpop.f32.mrb[41].mxu0  ;;  %v9575_v17 = vpop.f32.mrb[57].mxu1 }
 0xa5a   :  { %v11242_v28 = vadd.f32 %v9493_v26, %v8531_v18  ;;  %v11244_v9 = vadd.f32 %v9575_v17, %v8539_v20  ;;  %v9495_v30 = vpop.f32.mrb[42].mxu0  ;;  %v9577_v2 = vpop.f32.mrb[58].mxu1 }
 0xa5b   :  { %9742 = vst [vmem:[#allocation16] sm:$0xff] %v11241_v46  ;;  %9744 = vst [vmem:[#allocation16 + $0x10] sm:$0xff] %v11243_v25  ;;  %v9496_v31 = vpop.f32.mrb[43].mxu0  ;;  %v9578_v32 = vpop.f32.mrb[59].mxu1 }
 0xa5c   :  { %9743 = vst [vmem:[#allocation16 + $0x8] sm:$0xff] %v11242_v28  ;;  %9745 = vst [vmem:[#allocation16 + $0x18] sm:$0xff] %v11244_v9 }
 0xa79   :  { %v11166_v23 = vpop.f32.mrb[60].mxu1 }
 0xa7a   :  { %v11167_v37 = vpop.f32.mrb[61].mxu1 }
 0xa7b   :  { %v11168_v27 = vadd.f32 %v11167_v37, %v11166_v23  ;;  %v11169_v15 = vpop.f32.mrb[62].mxu1 }
 0xa7c   :  { %v11170_v33 = vpop.f32.mrb[63].mxu1 }
 0xa7d   :  { %v9697_v38 = vadd.f32 %v11168_v27, %v8551_v36 }
 0xa99   :  { %v9736_v56 = vpop.f32.mrb[64].mxu1 }
 0xa9a   :  { %v9737_v39 = vadd.f32 %v9736_v56, %v9697_v38  ;;  %v11219_v41 = vpop.f32.mrb[65].mxu1 }
 0xa9b   :  { %v9739_v53 = vpop.f32.mrb[66].mxu1 }
 0xa9c   :  { %9748 = vst [vmem:[#allocation16 + $0x30] sm:$0xff] %v9737_v39  ;;  %v11220_v10 = vpop.f32.mrb[67].mxu1 }
 0xab8   :  { %v9655_v44 = vpop.f32.mrb[44].mxu0 }
 0xab9   :  { %v11245_v58 = vadd.f32 %v9655_v44, %v8543_v42  ;;  %v9657_v57 = vpop.f32.mrb[45].mxu0 }
 0xaba   :  { %v11246_v47 = vadd.f32 %v9657_v57, %v8547_v43  ;;  %v9659_v48 = vpop.f32.mrb[46].mxu0 }
 0xabb   :  { %9746 = vst [vmem:[#allocation16 + $0x20] sm:$0xff] %v11245_v58  ;;  %v9660_v21 = vpop.f32.mrb[47].mxu0 }
 0xabc   :  { %9747 = vst [vmem:[#allocation16 + $0x28] sm:$0xff] %v11246_v47 }
 0xabd   :  { %12743 = shalt.err (!%p12740_p12)
}
 0xabe   :  { %s12744_s16 = scalar_lea.hbm %s13278_s10, 896 }
 0xabf   :  { %p12745_p13 = scmp.ne.s32.totalorder %s13278_s10, %s12744_s16  ;;  %p12748_p0 = scmp.lt.u32.totalorder %s12744_s16, %s13278_s10 }
 0xac1   :  { %p12750_p1 = pnand %p12748_p0, %p12745_p13 }
 0xac3   :  { %12753 = shalt.err (!%p12750_p1)
}
 0xac4   :  { %9758 = dma.vmem_to_hbm [thread:$0]  %s9756_s28, 896, %s13278_s10, [#allocation4]  }
 0xac5   :  { %12764 = dma.done.wait [#allocation4], 896  }
 0xac6   :  { %12765 = vsyncadd [#allocation4], 4294966400 }
 0xac7   :  { %9762 = vsyncpa [#allocation3], 1 }
 0xac8   :  { %9763 = vsyncpa [#allocation6], 1 }
 0xac9   :  { %9764 = vsyncpa [#allocation9], 1 }
 0xaca   :  { %9765 = vsyncpa [#allocation12], 1 }
 0xacb   :  { %9766 = vsyncpa [#allocation15], 1 }
 0xacc   :  { %9767 = vsyncpa [#allocation4], 1 }

</bundles_post_ra>
